<compile_context>
chip_gen: v7x
topology: tpu7x:2x2x1
jax: 0.10.0
libtpu: 0.0.40
codegen_flags: <defaults>
</compile_context>

<pallas_src>
import jax
import jax.numpy as jnp
from jax import lax
from jax.experimental import pallas as pl
from jax.experimental.pallas import tpu as pltpu


# ---------------------------------------------------------------------------
# Pallas kernel: full DenseResNet forward for one batch tile (batch on lanes).
# ---------------------------------------------------------------------------
def _dense_resnet_kernel(beta0_ref, beta_ref,            # SMEM: (1,), (nrb*nlpb,)
                         xt_ref, bt_ref,                 # VMEM: (din, tb), (m, din)
                         w1t_ref, b1t_ref,               # (H, 2m) bf16, (H, 1) f32
                         wrest_ref, brest_ref,           # (nrb,nlpb,H,H) bf16, (nrb,nlpb,H,1) f32
                         wlastt_ref, blastt_ref,         # (dout, H) bf16, (dout, 1) f32
                         out_ref):                       # (dout, tb) f32
    bf16 = jnp.bfloat16
    Xt = xt_ref[...]                                     # (din, tb) f32

    # Fourier projection: sigma=10 amplifies rounding through sin(), keep f32-exact.
    # K = din = 3, so HIGHEST here is effectively free on the MXU.
    proj = jnp.dot(bt_ref[...], Xt, preferred_element_type=jnp.float32,
                   precision=lax.Precision.HIGHEST)      # (m, tb)

    # [cos; sin] stacked on the sublane axis -> one merged first-layer matmul.
    feat = jnp.concatenate([jnp.cos(proj), jnp.sin(proj)], axis=0)   # (2m, tb)

    h = jnp.dot(w1t_ref[...], feat.astype(bf16),
                preferred_element_type=jnp.float32) + b1t_ref[...]   # (H, tb)
    act = jnp.sin(beta0_ref[0] * h)                                  # Sine activation

    nrb = wrest_ref.shape[0]
    nlpb = wrest_ref.shape[1]
    for i in range(nrb):
        z = jnp.sin(beta_ref[i * nlpb] *
                    (jnp.dot(wrest_ref[i, 0], act.astype(bf16),
                             preferred_element_type=jnp.float32)
                     + brest_ref[i, 0]))
        for j in range(1, nlpb):
            z = jnp.sin(beta_ref[i * nlpb + j] *
                        (jnp.dot(wrest_ref[i, j], z.astype(bf16),
                                 preferred_element_type=jnp.float32)
                         + brest_ref[i, j]))
            act = z + act                                            # residual add

    out_ref[...] = (jnp.dot(wlastt_ref[...], act.astype(bf16),
                            preferred_element_type=jnp.float32)
                    + blastt_ref[...]).astype(out_ref.dtype)


# ---------------------------------------------------------------------------
# Wrapper: layout plumbing (transposes, bf16 weight casts, batch padding) is
# plain-JAX glue; the hot path (matmuls, sin/cos, residual adds) is in-kernel.
# ---------------------------------------------------------------------------
def dense_resnet_forward(params, x, y, t, *, batch_tile=1024):
    bf16 = jnp.bfloat16
    X = jnp.concatenate([x, y, t], axis=1).astype(jnp.float32)       # (N, din)
    N, din = X.shape

    B = params["B"]                                   # (din, m)
    w1, b1 = params["w1"], params["b1"]               # (2m, H), (1, H)
    wres, bres = params["wres"], params["bres"]       # (nrb,nlpb,H,H), (nrb,nlpb,1,H)
    wlast, blast = params["wlast"], params["blast"]   # (H, dout), (1, dout)

    m = B.shape[1]
    Hdim = w1.shape[1]
    dout = wlast.shape[1]
    nrb, nlpb = wres.shape[0], wres.shape[1]

    # --- device layout: batch on lanes, weights transposed, hidden weights bf16.
    Bt = jnp.transpose(B)                             # (m, din)  f32
    w1t = jnp.transpose(w1).astype(bf16)              # (H, 2m)   bf16
    b1t = jnp.transpose(b1)                           # (H, 1)    f32
    wrest = jnp.swapaxes(wres, -1, -2).astype(bf16)   # (nrb,nlpb,H,H) bf16
    brest = jnp.swapaxes(bres, -1, -2)                # (nrb,nlpb,H,1) f32
    wlastt = jnp.transpose(wlast).astype(bf16)        # (dout, H) bf16
    blastt = jnp.transpose(blast)                     # (dout, 1) f32
    beta0 = params["beta0"].reshape(-1)               # (1,)          -> SMEM
    beta = params["beta"].reshape(-1)                 # (nrb*nlpb,)   -> SMEM

    # --- lane-dense batch tiling: multiple of 128, <= requested tile, and small
    #     enough that the grid has >= 2 steps (keeps both v7x TensorCores busy).
    def ceil_to(v, mult):
        return ((v + mult - 1) // mult) * mult

    tb = int(min(max(128, ceil_to(int(batch_tile), 128)),
                 max(128, ceil_to(pl.cdiv(N, 2), 128))))
    n_steps = max(2, pl.cdiv(N, tb))
    Npad = n_steps * tb

    Xt = jnp.transpose(X)                              # (din, N)
    Xt = jnp.pad(Xt, ((0, 0), (0, Npad - N)))          # (din, Npad)

    smem = pl.BlockSpec(memory_space=pltpu.MemorySpace.SMEM)

    def const(shape):
        return pl.BlockSpec(shape, lambda n, _s=len(shape): (0,) * _s)

    out_t = pl.pallas_call(
        _dense_resnet_kernel,
        out_shape=jax.ShapeDtypeStruct((dout, Npad), jnp.float32),
        grid_spec=pltpu.PrefetchScalarGridSpec(
            num_scalar_prefetch=0,
            grid=(n_steps,),
            in_specs=[
                smem,                                          # beta0 (1,)
                smem,                                          # beta  (nrb*nlpb,)
                pl.BlockSpec((din, tb), lambda n: (0, n)),     # X tile, batch on lanes
                const((m, din)),                               # B^T
                const((Hdim, 2 * m)),                          # W_first^T (bf16)
                const((Hdim, 1)),                              # b_first
                const((nrb, nlpb, Hdim, Hdim)),                # W_res^T   (bf16)
                const((nrb, nlpb, Hdim, 1)),                   # b_res
                const((dout, Hdim)),                           # W_last^T  (bf16)
                const((dout, 1)),                              # b_last
            ],
            out_specs=pl.BlockSpec((dout, tb), lambda n: (0, n)),   # lane-dense store
        ),
        compiler_params=pltpu.CompilerParams(
            dimension_semantics=("parallel",),
            vmem_limit_bytes=32 * 1024 * 1024),
    )(beta0, beta, Xt, Bt, w1t, b1t, wrest, brest, wlastt, blastt)

    return jnp.transpose(out_t)[:N]                    # (N, dout)


# ---------------------------------------------------------------------------
# Deterministic parameter init (xavier_normal weights, zero biases,
# B = sigma * randn, beta/beta0 = ones) — mirrors the module's __init__.
# ---------------------------------------------------------------------------
def init_params(key, layers_list, num_res_blocks, num_layers_per_block,
                m_freqs, sigma):
    din, Hdim, dout = layers_list[0], layers_list[1], layers_list[-1]
    n_keys = 3 + num_res_blocks * num_layers_per_block
    keys = jax.random.split(key, n_keys)

    def xavier_normal(k, fan_in, fan_out):
        std = (2.0 / (fan_in + fan_out)) ** 0.5
        return std * jax.random.normal(k, (fan_in, fan_out), jnp.float32)

    B = sigma * jax.random.normal(keys[0], (din, m_freqs), jnp.float32)
    w1 = xavier_normal(keys[1], 2 * m_freqs, Hdim)
    b1 = jnp.zeros((1, Hdim), jnp.float32)

    wres_list, kidx = [], 2
    for _ in range(num_res_blocks):
        row = []
        for _ in range(num_layers_per_block):
            row.append(xavier_normal(keys[kidx], Hdim, Hdim))
            kidx += 1
        wres_list.append(jnp.stack(row))
    wres = jnp.stack(wres_list)                                   # (nrb, nlpb, H, H)
    bres = jnp.zeros((num_res_blocks, num_layers_per_block, 1, Hdim), jnp.float32)

    wlast = xavier_normal(keys[kidx], Hdim, dout)
    blast = jnp.zeros((1, dout), jnp.float32)

    beta0 = jnp.ones((1, 1), jnp.float32)
    beta = jnp.ones((num_res_blocks, num_layers_per_block), jnp.float32)

    return dict(B=B, w1=w1, b1=b1, wres=wres, bres=bres,
                wlast=wlast, blast=blast, beta0=beta0, beta=beta)


# ---------------------------------------------------------------------------
# Pure-JAX reference of the forward pass, with matching compute precision
# (f32/HIGHEST Fourier projection; bf16 x bf16 -> f32 hidden matmuls).
# ---------------------------------------------------------------------------
def ref_forward(params, x, y, t):
    bf16 = jnp.bfloat16
    X = jnp.concatenate([x, y, t], axis=1).astype(jnp.float32)
    proj = jnp.matmul(X, params["B"], precision=lax.Precision.HIGHEST)
    F = jnp.concatenate([jnp.cos(proj), jnp.sin(proj)], axis=1)

    def lin(a, w, b):   # bf16 matmul, f32 accumulation + f32 bias (matches kernel)
        return jnp.matmul(a.astype(bf16), w.astype(bf16),
                          preferred_element_type=jnp.float32) + b

    H = jnp.sin(params["beta0"][0, 0] * lin(F, params["w1"], params["b1"]))
    nrb, nlpb = params["wres"].shape[0], params["wres"].shape[1]
    for i in range(nrb):
        z = jnp.sin(params["beta"][i, 0] *
                    lin(H, params["wres"][i, 0], params["bres"][i, 0]))
        for j in range(1, nlpb):
            z = jnp.sin(params["beta"][i, j] *
                        lin(z, params["wres"][i, j], params["bres"][i, j]))
            H = z + H
    return lin(H, params["wlast"], params["blast"])


if __name__ == "__main__":
    # Small shapes consistent with the module: inputs x, y, t each (N, 1),
    # layers_list = [3, 32, 1], 3 residual blocks of 2 layers, m_freqs=16, sigma=10.
    layers_list = [3, 32, 1]
    num_res_blocks = 3
    num_layers_per_block = 2
    m_freqs = 16
    sigma = 10.0
    N = 16

    key = jax.random.PRNGKey(0)
    k_params, kx, ky, kt = jax.random.split(key, 4)

    params = init_params(k_params, layers_list, num_res_blocks,
                         num_layers_per_block, m_freqs, sigma)

    x = jax.random.normal(kx, (N, 1), jnp.float32)
    y = jax.random.normal(ky, (N, 1), jnp.float32)
    t = jax.random.normal(kt, (N, 1), jnp.float32)

    out = jax.block_until_ready(dense_resnet_forward(params, x, y, t))
    ref = jax.block_until_ready(ref_forward(params, x, y, t))

    assert out.shape == (N, layers_list[-1])
    assert bool(jnp.all(jnp.isfinite(out)))
    assert bool(jnp.allclose(out, ref, rtol=2e-2, atol=2e-2)), (
        f"max abs diff = {float(jnp.max(jnp.abs(out - ref)))}")

    print("KERNEL_OK")
</pallas_src>

<mosaic_0001>
module attributes {stable_mosaic.version = 11 : i64} {
  func.func @_dense_resnet_kernel(%arg0: i32, %arg1: memref<1xf32, #tpu.memory_space<smem>>, %arg2: memref<6xf32, #tpu.memory_space<smem>>, %arg3: memref<3x128xf32, #tpu.memory_space<vmem>>, %arg4: memref<16x3xf32, #tpu.memory_space<vmem>>, %arg5: memref<32x32xbf16, #tpu.memory_space<vmem>>, %arg6: memref<32x1xf32, #tpu.memory_space<vmem>>, %arg7: memref<3x2x32x32xbf16, #tpu.memory_space<vmem>>, %arg8: memref<3x2x32x1xf32, #tpu.memory_space<vmem>>, %arg9: memref<1x32xbf16, #tpu.memory_space<vmem>>, %arg10: memref<1x1xf32, #tpu.memory_space<vmem>>, %arg11: memref<1x128xf32, #tpu.memory_space<vmem>>) attributes {dimension_semantics = [#tpu.dimension_semantics<parallel>], iteration_bounds = array<i64: 2>, scalar_prefetch = 0 : i64, scratch_operands = 0 : i64, tpu.core_type = #tpu.core_type<tc>, window_params = [{transform_indices = @transform_0, window_bounds = array<i64: 1>}, {transform_indices = @transform_1, window_bounds = array<i64: 6>}, {transform_indices = @transform_2, window_bounds = array<i64: 3, 128>}, {pipeline_mode = #tpu.pipeline_mode<synchronous>, transform_indices = @transform_3, window_bounds = array<i64: 16, 3>}, {pipeline_mode = #tpu.pipeline_mode<synchronous>, transform_indices = @transform_4, window_bounds = array<i64: 32, 32>}, {pipeline_mode = #tpu.pipeline_mode<synchronous>, transform_indices = @transform_5, window_bounds = array<i64: 32, 1>}, {pipeline_mode = #tpu.pipeline_mode<synchronous>, transform_indices = @transform_6, window_bounds = array<i64: 3, 2, 32, 32>}, {pipeline_mode = #tpu.pipeline_mode<synchronous>, transform_indices = @transform_7, window_bounds = array<i64: 3, 2, 32, 1>}, {pipeline_mode = #tpu.pipeline_mode<synchronous>, transform_indices = @transform_8, window_bounds = array<i64: 1, 32>}, {pipeline_mode = #tpu.pipeline_mode<synchronous>, transform_indices = @transform_9, window_bounds = array<i64: 1, 1>}, {transform_indices = @transform_10, window_bounds = array<i64: 1, 128>}]} {
    %c0 = arith.constant 0 : index
    %c0_0 = arith.constant 0 : index
    %0 = vector.load %arg3[%c0, %c0_0] : memref<3x128xf32, #tpu.memory_space<vmem>>, vector<3x128xf32>
    %c0_1 = arith.constant 0 : index
    %c0_2 = arith.constant 0 : index
    %1 = vector.load %arg4[%c0_1, %c0_2] : memref<16x3xf32, #tpu.memory_space<vmem>>, vector<16x3xf32>
    %cst = arith.constant dense<0.000000e+00> : vector<16x128xf32>
    %2 = tpu.matmul %1, %0, %cst {dimension_numbers = #tpu.dot_dimension_numbers<[1], [0], [0], [1], [0, 0, 1, 1], [], []>, precision = #tpu.contract_precision<fp32>} : vector<16x3xf32>, vector<3x128xf32>, vector<16x128xf32> -> vector<16x128xf32>
    %3 = math.cos %2 : vector<16x128xf32>
    %4 = math.sin %2 : vector<16x128xf32>
    %5 = tpu.concatenate %3, %4 in 0 : vector<16x128xf32>, vector<16x128xf32> -> vector<32x128xf32>
    %c0_3 = arith.constant 0 : index
    %c0_4 = arith.constant 0 : index
    %6 = vector.load %arg5[%c0_3, %c0_4] : memref<32x32xbf16, #tpu.memory_space<vmem>>, vector<32x32xbf16>
    %7 = arith.truncf %5 : vector<32x128xf32> to vector<32x128xbf16>
    %cst_5 = arith.constant dense<0.000000e+00> : vector<32x128xf32>
    %8 = tpu.matmul %6, %7, %cst_5 {dimension_numbers = #tpu.dot_dimension_numbers<[1], [0], [0], [1], [0, 0, 1, 1], [], []>} : vector<32x32xbf16>, vector<32x128xbf16>, vector<32x128xf32> -> vector<32x128xf32>
    %c0_6 = arith.constant 0 : index
    %c0_7 = arith.constant 0 : index
    %9 = vector.load %arg6[%c0_6, %c0_7] : memref<32x1xf32, #tpu.memory_space<vmem>>, vector<32x1xf32>
    %10 = vector.broadcast %9 : vector<32x1xf32> to vector<32x128xf32>
    %11 = arith.addf %8, %10 : vector<32x128xf32>
    %c0_8 = arith.constant 0 : index
    %12 = memref.load %arg1[%c0_8] : memref<1xf32, #tpu.memory_space<smem>>
    %13 = vector.broadcast %12 : f32 to vector<32x128xf32>
    %14 = arith.mulf %13, %11 : vector<32x128xf32>
    %15 = math.sin %14 : vector<32x128xf32>
    %c0_9 = arith.constant 0 : index
    %16 = memref.load %arg2[%c0_9] : memref<6xf32, #tpu.memory_space<smem>>
    %c0_10 = arith.constant 0 : index
    %c0_11 = arith.constant 0 : index
    %c0_12 = arith.constant 0 : index
    %c0_13 = arith.constant 0 : index
    %17 = vector.load %arg7[%c0_10, %c0_11, %c0_12, %c0_13] : memref<3x2x32x32xbf16, #tpu.memory_space<vmem>>, vector<1x1x32x32xbf16>
    %18 = vector.shape_cast %17 : vector<1x1x32x32xbf16> to vector<32x32xbf16>
    %19 = arith.truncf %15 : vector<32x128xf32> to vector<32x128xbf16>
    %cst_14 = arith.constant dense<0.000000e+00> : vector<32x128xf32>
    %20 = tpu.matmul %18, %19, %cst_14 {dimension_numbers = #tpu.dot_dimension_numbers<[1], [0], [0], [1], [0, 0, 1, 1], [], []>} : vector<32x32xbf16>, vector<32x128xbf16>, vector<32x128xf32> -> vector<32x128xf32>
    %c0_15 = arith.constant 0 : index
    %c0_16 = arith.constant 0 : index
    %c0_17 = arith.constant 0 : index
    %c0_18 = arith.constant 0 : index
    %21 = vector.load %arg8[%c0_15, %c0_16, %c0_17, %c0_18] : memref<3x2x32x1xf32, #tpu.memory_space<vmem>>, vector<1x1x32x1xf32>
    %22 = vector.shape_cast %21 : vector<1x1x32x1xf32> to vector<32x1xf32>
    %23 = vector.broadcast %22 : vector<32x1xf32> to vector<32x128xf32>
    %24 = arith.addf %20, %23 : vector<32x128xf32>
    %25 = vector.broadcast %16 : f32 to vector<32x128xf32>
    %26 = arith.mulf %25, %24 : vector<32x128xf32>
    %27 = math.sin %26 : vector<32x128xf32>
    %c1 = arith.constant 1 : index
    %28 = memref.load %arg2[%c1] : memref<6xf32, #tpu.memory_space<smem>>
    %c0_19 = arith.constant 0 : index
    %c1_20 = arith.constant 1 : index
    %c0_21 = arith.constant 0 : index
    %c0_22 = arith.constant 0 : index
    %29 = vector.load %arg7[%c0_19, %c1_20, %c0_21, %c0_22] : memref<3x2x32x32xbf16, #tpu.memory_space<vmem>>, vector<1x1x32x32xbf16>
    %30 = vector.shape_cast %29 : vector<1x1x32x32xbf16> to vector<32x32xbf16>
    %31 = arith.truncf %27 : vector<32x128xf32> to vector<32x128xbf16>
    %cst_23 = arith.constant dense<0.000000e+00> : vector<32x128xf32>
    %32 = tpu.matmul %30, %31, %cst_23 {dimension_numbers = #tpu.dot_dimension_numbers<[1], [0], [0], [1], [0, 0, 1, 1], [], []>} : vector<32x32xbf16>, vector<32x128xbf16>, vector<32x128xf32> -> vector<32x128xf32>
    %c0_24 = arith.constant 0 : index
    %c1_25 = arith.constant 1 : index
    %c0_26 = arith.constant 0 : index
    %c0_27 = arith.constant 0 : index
    %33 = vector.load %arg8[%c0_24, %c1_25, %c0_26, %c0_27] : memref<3x2x32x1xf32, #tpu.memory_space<vmem>>, vector<1x1x32x1xf32>
    %34 = vector.shape_cast %33 : vector<1x1x32x1xf32> to vector<32x1xf32>
    %35 = vector.broadcast %34 : vector<32x1xf32> to vector<32x128xf32>
    %36 = arith.addf %32, %35 : vector<32x128xf32>
    %37 = vector.broadcast %28 : f32 to vector<32x128xf32>
    %38 = arith.mulf %37, %36 : vector<32x128xf32>
    %39 = math.sin %38 : vector<32x128xf32>
    %40 = arith.addf %39, %15 : vector<32x128xf32>
    %c2 = arith.constant 2 : index
    %41 = memref.load %arg2[%c2] : memref<6xf32, #tpu.memory_space<smem>>
    %c1_28 = arith.constant 1 : index
    %c0_29 = arith.constant 0 : index
    %c0_30 = arith.constant 0 : index
    %c0_31 = arith.constant 0 : index
    %42 = vector.load %arg7[%c1_28, %c0_29, %c0_30, %c0_31] : memref<3x2x32x32xbf16, #tpu.memory_space<vmem>>, vector<1x1x32x32xbf16>
    %43 = vector.shape_cast %42 : vector<1x1x32x32xbf16> to vector<32x32xbf16>
    %44 = arith.truncf %40 : vector<32x128xf32> to vector<32x128xbf16>
    %cst_32 = arith.constant dense<0.000000e+00> : vector<32x128xf32>
    %45 = tpu.matmul %43, %44, %cst_32 {dimension_numbers = #tpu.dot_dimension_numbers<[1], [0], [0], [1], [0, 0, 1, 1], [], []>} : vector<32x32xbf16>, vector<32x128xbf16>, vector<32x128xf32> -> vector<32x128xf32>
    %c1_33 = arith.constant 1 : index
    %c0_34 = arith.constant 0 : index
    %c0_35 = arith.constant 0 : index
    %c0_36 = arith.constant 0 : index
    %46 = vector.load %arg8[%c1_33, %c0_34, %c0_35, %c0_36] : memref<3x2x32x1xf32, #tpu.memory_space<vmem>>, vector<1x1x32x1xf32>
    %47 = vector.shape_cast %46 : vector<1x1x32x1xf32> to vector<32x1xf32>
    %48 = vector.broadcast %47 : vector<32x1xf32> to vector<32x128xf32>
    %49 = arith.addf %45, %48 : vector<32x128xf32>
    %50 = vector.broadcast %41 : f32 to vector<32x128xf32>
    %51 = arith.mulf %50, %49 : vector<32x128xf32>
    %52 = math.sin %51 : vector<32x128xf32>
    %c3 = arith.constant 3 : index
    %53 = memref.load %arg2[%c3] : memref<6xf32, #tpu.memory_space<smem>>
    %c1_37 = arith.constant 1 : index
    %c1_38 = arith.constant 1 : index
    %c0_39 = arith.constant 0 : index
    %c0_40 = arith.constant 0 : index
    %54 = vector.load %arg7[%c1_37, %c1_38, %c0_39, %c0_40] : memref<3x2x32x32xbf16, #tpu.memory_space<vmem>>, vector<1x1x32x32xbf16>
    %55 = vector.shape_cast %54 : vector<1x1x32x32xbf16> to vector<32x32xbf16>
    %56 = arith.truncf %52 : vector<32x128xf32> to vector<32x128xbf16>
    %cst_41 = arith.constant dense<0.000000e+00> : vector<32x128xf32>
    %57 = tpu.matmul %55, %56, %cst_41 {dimension_numbers = #tpu.dot_dimension_numbers<[1], [0], [0], [1], [0, 0, 1, 1], [], []>} : vector<32x32xbf16>, vector<32x128xbf16>, vector<32x128xf32> -> vector<32x128xf32>
    %c1_42 = arith.constant 1 : index
    %c1_43 = arith.constant 1 : index
    %c0_44 = arith.constant 0 : index
    %c0_45 = arith.constant 0 : index
    %58 = vector.load %arg8[%c1_42, %c1_43, %c0_44, %c0_45] : memref<3x2x32x1xf32, #tpu.memory_space<vmem>>, vector<1x1x32x1xf32>
    %59 = vector.shape_cast %58 : vector<1x1x32x1xf32> to vector<32x1xf32>
    %60 = vector.broadcast %59 : vector<32x1xf32> to vector<32x128xf32>
    %61 = arith.addf %57, %60 : vector<32x128xf32>
    %62 = vector.broadcast %53 : f32 to vector<32x128xf32>
    %63 = arith.mulf %62, %61 : vector<32x128xf32>
    %64 = math.sin %63 : vector<32x128xf32>
    %65 = arith.addf %64, %40 : vector<32x128xf32>
    %c4 = arith.constant 4 : index
    %66 = memref.load %arg2[%c4] : memref<6xf32, #tpu.memory_space<smem>>
    %c2_46 = arith.constant 2 : index
    %c0_47 = arith.constant 0 : index
    %c0_48 = arith.constant 0 : index
    %c0_49 = arith.constant 0 : index
    %67 = vector.load %arg7[%c2_46, %c0_47, %c0_48, %c0_49] : memref<3x2x32x32xbf16, #tpu.memory_space<vmem>>, vector<1x1x32x32xbf16>
    %68 = vector.shape_cast %67 : vector<1x1x32x32xbf16> to vector<32x32xbf16>
    %69 = arith.truncf %65 : vector<32x128xf32> to vector<32x128xbf16>
    %cst_50 = arith.constant dense<0.000000e+00> : vector<32x128xf32>
    %70 = tpu.matmul %68, %69, %cst_50 {dimension_numbers = #tpu.dot_dimension_numbers<[1], [0], [0], [1], [0, 0, 1, 1], [], []>} : vector<32x32xbf16>, vector<32x128xbf16>, vector<32x128xf32> -> vector<32x128xf32>
    %c2_51 = arith.constant 2 : index
    %c0_52 = arith.constant 0 : index
    %c0_53 = arith.constant 0 : index
    %c0_54 = arith.constant 0 : index
    %71 = vector.load %arg8[%c2_51, %c0_52, %c0_53, %c0_54] : memref<3x2x32x1xf32, #tpu.memory_space<vmem>>, vector<1x1x32x1xf32>
    %72 = vector.shape_cast %71 : vector<1x1x32x1xf32> to vector<32x1xf32>
    %73 = vector.broadcast %72 : vector<32x1xf32> to vector<32x128xf32>
    %74 = arith.addf %70, %73 : vector<32x128xf32>
    %75 = vector.broadcast %66 : f32 to vector<32x128xf32>
    %76 = arith.mulf %75, %74 : vector<32x128xf32>
    %77 = math.sin %76 : vector<32x128xf32>
    %c5 = arith.constant 5 : index
    %78 = memref.load %arg2[%c5] : memref<6xf32, #tpu.memory_space<smem>>
    %c2_55 = arith.constant 2 : index
    %c1_56 = arith.constant 1 : index
    %c0_57 = arith.constant 0 : index
    %c0_58 = arith.constant 0 : index
    %79 = vector.load %arg7[%c2_55, %c1_56, %c0_57, %c0_58] : memref<3x2x32x32xbf16, #tpu.memory_space<vmem>>, vector<1x1x32x32xbf16>
    %80 = vector.shape_cast %79 : vector<1x1x32x32xbf16> to vector<32x32xbf16>
    %81 = arith.truncf %77 : vector<32x128xf32> to vector<32x128xbf16>
    %cst_59 = arith.constant dense<0.000000e+00> : vector<32x128xf32>
    %82 = tpu.matmul %80, %81, %cst_59 {dimension_numbers = #tpu.dot_dimension_numbers<[1], [0], [0], [1], [0, 0, 1, 1], [], []>} : vector<32x32xbf16>, vector<32x128xbf16>, vector<32x128xf32> -> vector<32x128xf32>
    %c2_60 = arith.constant 2 : index
    %c1_61 = arith.constant 1 : index
    %c0_62 = arith.constant 0 : index
    %c0_63 = arith.constant 0 : index
    %83 = vector.load %arg8[%c2_60, %c1_61, %c0_62, %c0_63] : memref<3x2x32x1xf32, #tpu.memory_space<vmem>>, vector<1x1x32x1xf32>
    %84 = vector.shape_cast %83 : vector<1x1x32x1xf32> to vector<32x1xf32>
    %85 = vector.broadcast %84 : vector<32x1xf32> to vector<32x128xf32>
    %86 = arith.addf %82, %85 : vector<32x128xf32>
    %87 = vector.broadcast %78 : f32 to vector<32x128xf32>
    %88 = arith.mulf %87, %86 : vector<32x128xf32>
    %89 = math.sin %88 : vector<32x128xf32>
    %90 = arith.addf %89, %65 : vector<32x128xf32>
    %c0_64 = arith.constant 0 : index
    %c0_65 = arith.constant 0 : index
    %91 = vector.load %arg9[%c0_64, %c0_65] : memref<1x32xbf16, #tpu.memory_space<vmem>>, vector<1x32xbf16>
    %92 = arith.truncf %90 : vector<32x128xf32> to vector<32x128xbf16>
    %cst_66 = arith.constant dense<0.000000e+00> : vector<1x128xf32>
    %93 = tpu.matmul %91, %92, %cst_66 {dimension_numbers = #tpu.dot_dimension_numbers<[1], [0], [0], [1], [0, 0, 1, 1], [], []>} : vector<1x32xbf16>, vector<32x128xbf16>, vector<1x128xf32> -> vector<1x128xf32>
    %c0_67 = arith.constant 0 : index
    %c0_68 = arith.constant 0 : index
    %94 = vector.load %arg10[%c0_67, %c0_68] : memref<1x1xf32, #tpu.memory_space<vmem>>, vector<1x1xf32>
    %95 = vector.broadcast %94 : vector<1x1xf32> to vector<1x128xf32>
    %96 = arith.addf %93, %95 : vector<1x128xf32>
    %c0_69 = arith.constant 0 : index
    %c0_70 = arith.constant 0 : index
    %97 = vector.load %arg11[%c0_69, %c0_70] : memref<1x128xf32, #tpu.memory_space<vmem>>, vector<1x128xf32>
    tpu.vector_store %arg11[%c0_69, %c0_70], %96 {strides = array<i32>} : memref<1x128xf32, #tpu.memory_space<vmem>>, vector<1x128xf32>,
    return
  }
  func.func @transform_0(%arg0: i32) -> i32 {
    %c0_i32 = arith.constant 0 : i32
    %c0_i32_0 = arith.constant 0 : i32
    return %c0_i32 : i32
  }
  func.func @transform_1(%arg0: i32) -> i32 {
    %c0_i32 = arith.constant 0 : i32
    %c0_i32_0 = arith.constant 0 : i32
    return %c0_i32 : i32
  }
  func.func @transform_2(%arg0: i32) -> (i32, i32) {
    %c0_i32 = arith.constant 0 : i32
    %c0_i32_0 = arith.constant 0 : i32
    return %c0_i32, %arg0 : i32, i32
  }
  func.func @transform_3(%arg0: i32) -> (i32, i32) {
    %c0_i32 = arith.constant 0 : i32
    %c0_i32_0 = arith.constant 0 : i32
    %c0_i32_1 = arith.constant 0 : i32
    return %c0_i32, %c0_i32_0 : i32, i32
  }
  func.func @transform_4(%arg0: i32) -> (i32, i32) {
    %c0_i32 = arith.constant 0 : i32
    %c0_i32_0 = arith.constant 0 : i32
    %c0_i32_1 = arith.constant 0 : i32
    return %c0_i32, %c0_i32_0 : i32, i32
  }
  func.func @transform_5(%arg0: i32) -> (i32, i32) {
    %c0_i32 = arith.constant 0 : i32
    %c0_i32_0 = arith.constant 0 : i32
    %c0_i32_1 = arith.constant 0 : i32
    return %c0_i32, %c0_i32_0 : i32, i32
  }
  func.func @transform_6(%arg0: i32) -> (i32, i32, i32, i32) {
    %c0_i32 = arith.constant 0 : i32
    %c0_i32_0 = arith.constant 0 : i32
    %c0_i32_1 = arith.constant 0 : i32
    %c0_i32_2 = arith.constant 0 : i32
    %c0_i32_3 = arith.constant 0 : i32
    return %c0_i32, %c0_i32_0, %c0_i32_1, %c0_i32_2 : i32, i32, i32, i32
  }
  func.func @transform_7(%arg0: i32) -> (i32, i32, i32, i32) {
    %c0_i32 = arith.constant 0 : i32
    %c0_i32_0 = arith.constant 0 : i32
    %c0_i32_1 = arith.constant 0 : i32
    %c0_i32_2 = arith.constant 0 : i32
    %c0_i32_3 = arith.constant 0 : i32
    return %c0_i32, %c0_i32_0, %c0_i32_1, %c0_i32_2 : i32, i32, i32, i32
  }
  func.func @transform_8(%arg0: i32) -> (i32, i32) {
    %c0_i32 = arith.constant 0 : i32
    %c0_i32_0 = arith.constant 0 : i32
    %c0_i32_1 = arith.constant 0 : i32
    return %c0_i32, %c0_i32_0 : i32, i32
  }
  func.func @transform_9(%arg0: i32) -> (i32, i32) {
    %c0_i32 = arith.constant 0 : i32
    %c0_i32_0 = arith.constant 0 : i32
    %c0_i32_1 = arith.constant 0 : i32
    return %c0_i32, %c0_i32_0 : i32, i32
  }
  func.func @transform_10(%arg0: i32) -> (i32, i32) {
    %c0_i32 = arith.constant 0 : i32
    %c0_i32_0 = arith.constant 0 : i32
    return %c0_i32, %arg0 : i32, i32
  }
}

</mosaic_0001>

<bundles_post_ra>
// kernel: tpu_custom_call.1
= control target key start
LH: loop header
LB: loop body
LE: loop exit
PB: predicated region body
PF: predicated region fallthrough
CT: control target
= control target key end

     0   :  { %s8312_s0 = inlined_call_operand.<no memory space> [shape: f32[1], index: 0, kind: input, shape index: {}]   ;;  %s8313_s1 = inlined_call_operand.vmem [shape: f32[6], index: 1, kind: input, shape index: {}]   ;;  %s8314_s2 = inlined_call_operand.vmem [shape: f32[3,256], index: 2, kind: input, shape index: {}]   ;;  %s8315_s3 = inlined_call_operand.vmem [shape: f32[16,3], index: 3, kind: input, shape index: {}]   ;;  %s8316_s4 = inlined_call_operand.vmem [shape: bf16[32,32], index: 4, kind: input, shape index: {}]   ;;  %s8317_s5 = inlined_call_operand.vmem [shape: f32[32,1], index: 5, kind: input, shape index: {}]   ;;  %s8318_s6 = inlined_call_operand.vmem [shape: bf16[3,2,32,32], index: 6, kind: input, shape index: {}]   ;;  %s8319_s7 = inlined_call_operand.vmem [shape: f32[3,2,32,1], index: 7, kind: input, shape index: {}]   ;;  %s8320_s8 = inlined_call_operand.vmem [shape: bf16[1,32], index: 8, kind: input, shape index: {}]   ;;  %s8321_s9 = inlined_call_operand.<no memory space> [shape: f32[1,1], index: 9, kind: input, shape index: {}]   ;;  %s8322_s10 = inlined_call_operand.hbm [shape: f32[1,256], index: 10, kind: output, shape index: {}]  }
   0x1   :  { %15 = sst [smem:[#allocation2]] %s8312_s0  ;;  %v16_v0 = vstv %s8321_s9 }
   0x2   :  { %17 = vst [vmem:[#allocation3] sm:$0x1] %v16_v0 }
   0x3   :  { %18 = vsyncpa [#allocation6], 0 }
   0x4   :  { %19 = vsyncpa [#allocation5], 0 }
   0x5   :  { %21 = vsyncpa [#allocation5 + $0x1], 0  ;;  %s5903_s17 = smov 0   ;;  %s5905_s18 = smov 0  }
   0x6   :  { %s5907_s19 = smov 0   ;;  %s5909_s20 = smov 0  }
   0x7 LB: > { %s5924_s0 = sadd.s32 4294967295, %s5829_s20   ;;  %s5068_s9 = sadd.s32 4294967294, %s5829_s20   ;;  %s5829_s20 = sphi %s5909_s20, %s8379_s20   ;;  %s5825_s19 = sphi %s5907_s19, %s8378_s19   ;;  %s5821_s18 = sphi %s5905_s18, %s8377_s18   ;;  %s5817_s17 = sphi %s5903_s17, %s8376_s17  }
   0x8   : > { %s5928_s21 = sadd.s32 1, %s5829_s20   ;;  %s249_s22 = sadd.s32 1, %s5825_s19 }
   0x9   : > { %s246_s23 = ssub.s32 %s5829_s20, %s5928_s21  ;;  %p259_p0 = scmp.ne.s32.totalorder %s5825_s19, %s5821_s18 }
   0xa   : > { %p247_p1 = scmp.eq.s32.totalorder %s246_s23, 0  ;;  %p260_p2 = scmp.eq.s32.totalorder %s5924_s0, 1 }
   0xb   : > { %p265_p3 = scmp.ne.s32.totalorder %s5821_s18, %s5817_s17  ;;  %p266_p4 = scmp.eq.s32.totalorder %s5068_s9, 1 }
   0xc   : > { %s5939_s24 = scalar_select %p247_p1, %s5825_s19, %s249_s22  }
   0xd   : > { %p5941_p5 = por %p260_p2, %p259_p0  ;;  %p5945_p6 = por %p266_p4, %p265_p3 }
   0xe   : > { %p5069_p7 = scmp.ge.s32.totalorder %s5829_s20, 1  ;;  %p273_p8 = scmp.lt.s32.totalorder %s5829_s20, 3 }
   0xf   : > { %p5567_p9 = scmp.eq.s32.totalorder %s5924_s0, 0  ;;  %s289_s30 = sshll.u32 %s8313_s1, 4  ;;  %s290_s30 = int_to_ptr.vmem [resolvable:$true] %s289_s30 }
  0x10   : > { %p5952_p10 = pnand %p5069_p7, %p273_p8  ;;  %s5748_s11 = scalar_lea.vmem %s290_s30, 16 }
  0x11   : > { %p5749_p13 = scmp.ne.s32.totalorder %s290_s30, %s5748_s11  ;;  %p5756_p3 = scmp.lt.s32.totalorder %s290_s30, %s290_s30 }
  0x12   : > { %p5559_p11 = pneg %p5952_p10  ;;  %p5757_p4 = scmp.lt.s32.totalorder %s5748_s11, %s5748_s11 }
  0x14   : > { %p5560_p12 = pnand %p5567_p9, %p5559_p11  ;;  %p5758_p7 = por %p5757_p4, %p5756_p3 }
  0x16   : > { %p5750_p0 = pneg %p5560_p12 }
  0x18   : > { %p5751_p1 = pnand %p5750_p0, %p5749_p13 }
  0x1a   : > { %p5752_p2 = pneg %p5751_p1 }
  0x1c   : > { %p5759_p8 = pnand %p5758_p7, %p5752_p2 }
  0x1e   : > { %5762 = shalt.err (!%p5759_p8)
}
  0x1f   : > { %s5831_s12 = smov [#allocation4]   ;;  %330 = sbr.rel (%p5952_p10) target bundleno = 3058 (0xbf2), region = 60 }
  0x20   : > { %5562 = dma.vmem_to_smem (!%p5560_p12), %s290_s30, 16, %s5831_s12, [#allocation6]  }
  0x26   : > { %5808 = dma.done.wait (%p5567_p9), [#allocation6], 16  }
  0x27   : > { %5810 = vsyncadd (%p5567_p9), [#allocation6], 4294967280 }
  0x28   : > { %336 = sfence }
  0x29   : > { %p367_p11 = scmp.lt.s32.totalorder %s5924_s0, 1  ;;  %v373_v1 = vld [vmem:[%s8315_s3] sm:$0xff]  ;;  %vm375_vm0 = vcmask 23552   ;;  %v374_v2 = vld [vmem:[%s8315_s3 + $0x8] sm:$0xff]  ;;  %vm382_vm1 = vcmask 1042432   ;;  %vm1329_vm2 = vcmask 261120  }
  0x2a   : > { %v377_v3 = vsel %vm375_vm0, %v373_v1, 0  ;;  %v380_v4 = vsel %vm375_vm0, %v374_v2, 0  ;;  %v5614_v24 = vld [vmem:[%s8316_s4] sm:$0xff]   ;;  %v1297_v26 = vld [vmem:[%s8317_s5 + $0x10] sm:$0xff]  ;;  %v5832_v27 = vmov 0   ;;  %v1296_v28 = vld [vmem:[%s8317_s5 + $0x8] sm:$0xff] }
  0x2b   : > { %s368_s9 = scalar_select %p367_p11, %s5924_s0, 1  ;;  %v452_v5 = vand.u32 4294901760, %v377_v3  ;;  %v462_v6 = vand.u32 4294901760, %v380_v4  ;;  %v1295_v25 = vld [vmem:[%s8317_s5] sm:$0xff]  ;;  %5612 = vset.pattern.permute.xlu0 %v5832_v27  ;;  %5613 = vset.pattern.permute.xlu1 %v5832_v27  ;;  %v1298_v29 = vld [vmem:[%s8317_s5 + $0x18] sm:$0xff]  ;;  %v1815_v31 = vld [vmem:[%s8319_s7 + $0x8] sm:$0xff] }
  0x2c   : > { %1301 = vperm.xlu0 %5612, %v1295_v25   ;;  %1311 = vperm.xlu1 %5613, %v1297_v26   ;;  %v1814_v30 = vld [vmem:[%s8319_s7] sm:$0xff]  ;;  %v1816_v32 = vld [vmem:[%s8319_s7 + $0x10] sm:$0xff]  ;;  %v1817_v33 = vld [vmem:[%s8319_s7 + $0x18] sm:$0xff]  ;;  %v5838_v25 = vmov 1326507024   ;;  %s1807_s29 = sld [smem:[#allocation4]] }
  0x2d   : > { %s5074_s22 = sshll.u32 %s368_s9, 2  ;;  %5336 = vmatprep.mubr.f32.mxu0 %v452_v5  ;;  %v453_v7 = vsub.f32 %v377_v3, %v452_v5  ;;  %v463_v8 = vsub.f32 %v380_v4, %v462_v6  ;;  %v5136_v34 = vld [vmem:[%s8319_s7 + $0x20] sm:$0xff]  ;;  %v5137_v35 = vld [vmem:[%s8319_s7 + $0x28] sm:$0xff]  ;;  %v5138_v36 = vld [vmem:[%s8319_s7 + $0x30] sm:$0xff]  ;;  %s1385_s9 = sld [smem:[#allocation2]] }
  0x2e   : > { %s370_s28 = scalar_lea.vmem %s8314_s2, %s5074_s22  ;;  %v5139_v37 = vld [vmem:[%s8319_s7 + $0x38] sm:$0xff]  ;;  %v5165_v38 = vld [vmem:[%s8319_s7 + $0x40] sm:$0xff]  ;;  %v5166_v39 = vld [vmem:[%s8319_s7 + $0x48] sm:$0xff]  ;;  %s5131_s14 = sld [smem:[#allocation4 + $0x1]] }
  0x2f   : > { %v372_v9 = vld [vmem:[%s370_s28] sm:$0x7]  ;;  %v454_v10 = vand.u32 4294901760, %v453_v7  ;;  %v464_v11 = vand.u32 4294901760, %v463_v8  ;;  %v5167_v46 = vld [vmem:[%s8319_s7 + $0x50] sm:$0xff]  ;;  %v5168_v47 = vld [vmem:[%s8319_s7 + $0x58] sm:$0xff] }
  0x30   : > { %v384_v12 = vsel %vm382_vm1, %v372_v9, 0  ;;  %1306 = vperm.xlu0 %5612, %v1296_v28   ;;  %1316 = vperm.xlu1 %5613, %v1298_v29   ;;  %v5194_v54 = vld [vmem:[%s8319_s7 + $0x60] sm:$0xff]  ;;  %v5195_v55 = vld [vmem:[%s8319_s7 + $0x68] sm:$0xff]  ;;  %v5196_v61 = vld [vmem:[%s8319_s7 + $0x70] sm:$0xff]  ;;  %s5160_s23 = sld [smem:[#allocation4 + $0x2]]  ;;  %s5189_s11 = sld [smem:[#allocation4 + $0x3]] }
  0x31   : > { %v387_v13 = vand.u32 4294901760, %v384_v12  ;;  %v455_v14 = vsub.f32 %v453_v7, %v454_v10  ;;  %v465_v15 = vsub.f32 %v463_v8, %v464_v11  ;;  %v5197_v62 = vld [vmem:[%s8319_s7 + $0x78] sm:$0xff]  ;;  %s5218_s16 = sld [smem:[#allocation4 + $0x4]]  ;;  %s5247_s28 = sld [smem:[#allocation4 + $0x5]] }
  0x32   : > { %s5277_s12 = sshll.u32 %s5924_s0, 4 }
  0x33   : > { %v474_v16 = vsub.f32 %v384_v12, %v387_v13  ;;  %5329 = vmatprep.subr.mxu1 %v387_v13  ;;  %v456_v17 = vand.u32 4294901760, %v455_v14  ;;  %v466_v18 = vand.u32 4294901760, %v465_v15  ;;  %v5834_v12 = vmov 2475754826  }
  0x34   : > { %5330 = vmatpush3.msra.mxu1 %v387_v13  ;;  %1820 = vperm.xlu0 %5612, %v1814_v30   ;;  %v5835_v14 = vmov 2131351028  }
  0x35   : > { %v475_v19 = vand.u32 4294901760, %v474_v16  ;;  %5331 = vmatprep.mubr.f32.mxu1 %v456_v17  ;;  %1825 = vperm.xlu1 %5613, %v1815_v31   ;;  %v5225_v31 = vld [vmem:[%s8319_s7 + $0x90] sm:$0xff] }
  0x36   : > { %5332 = vmatmul.mubr.f32.vlgmr.msra.gmra.mrb[0].mxu1 %v466_v18  ;;  %v5837_v18 = vmov 920167782  }
  0x37   : > { %v476_v20 = vsub.f32 %v474_v16, %v475_v19  ;;  %5363 = vmatprep.mubr.msk.bf16.mxu1 %vm1329_vm2, %v5614_v24 }
  0x38   : > { %1830 = vperm.xlu0 %5612, %v1816_v32   ;;  %v5226_v32 = vld [vmem:[%s8319_s7 + $0x98] sm:$0xff] }
  0x39   : > { %v477_v21 = vand.u32 4294901760, %v476_v20  ;;  %1835 = vperm.xlu1 %5613, %v1817_v33  }
  0x3b   : > { %5334 = vmatprep.subr.mxu0 %v477_v21 }
  0x3c   : > { %5335 = vmatpush3.msra.mxu0 %v477_v21  ;;  %2339 = vperm.xlu0 %5612, %v5136_v34  }
  0x3d   : > { %5337 = vmatmul.mubr.f32.vlgmr.msra.gmra.mrb[0].mxu0 %v462_v6  ;;  %5339 = vmatprep.subr.mxu0 %v474_v16 }
  0x3e   : > { %5340 = vmatpush3.msra.mxu0 %v474_v16  ;;  %5341 = vmatprep.mubr.f32.mxu0 %v453_v7  ;;  %v5836_v16 = vmov 2102212464  }
  0x3f   : > { %5344 = vmatprep.subr.mxu0 %v387_v13  ;;  %2344 = vperm.xlu1 %5613, %v5137_v35  }
  0x40   : > { %2349 = vperm.xlu0 %5612, %v5138_v36  }
  0x43   : > { %2354 = vperm.xlu1 %5613, %v5139_v37  }
  0x44   : > { %2862 = vperm.xlu0 %5612, %v5165_v38  }
  0x45   : > { %5342 = vmatmul.mubr.f32.vlgmr.msra.gmra.mrb[0].mxu0 %v463_v8 }
  0x46   : > { %5345 = vmatpush3.msra.mxu0 %v387_v13  ;;  %5346 = vmatprep.mubr.f32.mxu0 %v454_v10  ;;  %v5223_v10 = vld [vmem:[%s8319_s7 + $0x80] sm:$0xff] }
  0x47   : > { %5349 = vmatprep.subr.mxu0 %v475_v19  ;;  %2867 = vperm.xlu1 %5613, %v5166_v39  }
  0x48   : > { %2872 = vperm.xlu0 %5612, %v5167_v46  }
  0x4b   : > { %2877 = vperm.xlu1 %5613, %v5168_v47  }
  0x4c   : > { %3381 = vperm.xlu0 %5612, %v5194_v54  }
  0x4d   : > { %5347 = vmatmul.mubr.f32.vlgmr.msra.gmra.mrb[0].mxu0 %v464_v11  ;;  %v5224_v11 = vld [vmem:[%s8319_s7 + $0x88] sm:$0xff] }
  0x4e   : > { %5350 = vmatpush3.msra.mxu0 %v475_v19  ;;  %5351 = vmatprep.mubr.f32.mxu0 %v452_v5 }
  0x4f   : > { %5354 = vmatprep.subr.mxu0 %v387_v13  ;;  %3386 = vperm.xlu1 %5613, %v5195_v55  }
  0x50   : > { %3391 = vperm.xlu0 %5612, %v5196_v61  }
  0x53   : > { %3396 = vperm.xlu1 %5613, %v5197_v62  }
  0x54   : > { %3904 = vperm.xlu0 %5612, %v5223_v10  }
  0x55   : > { %5352 = vmatmul.mubr.f32.vlgmr.msra.gmra.mrb[0].mxu0 %v462_v6 }
  0x56   : > { %5355 = vmatpush3.msra.mxu0 %v387_v13  ;;  %5356 = vmatprep.mubr.f32.mxu0 %v452_v5 }
  0x57   : > { %3909 = vperm.xlu1 %5613, %v5224_v11   ;;  %v5254_v11 = vld [vmem:[%s8319_s7 + $0xb0] sm:$0xff] }
  0x58   : > { %3914 = vperm.xlu0 %5612, %v5225_v31  }
  0x5b   : > { %3919 = vperm.xlu1 %5613, %v5226_v32  }
  0x5d   : > { %5357 = vmatmul.mubr.f32.vlgmr.msra.gmra.mrb[0].mxu0 %v462_v6  ;;  %v5833_v6 = vmov 683565275  }
 0x109   : > { %v5333_v22 = vpop.f32.mrb[0].mxu1 }
 0x10a   : > { %v458_v23 = vpop.f32.mrb[1].mxu1 }
 0x130   : > { %v5358_v40 = vpop.f32.mrb[0].mxu0 }
 0x131   : > { %v6026_v41 = vadd.f32 %v5358_v40, %v5333_v22  ;;  %v865_v42 = vpop.f32.mrb[1].mxu0 }
 0x132   : > { %v6028_v43 = vadd.f32 %v865_v42, %v458_v23 }
 0x133   : > { %v978_v44 = vand.u32 2147483647, %v6026_v41  ;;  %v981_v45 = vand.u32 2139095040, %v6026_v41  ;;  %vm980_vm1 = vcmp.lt.s32.totalorder %v6026_v41, 0 }
 0x134   : > { %v878_v48 = vand.u32 2139095040, %v6028_v43  ;;  %v875_v51 = vand.u32 2147483647, %v6028_v43 }
 0x135   : > { %v982_v49 = vshrl.u32 %v981_v45, 23  ;;  %v985_v50 = vand.u32 8388607, %v978_v44 }
 0x136   : > { %v879_v52 = vshrl.u32 %v878_v48, 23  ;;  %v6050_v59 = vand.u32 8388607, %v875_v51 }
 0x137   : > { %v5079_v53 = vadd.s32 4294967169, %v982_v49  ;;  %v986_v58 = vor.u32 8388608, %v985_v50  ;;  %v5252_v50 = vld [vmem:[%s8319_s7 + $0xa0] sm:$0xff] }
 0x138   : > { %v5075_v56 = vadd.s32 4294967169, %v879_v52  ;;  %v883_v4 = vor.u32 8388608, %v6050_v59  ;;  %4423 = vperm.xlu0 %5612, %v5252_v50  }
 0x139   : > { %v988_v57 = vadd.s32 1, %v5079_v53  ;;  %v6058_v3 = vshll.u32 %v986_v58, 8 }
 0x13a   : > { %v885_v60 = vadd.s32 1, %v5075_v56  ;;  %v5253_v56 = vld [vmem:[%s8319_s7 + $0xa8] sm:$0xff]  ;;  %v923_v10 = vshll.u32 %v883_v4, 8 }
 0x13b   : > { %vm989_vm3 = vcmp.gt.s32.totalorder %v988_v57, 0  ;;  %4428 = vperm.xlu1 %5613, %v5253_v56  }
 0x13c   : > { %v990_v63 = vsel %vm989_vm3, %v988_v57, 0  ;;  %vm886_vm4 = vcmp.gt.s32.totalorder %v885_v60, 0  ;;  %4433 = vperm.xlu0 %5612, %v5254_v11   ;;  %vm6170_vm3 = vcmp.le.f32.partialorder %v978_v44, 0.7853982 }
 0x13d   : > { %v991_v0 = vshrl.u32 %v990_v63, 5  ;;  %v992_v1 = vand.u32 31, %v990_v63  ;;  %v887_v2 = vsel %vm886_vm4, %v885_v60, 0  ;;  %vm877_vm4 = vcmp.lt.s32.totalorder %v6028_v43, 0 }
 0x13e   : > { %v6062_v8 = vshrl.u32 %v887_v2, 5  ;;  %v6064_v9 = vand.u32 31, %v887_v2 }
 0x13f   : > { %v993_v5 = vsub.s32 32, %v992_v1  ;;  %v995_v7 = vshll.u32 %v5833_v6, %v992_v1  ;;  %v998_v13 = vshll.u32 %v5834_v12, %v992_v1  ;;  %v1001_v15 = vshll.u32 %v5835_v14, %v992_v1 }
 0x140   : > { %v1004_v17 = vshll.u32 %v5836_v16, %v992_v1  ;;  %v1007_v19 = vshll.u32 %v5837_v18, %v992_v1  ;;  %vm1010_vm5 = vcmp.lt.s32.totalorder %v991_v0, 1  ;;  %vm1011_vm6 = vcmp.lt.s32.totalorder %v991_v0, 2 }
 0x141   : > { %v996_v20 = vshrl.u32 %v5834_v12, %v993_v5  ;;  %v999_v21 = vshrl.u32 %v5835_v14, %v993_v5  ;;  %v1002_v22 = vshrl.u32 %v5836_v16, %v993_v5  ;;  %v994_v23 = vshrl.u32 %v5833_v6, %v993_v5 }
 0x142   : > { %v1005_v24 = vshrl.u32 %v5837_v18, %v993_v5  ;;  %v1008_v26 = vshrl.u32 %v5838_v25, %v993_v5  ;;  %v890_v30 = vsub.s32 32, %v6064_v9  ;;  %vm1012_vm7 = vcmp.lt.s32.totalorder %v991_v0, 3 }
 0x143   : > { %v997_v27 = vor.u32 %v996_v20, %v995_v7  ;;  %v1000_v28 = vor.u32 %v999_v21, %v998_v13  ;;  %v1003_v29 = vor.u32 %v1002_v22, %v1001_v15  ;;  %vm1013_vm8 = vcmp.lt.s32.totalorder %v991_v0, 4  ;;  %v5255_v20 = vld [vmem:[%s8319_s7 + $0xb8] sm:$0xff] }
 0x144   : > { %v1006_v33 = vor.u32 %v1005_v24, %v1004_v17  ;;  %v1009_v34 = vor.u32 %v1008_v26, %v1007_v19  ;;  %v892_v45 = vshll.u32 %v5833_v6, %v6064_v9  ;;  %v893_v48 = vshrl.u32 %v5834_v12, %v890_v30  ;;  %v4934_v26 = vld [vmem:[#allocation3] sm:$0x1]  ;;  %4438 = vperm.xlu1 %5613, %v5255_v20  }
 0x145   : > { %v1014_v35 = vsel %vm1010_vm5, %v994_v23, %v997_v27  ;;  %v1015_v36 = vsel %vm1013_vm8, %v1003_v29, 2102212464  ;;  %v1018_v37 = vsel %vm1010_vm5, %v997_v27, %v1000_v28  ;;  %v1022_v38 = vsel %vm1010_vm5, %v1000_v28, %v1003_v29  ;;  %4937 = vperm.xlu0 %5612, %v4934_v26  }
 0x146   : > { %v1016_v39 = vsel %vm1012_vm7, %v1000_v28, %v1015_v36  ;;  %v1019_v40 = vsel %vm1013_vm8, %v1006_v33, 920167782  ;;  %v1023_v42 = vsel %vm1013_vm8, %v1009_v34, 1326507024  ;;  %v895_v49 = vshll.u32 %v5834_v12, %v6064_v9 }
 0x147   : > { %v1020_v46 = vsel %vm1012_vm7, %v1003_v29, %v1019_v40  ;;  %v1024_v47 = vsel %vm1012_vm7, %v1006_v33, %v1023_v42  ;;  %v1017_v52 = vsel %vm1011_vm6, %v1014_v35, %v1016_v39  ;;  %v896_v55 = vshrl.u32 %v5835_v14, %v890_v30 }
 0x148   : > { %v1021_v53 = vsel %vm1011_vm6, %v1018_v37, %v1020_v46  ;;  %v1025_v54 = vsel %vm1011_vm6, %v1022_v38, %v1024_v47  ;;  %v894_v62 = vor.u32 %v893_v48, %v892_v45  ;;  %v898_v0 = vshll.u32 %v5835_v14, %v6064_v9 }
 0x149   : > { %v6108_v57 = vmul.u32.u64.low %v6058_v3, %v1025_v54  ;;  %v6109_v58 = vmul.u32.u64.high %v6058_v3, %v1025_v54, %v6108_v57  ;;  %v6112_v60 = vmul.u32.u64.low %v6058_v3, %v1021_v53  ;;  %v6113_v61 = vmul.u32.u64.high %v6058_v3, %v1021_v53, %v6112_v60 }
 0x14a   : > { %v897_v63 = vor.u32 %v896_v55, %v895_v49  ;;  %v899_v1 = vshrl.u32 %v5836_v16, %v890_v30  ;;  %v901_v2 = vshll.u32 %v5836_v16, %v6064_v9  ;;  %v902_v5 = vshrl.u32 %v5837_v18, %v890_v30 }
 0x14b   : > { %v905_v7 = vshrl.u32 %v5838_v25, %v890_v30  ;;  %v1033_v13 = vmul.u32 %v6058_v3, %v1017_v52  ;;  %v891_v15 = vshrl.u32 %v5833_v6, %v890_v30  ;;  %v904_v19 = vshll.u32 %v5837_v18, %v6064_v9 }
 0x14c   : > { %v900_v17 = vor.u32 %v899_v1, %v898_v0  ;;  %vm1035_vm9 = vc.u32 %v6109_v58, %v6112_v60  ;;  %v1036_v59 = vadd.s32 1, %v6113_v61  ;;  %v903_v4 = vor.u32 %v902_v5, %v901_v2 }
 0x14d   : > { %vm907_vm10 = vcmp.lt.s32.totalorder %v6062_v8, 1  ;;  %v906_v21 = vor.u32 %v905_v7, %v904_v19  ;;  %vm909_vm11 = vcmp.lt.s32.totalorder %v6062_v8, 3  ;;  %vm910_vm12 = vcmp.lt.s32.totalorder %v6062_v8, 4 }
 0x14e   : > { %v915_v3 = vsel %vm907_vm10, %v894_v62, %v897_v63  ;;  %v1037_v9 = vsel %vm1035_vm9, %v1036_v59, %v6113_v61  ;;  %v912_v22 = vsel %vm910_vm12, %v900_v17, 2102212464  ;;  %v916_v23 = vsel %vm910_vm12, %v903_v4, 920167782 }
 0x14f   : > { %v919_v24 = vsel %vm907_vm10, %v897_v63, %v900_v17  ;;  %v1038_v27 = vadd.s32 %v1037_v9, %v1033_v13  ;;  %vm908_vm13 = vcmp.lt.s32.totalorder %v6062_v8, 2  ;;  %v917_v28 = vsel %vm909_vm11, %v900_v17, %v916_v23 }
 0x150   : > { %v920_v29 = vsel %vm910_vm12, %v906_v21, 1326507024  ;;  %v911_v30 = vsel %vm907_vm10, %v891_v15, %v894_v62  ;;  %v913_v31 = vsel %vm909_vm11, %v897_v63, %v912_v22  ;;  %v918_v32 = vsel %vm908_vm13, %v915_v3, %v917_v28 }
 0x151   : > { %v921_v33 = vsel %vm909_vm11, %v903_v4, %v920_v29  ;;  %v1039_v34 = vadd.s32 536870912, %v1038_v27  ;;  %v6155_v36 = vmul.u32.u64.low %v923_v10, %v918_v32  ;;  %v6156_v37 = vmul.u32.u64.high %v923_v10, %v918_v32, %v6155_v36 }
 0x152   : > { %v922_v35 = vsel %vm908_vm13, %v919_v24, %v921_v33  ;;  %v914_v42 = vsel %vm908_vm13, %v911_v30, %v913_v31  ;;  %v1034_v0 = vadd.s32 %v6112_v60, %v6109_v58  ;;  %vm876_vm5 = vcmp.le.f32.partialorder %v875_v51, 0.7853982 }
 0x153   : > { %v6158_v38 = vmul.u32.u64.low %v923_v10, %v922_v35  ;;  %v6159_v39 = vmul.u32.u64.high %v923_v10, %v922_v35, %v6158_v38  ;;  %v1040_v40 = vshrl.u32 %v1039_v34, 30  ;;  %v933_v46 = vadd.s32 1, %v6156_v37 }
 0x154   : > { %v930_v47 = vmul.u32 %v923_v10, %v914_v42  ;;  %vm1070_vm10 = vweird.f32 %v6026_v41 }
 0x155   : > { %v1041_v45 = vshll.u32 %v1040_v40, 30  ;;  %vm932_vm14 = vc.u32 %v6159_v39, %v6155_v36  ;;  %v931_v3 = vadd.s32 %v6155_v36, %v6159_v39  ;;  %v1064_v33 = vsub.s32 4, %v1040_v40 }
 0x156   : > { %v934_v8 = vsel %vm932_vm14, %v933_v46, %v6156_v37 }
 0x157   : > { %v1042_v48 = vsub.s32 %v1038_v27, %v1041_v45  ;;  %v935_v49 = vadd.s32 %v934_v8, %v930_v47  ;;  %v1065_v38 = vsel %vm980_vm1, %v1064_v33, %v1040_v40 }
 0x158   : > { %v1067_v45 = vsel %vm6170_vm3, 0, %v1065_v38 }
 0x159   : > { %v1044_v50 = vsub.s32 0, %v1042_v48  ;;  %v936_v52 = vadd.s32 536870912, %v935_v49  ;;  %v1278_v8 = vadd.s32 3, %v1067_v45  ;;  %v1071_v40 = vand.u32 3, %v1067_v45 }
 0x15b   : > { %v5080_v53 = vmin.u32 %v1044_v50, %v1042_v48  ;;  %v937_v54 = vshrl.u32 %v936_v52, 30  ;;  %vm1073_vm6 = vcmp.eq.s32.totalorder %v1071_v40, 0  ;;  %vm1076_vm7 = vcmp.eq.s32.totalorder %v1071_v40, 2 }
 0x15c   : > { %vm1072_vm11 = vcmp.lt.s32.totalorder %v1071_v40, 2 }
 0x15d   : > { %v1046_v55 = vclz %v5080_v53  ;;  %v938_v56 = vshll.u32 %v937_v54, 30  ;;  %v961_v37 = vsub.s32 4, %v937_v54 }
 0x15f   : > { %v5081_v57 = vadd.s32 4294967294, %v1046_v55  ;;  %v939_v61 = vsub.s32 %v935_v49, %v938_v56  ;;  %v962_v42 = vsel %vm877_vm4, %v961_v37, %v937_v54  ;;  %v1279_v55 = vand.u32 3, %v1278_v8 }
 0x161   : > { %vm5082_vm15 = vcmp.lt.s32.totalorder %v5081_v57, 0  ;;  %v941_v63 = vsub.s32 0, %v939_v61  ;;  %vm1281_vm8 = vcmp.eq.s32.totalorder %v1279_v55, 0  ;;  %vm1284_vm9 = vcmp.eq.s32.totalorder %v1279_v55, 2 }
 0x162   : > { %v1049_v62 = vsel %vm5082_vm15, 0, %v5081_v57  ;;  %vm1280_vm13 = vcmp.lt.s32.totalorder %v1279_v55, 2 }
 0x163   : > { %v1050_v1 = vsub.s32 32, %v1049_v62  ;;  %v1054_v2 = vsub.s32 4294967266, %v1049_v62  ;;  %v5076_v5 = vmin.u32 %v941_v63, %v939_v61  ;;  %v1051_v7 = vshll.u32 %v1042_v48, %v1049_v62 }
 0x164   : > { %v964_v48 = vsel %vm876_vm5, 0, %v962_v42 }
 0x165   : > { %v1052_v10 = vshrl.u32 %v1034_v0, %v1050_v1  ;;  %v1055_v11 = vadd.s32 127, %v1054_v2  ;;  %v943_v13 = vclz %v5076_v5  ;;  %v1174_v53 = vadd.s32 3, %v964_v48 }
 0x166   : > { %v968_v56 = vand.u32 3, %v964_v48 }
 0x167   : > { %v1053_v15 = vor.u32 %v1052_v10, %v1051_v7  ;;  %v1056_v17 = vshll.u32 %v1055_v11, 23  ;;  %v5077_v19 = vadd.s32 4294967294, %v943_v13  ;;  %v1175_v57 = vand.u32 3, %v1174_v53 }
 0x168   : > { %vm969_vm12 = vcmp.lt.s32.totalorder %v968_v56, 2  ;;  %vm970_vm14 = vcmp.eq.s32.totalorder %v968_v56, 0  ;;  %vm973_vm15 = vcmp.eq.s32.totalorder %v968_v56, 2 }
 0x169   : > { %v1057_v20 = vor.u32 4788187, %v1056_v17  ;;  %vm5078_vm0 = vcmp.lt.s32.totalorder %v5077_v19, 0  ;;  %v1060_v4 = vcvt.s32.f32 %v1053_v15 }
 0x16a   : > { %v946_v21 = vsel %vm5078_vm0, 0, %v5077_v19  ;;  %vm1180_vm0 = vcmp.eq.s32.totalorder %v1175_v57, 2 }
 0x16b   : > { %v1058_v59 = vand.u32 2147483647, %v1057_v20  ;;  %v947_v9 = vsub.s32 32, %v946_v21  ;;  %v951_v22 = vsub.s32 4294967266, %v946_v21  ;;  %v948_v60 = vshll.u32 %v939_v61, %v946_v21 }
 0x16d   : > { %v1061_v58 = vmul.f32 %v1060_v4, %v1058_v59  ;;  %v949_v23 = vshrl.u32 %v931_v3, %v947_v9  ;;  %v952_v24 = vadd.s32 127, %v951_v22  ;;  %v5615_v22 = vld [vmem:[%s8316_s4 + $0x8] sm:$0xff]  }
 0x16f   : > { %v1062_v26 = vxor.u32 2147483648, %v1061_v58  ;;  %v950_v27 = vor.u32 %v949_v23, %v948_v60  ;;  %v953_v28 = vshll.u32 %v952_v24, 23  ;;  %v1386_v23 = vstv %s1385_s9  ;;  %s8270_s9 = scalar_lea.hbm %s8322_s10, %s5277_s12 }
 0x171   : > { %v1063_v30 = vsel %vm980_vm1, %v1062_v26, %v1061_v58  ;;  %v954_v32 = vor.u32 4788187, %v953_v28  ;;  %v957_v35 = vcvt.s32.f32 %v950_v27  ;;  %vm1177_vm1 = vcmp.eq.s32.totalorder %v1175_v57, 0  ;;  %v1302_v58 = vpop.permute.xlu0 %1301 }
 0x172   : > { %v1066_v31 = vsel %vm6170_vm3, %v6026_v41, %v1063_v30  ;;  %vm1176_vm3 = vcmp.lt.s32.totalorder %v1175_v57, 2 }
 0x173   : > { %5628 = vcosq.f32 %v1066_v31  ;;  %v955_v34 = vand.u32 2147483647, %v954_v32 }
 0x174   : > { %5630 = vsinq.f32 %v1066_v31 }
 0x175   : > { %v958_v36 = vmul.f32 %v957_v35, %v955_v34  ;;  %v1307_v29 = vpop.permute.xlu0 %1306 }
 0x177   : > { %v959_v39 = vxor.u32 2147483648, %v958_v36 }
 0x179   : > { %v960_v44 = vsel %vm877_vm4, %v959_v39, %v958_v36  ;;  %vm967_vm4 = vweird.f32 %v6028_v43 }
 0x17a   : > { %v963_v46 = vsel %vm876_vm5, %v6028_v43, %v960_v44  ;;  %v1312_v43 = vpop.permute.xlu1 %1311 }
 0x17b   : > { %5632 = vcosq.f32 %v963_v46 }
 0x17c   : > { %5634 = vsinq.f32 %v963_v46 }
 0x17d   : > { %v5629_v47 = vpop.eup %5628 }
 0x17e   : > { %v5631_v49 = vpop.eup %5630  ;;  %v1077_v52 = vxor.u32 2147483648, %v5629_v47  ;;  %v1317_v26 = vpop.permute.xlu1 %1316 }
 0x17f   : > { %v1074_v50 = vxor.u32 2147483648, %v5631_v49 }
 0x180   : > { %v1078_v54 = vsel %vm1076_vm7, %v1077_v52, %v5631_v49  ;;  %v1286_v63 = vsel %vm1284_vm9, %v1077_v52, %v5631_v49 }
 0x181   : > { %v1075_v51 = vsel %vm1073_vm6, %v5629_v47, %v1074_v50  ;;  %v1283_v62 = vsel %vm1281_vm8, %v5629_v47, %v1074_v50 }
 0x182   : > { %v1079_v2 = vsel %vm1072_vm11, %v1075_v51, %v1078_v54  ;;  %v1287_v11 = vsel %vm1280_vm13, %v1283_v62, %v1286_v63  ;;  %v5616_v51 = vld [vmem:[%s8318_s6] sm:$0xff]  }
 0x183   : > { %v1080_v15 = vsel %vm1070_vm10, nan, %v1079_v2  ;;  %v1288_v21 = vsel %vm1070_vm10, nan, %v1287_v11 }
 0x185   : > { %v5633_v61 = vpop.eup %5632 }
 0x186   : > { %v5635_v0 = vpop.eup %5634  ;;  %v974_v1 = vxor.u32 2147483648, %v5633_v61 }
 0x187   : > { %v971_v5 = vxor.u32 2147483648, %v5635_v0 }
 0x188   : > { %v975_v7 = vsel %vm973_vm15, %v974_v1, %v5635_v0  ;;  %v1182_v10 = vsel %vm1180_vm0, %v974_v1, %v5635_v0 }
 0x189   : > { %v972_v13 = vsel %vm970_vm14, %v5633_v61, %v971_v5  ;;  %v1179_v17 = vsel %vm1177_vm1, %v5633_v61, %v971_v5 }
 0x18a   : > { %v976_v19 = vsel %vm969_vm12, %v972_v13, %v975_v7  ;;  %v1183_v20 = vsel %vm1176_vm3, %v1179_v17, %v1182_v10 }
 0x18b   : > { %v977_v59 = vsel %vm967_vm4, nan, %v976_v19  ;;  %v1184_v4 = vsel %vm967_vm4, nan, %v1183_v20 }
 0x18c   : > { %v1293_v3 = vpack.c.bf16 %v1080_v15, %v977_v59  ;;  %v1294_v9 = vpack.c.bf16 %v1288_v21, %v1184_v4 }
 0x18e   : > { %5359 = vmatprep.subr.bf16.mxu1 %v1293_v3 }
 0x18f   : > { %5360 = vmatpush3.bf16.msra.mxu1 %v1293_v3 }
 0x190   : > { %5361 = vmatprep.subr.bf16.mxu1 %v1294_v9 }
 0x193   : > { %5362 = vmatpush3.bf16.msra.mxu1 %v1294_v9 }
 0x196   : > { %5364 = vmatmul.mubr.msk.bf16.vlgmr.msra.gmra.mrb[4].mxu1 %vm1329_vm2, %v5615_v22 }
 0x197   : > { %5371 = vmatprep.mubr.msk.bf16.mxu1 %vm1329_vm2, %v5616_v51 }
 0x269   : > { %v5365_v60 = vpop.f32.mrb[4].mxu1 }
 0x26a   : > { %v1379_v24 = vadd.f32 %v5365_v60, %v1312_v43  ;;  %v1370_v41 = vpop.f32.mrb[5].mxu1 }
 0x26b   : > { %v1371_v27 = vadd.f32 %v1370_v41, %v1302_v58  ;;  %v5366_v28 = vpop.f32.mrb[6].mxu1 }
 0x26c   : > { %v6194_v30 = vmul.f32 %v1386_v23, %v1379_v24  ;;  %v1382_v31 = vadd.f32 %v5366_v28, %v1317_v26  ;;  %v1373_v32 = vpop.f32.mrb[7].mxu1 }
 0x26d   : > { %v6196_v33 = vmul.f32 %v1386_v23, %v1371_v27  ;;  %v1374_v34 = vadd.f32 %v1373_v32, %v1307_v29 }
 0x26e   : > { %v1599_v35 = vand.u32 2147483647, %v6194_v30  ;;  %v1602_v36 = vand.u32 2139095040, %v6194_v30  ;;  %v6200_v37 = vmul.f32 %v1386_v23, %v1382_v31 }
 0x26f   : > { %v1391_v38 = vand.u32 2147483647, %v6196_v33  ;;  %v1394_v39 = vand.u32 2139095040, %v6196_v33  ;;  %v6204_v44 = vmul.f32 %v1386_v23, %v1374_v34 }
 0x270   : > { %v1603_v42 = vshrl.u32 %v1602_v36, 23  ;;  %v1606_v45 = vand.u32 8388607, %v1599_v35  ;;  %v1703_v46 = vand.u32 2147483647, %v6200_v37  ;;  %v1706_v8 = vand.u32 2139095040, %v6200_v37 }
 0x271   : > { %v1395_v47 = vshrl.u32 %v1394_v39, 23  ;;  %v1398_v48 = vand.u32 8388607, %v1391_v38  ;;  %v1498_v53 = vand.u32 2139095040, %v6204_v44 }
 0x272   : > { %v5103_v49 = vadd.s32 4294967169, %v1603_v42  ;;  %v1607_v40 = vor.u32 8388608, %v1606_v45  ;;  %v1707_v52 = vshrl.u32 %v1706_v8, 23  ;;  %v6215_v56 = vand.u32 8388607, %v1703_v46 }
 0x273   : > { %v5095_v50 = vadd.s32 4294967169, %v1395_v47  ;;  %v1399_v54 = vor.u32 8388608, %v1398_v48  ;;  %v1499_v62 = vshrl.u32 %v1498_v53, 23 }
 0x274   : > { %v1609_v55 = vadd.s32 1, %v5103_v49  ;;  %v5107_v61 = vadd.s32 4294967169, %v1707_v52  ;;  %v6221_v0 = vshll.u32 %v1607_v40, 8  ;;  %v1711_v10 = vor.u32 8388608, %v6215_v56 }
 0x275   : > { %v1401_v57 = vadd.s32 1, %v5095_v50  ;;  %v5099_v1 = vadd.s32 4294967169, %v1499_v62  ;;  %v6226_v15 = vshll.u32 %v1399_v54, 8 }
 0x276   : > { %vm1610_vm5 = vcmp.gt.s32.totalorder %v1609_v55, 0  ;;  %v6228_v17 = vadd.s32 1, %v5107_v61 }
 0x277   : > { %v1611_v63 = vsel %vm1610_vm5, %v1609_v55, 0  ;;  %vm1402_vm6 = vcmp.gt.s32.totalorder %v1401_v57, 0  ;;  %v6232_v4 = vadd.s32 1, %v5099_v1 }
 0x278   : > { %v1612_v2 = vshrl.u32 %v1611_v63, 5  ;;  %v1613_v5 = vand.u32 31, %v1611_v63  ;;  %v1403_v7 = vsel %vm1402_vm6, %v1401_v57, 0  ;;  %vm1714_vm11 = vcmp.gt.s32.totalorder %v6228_v17, 0 }
 0x279   : > { %v6224_v11 = vshrl.u32 %v1403_v7, 5  ;;  %v1405_v13 = vand.u32 31, %v1403_v7  ;;  %vm1506_vm1 = vcmp.gt.s32.totalorder %v6232_v4, 0 }
 0x27a   : > { %v1614_v19 = vsub.s32 32, %v1613_v5  ;;  %v1616_v20 = vshll.u32 %v5833_v6, %v1613_v5  ;;  %v1619_v59 = vshll.u32 %v5834_v12, %v1613_v5  ;;  %v1622_v21 = vshll.u32 %v5835_v14, %v1613_v5 }
 0x27b   : > { %v1625_v3 = vshll.u32 %v5836_v16, %v1613_v5  ;;  %v1628_v9 = vshll.u32 %v5837_v18, %v1613_v5  ;;  %vm1631_vm7 = vcmp.lt.s32.totalorder %v1612_v2, 1  ;;  %vm1632_vm8 = vcmp.lt.s32.totalorder %v1612_v2, 2 }
 0x27c   : > { %v1617_v22 = vshrl.u32 %v5834_v12, %v1614_v19  ;;  %v1620_v43 = vshrl.u32 %v5835_v14, %v1614_v19  ;;  %v1623_v58 = vshrl.u32 %v5836_v16, %v1614_v19  ;;  %v1615_v60 = vshrl.u32 %v5833_v6, %v1614_v19 }
 0x27d   : > { %v1626_v23 = vshrl.u32 %v5837_v18, %v1614_v19  ;;  %v1629_v24 = vshrl.u32 %v5838_v25, %v1614_v19  ;;  %vm1633_vm9 = vcmp.lt.s32.totalorder %v1612_v2, 3  ;;  %v1406_v28 = vsub.s32 32, %v1405_v13 }
 0x27e   : > { %v1618_v41 = vor.u32 %v1617_v22, %v1616_v20  ;;  %v1621_v26 = vor.u32 %v1620_v43, %v1619_v59  ;;  %v1624_v27 = vor.u32 %v1623_v58, %v1622_v21  ;;  %vm1634_vm10 = vcmp.lt.s32.totalorder %v1612_v2, 4 }
 0x27f   : > { %v1627_v29 = vor.u32 %v1626_v23, %v1625_v3  ;;  %v1630_v31 = vor.u32 %v1629_v24, %v1628_v9  ;;  %v1408_v32 = vshll.u32 %v5833_v6, %v1405_v13  ;;  %v1411_v8 = vshll.u32 %v5834_v12, %v1405_v13 }
 0x280   : > { %v1635_v34 = vsel %vm1631_vm7, %v1615_v60, %v1618_v41  ;;  %v1636_v36 = vsel %vm1634_vm10, %v1624_v27, 2102212464  ;;  %v1639_v39 = vsel %vm1631_vm7, %v1618_v41, %v1621_v26  ;;  %v1643_v42 = vsel %vm1631_vm7, %v1621_v26, %v1624_v27 }
 0x281   : > { %v1637_v45 = vsel %vm1633_vm9, %v1621_v26, %v1636_v36  ;;  %v1640_v47 = vsel %vm1634_vm10, %v1627_v29, 920167782  ;;  %v1644_v48 = vsel %vm1634_vm10, %v1630_v31, 1326507024  ;;  %v1407_v50 = vshrl.u32 %v5833_v6, %v1406_v28 }
 0x282   : > { %v1641_v49 = vsel %vm1633_vm9, %v1624_v27, %v1640_v47  ;;  %v1645_v40 = vsel %vm1633_vm9, %v1627_v29, %v1644_v48  ;;  %v1409_v52 = vshrl.u32 %v5834_v12, %v1406_v28  ;;  %v1638_v53 = vsel %vm1632_vm8, %v1635_v34, %v1637_v45 }
 0x283   : > { %v1642_v55 = vsel %vm1632_vm8, %v1639_v39, %v1641_v49  ;;  %v1646_v51 = vsel %vm1632_vm8, %v1643_v42, %v1645_v40  ;;  %v1412_v54 = vshrl.u32 %v5835_v14, %v1406_v28  ;;  %v1414_v7 = vshll.u32 %v5835_v14, %v1405_v13 }
 0x284   : > { %v6259_v57 = vmul.u32.u64.low %v6221_v0, %v1646_v51  ;;  %v6260_v61 = vmul.u32.u64.high %v6221_v0, %v1646_v51, %v6259_v57  ;;  %v6263_v62 = vmul.u32.u64.low %v6221_v0, %v1642_v55  ;;  %v6264_v63 = vmul.u32.u64.high %v6221_v0, %v1642_v55, %v6263_v62 }
 0x285   : > { %v1410_v1 = vor.u32 %v1409_v52, %v1408_v32  ;;  %v1413_v5 = vor.u32 %v1412_v54, %v1411_v8  ;;  %v1415_v19 = vshrl.u32 %v5836_v16, %v1406_v28  ;;  %v1654_v2 = vmul.u32 %v6221_v0, %v1638_v53 }
 0x286   : > { %v1417_v20 = vshll.u32 %v5836_v16, %v1405_v13  ;;  %v1418_v59 = vshrl.u32 %v5837_v18, %v1406_v28  ;;  %v1421_v21 = vshrl.u32 %v5838_v25, %v1406_v28  ;;  %v1420_v9 = vshll.u32 %v5837_v18, %v1405_v13 }
 0x287   : > { %v1416_v3 = vor.u32 %v1415_v19, %v1414_v7  ;;  %vm1423_vm12 = vcmp.lt.s32.totalorder %v6224_v11, 1  ;;  %vm1424_vm13 = vcmp.lt.s32.totalorder %v6224_v11, 2  ;;  %vm1656_vm14 = vc.u32 %v6260_v61, %v6263_v62 }
 0x288   : > { %v1657_v22 = vadd.s32 1, %v6264_v63  ;;  %v1419_v43 = vor.u32 %v1418_v59, %v1417_v20  ;;  %vm1425_vm15 = vcmp.lt.s32.totalorder %v6224_v11, 3  ;;  %v1422_v0 = vor.u32 %v1421_v21, %v1420_v9 }
 0x289   : > { %vm1426_vm0 = vcmp.lt.s32.totalorder %v6224_v11, 4  ;;  %v1427_v58 = vsel %vm1423_vm12, %v1407_v50, %v1410_v1  ;;  %v1431_v60 = vsel %vm1423_vm12, %v1410_v1, %v1413_v5  ;;  %v1435_v41 = vsel %vm1423_vm12, %v1413_v5, %v1416_v3 }
 0x28a   : > { %v1658_v23 = vsel %vm1656_vm14, %v1657_v22, %v6264_v63  ;;  %v1428_v13 = vsel %vm1426_vm0, %v1416_v3, 2102212464  ;;  %v1432_v24 = vsel %vm1426_vm0, %v1419_v43, 920167782  ;;  %v1436_v29 = vsel %vm1426_vm0, %v1422_v0, 1326507024 }
 0x28b   : > { %v1659_v26 = vadd.s32 %v1658_v23, %v1654_v2  ;;  %v1429_v27 = vsel %vm1425_vm15, %v1413_v5, %v1428_v13  ;;  %v1433_v28 = vsel %vm1425_vm15, %v1416_v3, %v1432_v24  ;;  %v1437_v34 = vsel %vm1425_vm15, %v1419_v43, %v1436_v29 }
 0x28c   : > { %v1430_v31 = vsel %vm1424_vm13, %v1427_v58, %v1429_v27  ;;  %v1434_v32 = vsel %vm1424_vm13, %v1431_v60, %v1433_v28  ;;  %v1715_v36 = vsel %vm1714_vm11, %v6228_v17, 0  ;;  %v1438_v42 = vsel %vm1424_vm13, %v1435_v41, %v1437_v34 }
 0x28d   : > { %v1660_v39 = vadd.s32 536870912, %v1659_v26  ;;  %v6292_v45 = vmul.u32.u64.low %v6226_v15, %v1434_v32  ;;  %v6293_v47 = vmul.u32.u64.high %v6226_v15, %v1434_v32, %v6292_v45  ;;  %v1716_v49 = vshrl.u32 %v1715_v36, 5 }
 0x28e   : > { %v6297_v48 = vmul.u32.u64.low %v6226_v15, %v1438_v42  ;;  %v6298_v8 = vmul.u32.u64.high %v6226_v15, %v1438_v42, %v6297_v48  ;;  %v1717_v50 = vand.u32 31, %v1715_v36  ;;  %v1446_v52 = vmul.u32 %v6226_v15, %v1430_v31 }
 0x28f   : > { %v6300_v40 = vshrl.u32 %v1660_v39, 30  ;;  %v6305_v17 = vshll.u32 %v1711_v10, 8  ;;  %v1449_v53 = vadd.s32 1, %v6293_v47  ;;  %vm1735_vm4 = vcmp.lt.s32.totalorder %v1716_v49, 1 }
 0x290   : > { %v1718_v55 = vsub.s32 32, %v1717_v50  ;;  %vm1448_vm3 = vc.u32 %v6298_v8, %v6292_v45  ;;  %v1720_v51 = vshll.u32 %v5833_v6, %v1717_v50  ;;  %v1723_v54 = vshll.u32 %v5834_v12, %v1717_v50 }
 0x291   : > { %v1662_v11 = vshll.u32 %v6300_v40, 30  ;;  %v1450_v56 = vsel %vm1448_vm3, %v1449_v53, %v6293_v47  ;;  %v1726_v57 = vshll.u32 %v5835_v14, %v1717_v50  ;;  %v1729_v7 = vshll.u32 %v5836_v16, %v1717_v50 }
 0x292   : > { %v1721_v10 = vshrl.u32 %v5834_v12, %v1718_v55  ;;  %v1451_v63 = vadd.s32 %v1450_v56, %v1446_v52  ;;  %v1724_v1 = vshrl.u32 %v5835_v14, %v1718_v55  ;;  %v1727_v5 = vshrl.u32 %v5836_v16, %v1718_v55 }
 0x293   : > { %v6314_v15 = vsub.s32 %v1659_v26, %v1662_v11  ;;  %v1730_v20 = vshrl.u32 %v5837_v18, %v1718_v55  ;;  %v1732_v59 = vshll.u32 %v5837_v18, %v1717_v50  ;;  %v1733_v22 = vshrl.u32 %v5838_v25, %v1718_v55 }
 0x294   : > { %v1722_v2 = vor.u32 %v1721_v10, %v1720_v51  ;;  %v1452_v21 = vadd.s32 536870912, %v1451_v63  ;;  %v1725_v3 = vor.u32 %v1724_v1, %v1723_v54  ;;  %v1728_v9 = vor.u32 %v1727_v5, %v1726_v57 }
 0x295   : > { %v1665_v19 = vsub.s32 0, %v6314_v15  ;;  %v1719_v43 = vshrl.u32 %v5833_v6, %v1718_v55  ;;  %v1731_v0 = vor.u32 %v1730_v20, %v1729_v7  ;;  %vm1736_vm5 = vcmp.lt.s32.totalorder %v1716_v49, 2 }
 0x296   : > { %vm1738_vm6 = vcmp.lt.s32.totalorder %v1716_v49, 4  ;;  %v6327_v58 = vshrl.u32 %v1452_v21, 30  ;;  %v1734_v60 = vor.u32 %v1733_v22, %v1732_v59  ;;  %v1743_v13 = vsel %vm1735_vm4, %v1722_v2, %v1725_v3 }
 0x297   : > { %v1740_v23 = vsel %vm1738_vm6, %v1728_v9, 2102212464  ;;  %v5104_v24 = vmin.u32 %v1665_v19, %v6314_v15  ;;  %vm1737_vm7 = vcmp.lt.s32.totalorder %v1716_v49, 3  ;;  %v1744_v41 = vsel %vm1738_vm6, %v1731_v0, 920167782 }
 0x298   : > { %v1747_v26 = vsel %vm1735_vm4, %v1725_v3, %v1728_v9  ;;  %v1454_v27 = vshll.u32 %v6327_v58, 30  ;;  %v1739_v28 = vsel %vm1735_vm4, %v1719_v43, %v1722_v2  ;;  %v1745_v29 = vsel %vm1737_vm7, %v1728_v9, %v1744_v41 }
 0x299   : > { %v1748_v31 = vsel %vm1738_vm6, %v1734_v60, 1326507024  ;;  %v1741_v32 = vsel %vm1737_vm7, %v1725_v3, %v1740_v23  ;;  %v1746_v34 = vsel %vm1736_vm5, %v1743_v13, %v1745_v29  ;;  %v1507_v39 = vsel %vm1506_vm1, %v6232_v4, 0 }
 0x29a   : > { %v1749_v36 = vsel %vm1737_vm7, %v1731_v0, %v1748_v31  ;;  %v6338_v42 = vsub.s32 %v1451_v63, %v1454_v27  ;;  %v6342_v48 = vmul.u32.u64.low %v6305_v17, %v1746_v34  ;;  %v6343_v50 = vmul.u32.u64.high %v6305_v17, %v1746_v34, %v6342_v48 }
 0x29b   : > { %v1750_v47 = vsel %vm1736_vm5, %v1747_v26, %v1749_v36  ;;  %v1742_v55 = vsel %vm1736_vm5, %v1739_v28, %v1741_v32  ;;  %v1495_v51 = vand.u32 2147483647, %v6204_v44  ;;  %v1509_v4 = vand.u32 31, %v1507_v39 }
 0x29c   : > { %v6347_v52 = vmul.u32.u64.low %v6305_v17, %v1750_v47  ;;  %v6348_v11 = vmul.u32.u64.high %v6305_v17, %v1750_v47, %v6347_v52  ;;  %v1457_v53 = vsub.s32 0, %v6338_v42  ;;  %v1667_v54 = vclz %v5104_v24 }
 0x29d   : > { %v1761_v10 = vadd.s32 1, %v6343_v50  ;;  %v1510_v57 = vsub.s32 32, %v1509_v4  ;;  %v1758_v63 = vmul.u32 %v6305_v17, %v1742_v55  ;;  %v1502_v49 = vand.u32 8388607, %v1495_v51 }
 0x29e   : > { %v5096_v56 = vmin.u32 %v1457_v53, %v6338_v42  ;;  %vm1760_vm8 = vc.u32 %v6348_v11, %v6342_v48  ;;  %v5105_v7 = vadd.s32 4294967294, %v1667_v54  ;;  %v1512_v9 = vshll.u32 %v5833_v6, %v1509_v4 }
 0x29f   : > { %v1762_v5 = vsel %vm1760_vm8, %v1761_v10, %v6343_v50  ;;  %v1513_v20 = vshrl.u32 %v5834_v12, %v1510_v57  ;;  %v1516_v59 = vshrl.u32 %v5835_v14, %v1510_v57  ;;  %v1519_v3 = vshrl.u32 %v5836_v16, %v1510_v57 }
 0x2a0   : > { %v1459_v1 = vclz %v5096_v56  ;;  %v1763_v19 = vadd.s32 %v1762_v5, %v1758_v63  ;;  %v1503_v17 = vor.u32 8388608, %v1502_v49  ;;  %v1515_v22 = vshll.u32 %v5834_v12, %v1509_v4 }
 0x2a1   : > { %v1522_v43 = vshrl.u32 %v5837_v18, %v1510_v57  ;;  %vm5106_vm9 = vcmp.lt.s32.totalorder %v5105_v7, 0  ;;  %v1508_v60 = vshrl.u32 %v1507_v39, 5  ;;  %v1518_v23 = vshll.u32 %v5835_v14, %v1509_v4 }
 0x2a2   : > { %v5097_v2 = vadd.s32 4294967294, %v1459_v1  ;;  %v1764_v21 = vadd.s32 536870912, %v1763_v19  ;;  %v1514_v13 = vor.u32 %v1513_v20, %v1512_v9  ;;  %v1517_v24 = vor.u32 %v1516_v59, %v1515_v22 }
 0x2a3   : > { %v1521_v41 = vshll.u32 %v5836_v16, %v1509_v4  ;;  %v1520_v27 = vor.u32 %v1519_v3, %v1518_v23  ;;  %v1524_v28 = vshll.u32 %v5837_v18, %v1509_v4  ;;  %v1525_v29 = vshrl.u32 %v5838_v25, %v1510_v57 }
 0x2a4   : > { %v6367_v0 = vshrl.u32 %v1764_v21, 30  ;;  %vm5098_vm10 = vcmp.lt.s32.totalorder %v5097_v2, 0  ;;  %v6377_v39 = vsel %vm5106_vm9, 0, %v5105_v7  ;;  %vm1527_vm11 = vcmp.lt.s32.totalorder %v1508_v60, 1 }
 0x2a5   : > { %v1523_v31 = vor.u32 %v1522_v43, %v1521_v41  ;;  %v1462_v32 = vsel %vm5098_vm10, 0, %v5097_v2  ;;  %v1526_v36 = vor.u32 %v1525_v29, %v1524_v28  ;;  %vm1530_vm12 = vcmp.lt.s32.totalorder %v1508_v60, 4 }
 0x2a6   : > { %v1766_v26 = vshll.u32 %v6367_v0, 30  ;;  %v1543_v47 = vshll.u32 %v1503_v17, 8  ;;  %v1511_v52 = vshrl.u32 %v5833_v6, %v1510_v57  ;;  %v1532_v53 = vsel %vm1530_vm12, %v1520_v27, 2102212464 }
 0x2a7   : > { %v1535_v55 = vsel %vm1527_vm11, %v1514_v13, %v1517_v24  ;;  %v1467_v4 = vsub.s32 4294967266, %v1462_v32  ;;  %vm1528_vm13 = vcmp.lt.s32.totalorder %v1508_v60, 2  ;;  %vm1529_vm14 = vcmp.lt.s32.totalorder %v1508_v60, 3 }
 0x2a8   : > { %v6374_v34 = vsub.s32 %v1763_v19, %v1766_v26  ;;  %v1536_v54 = vsel %vm1530_vm12, %v1523_v31, 920167782  ;;  %v1539_v63 = vsel %vm1527_vm11, %v1517_v24, %v1520_v27  ;;  %v1540_v1 = vsel %vm1530_vm12, %v1526_v36, 1326507024 }
 0x2a9   : > { %v1537_v10 = vsel %vm1529_vm14, %v1520_v27, %v1536_v54  ;;  %v1531_v5 = vsel %vm1527_vm11, %v1511_v52, %v1514_v13  ;;  %v1533_v49 = vsel %vm1529_vm14, %v1517_v24, %v1532_v53  ;;  %v1541_v19 = vsel %vm1529_vm14, %v1523_v31, %v1540_v1 }
 0x2aa   : > { %v1769_v50 = vsub.s32 0, %v6374_v34  ;;  %v1538_v7 = vsel %vm1528_vm13, %v1535_v55, %v1537_v10  ;;  %v1542_v20 = vsel %vm1528_vm13, %v1539_v63, %v1541_v19  ;;  %v1675_v17 = vsub.s32 4294967266, %v6377_v39 }
 0x2ab   : > { %v6384_v57 = vmul.u32.u64.low %v1543_v47, %v1538_v7  ;;  %v6385_v59 = vmul.u32.u64.high %v1543_v47, %v1538_v7, %v6384_v57  ;;  %v6388_v21 = vmul.u32.u64.low %v1543_v47, %v1542_v20  ;;  %v6389_v3 = vmul.u32.u64.high %v1543_v47, %v1542_v20, %v6388_v21 }
 0x2ac   : > { %v5108_v56 = vmin.u32 %v1769_v50, %v6374_v34  ;;  %v1534_v22 = vsel %vm1528_vm13, %v1531_v5, %v1533_v49  ;;  %v1468_v43 = vadd.s32 127, %v1467_v4  ;;  %v1463_v13 = vsub.s32 32, %v1462_v32 }
 0x2ad   : > { %v1553_v23 = vadd.s32 1, %v6385_v59  ;;  %v1550_v41 = vmul.u32 %v1543_v47, %v1534_v22  ;;  %vm1552_vm0 = vc.u32 %v6389_v3, %v6384_v57  ;;  %v1676_v26 = vadd.s32 127, %v1675_v17 }
 0x2ae   : > { %v1771_v2 = vclz %v5108_v56  ;;  %v1447_v29 = vadd.s32 %v6292_v45, %v6298_v8  ;;  %v1469_v31 = vshll.u32 %v1468_v43, 23  ;;  %v1671_v50 = vsub.s32 32, %v6377_v39 }
 0x2af   : > { %v1554_v28 = vsel %vm1552_vm0, %v1553_v23, %v6385_v59  ;;  %v1759_v47 = vadd.s32 %v6342_v48, %v6348_v11  ;;  %v1655_v4 = vadd.s32 %v6263_v62, %v6260_v61  ;;  %v1677_v54 = vshll.u32 %v1676_v26, 23 }
 0x2b0   : > { %v5109_v9 = vadd.s32 4294967294, %v1771_v2  ;;  %v1555_v36 = vadd.s32 %v1554_v28, %v1550_v41  ;;  %v1465_v53 = vshrl.u32 %v1447_v29, %v1463_v13  ;;  %v1464_v10 = vshll.u32 %v6338_v42, %v1462_v32 }
 0x2b1   : > { %v1470_v63 = vor.u32 4788187, %v1469_v31  ;;  %v1673_v1 = vshrl.u32 %v1655_v4, %v1671_v50  ;;  %v1672_v48 = vshll.u32 %v6314_v15, %v6377_v39  ;;  %v1678_v11 = vor.u32 4788187, %v1677_v54 }
 0x2b2   : > { %vm5110_vm15 = vcmp.lt.s32.totalorder %v5109_v9, 0  ;;  %v1556_v55 = vadd.s32 536870912, %v1555_v36  ;;  %v1466_v5 = vor.u32 %v1465_v53, %v1464_v10  ;;  %vm1393_vm3 = vcmp.lt.s32.totalorder %v6196_v33, 0 }
 0x2b3   : > { %v1774_v24 = vsel %vm5110_vm15, 0, %v5109_v9  ;;  %v1471_v61 = vand.u32 2147483647, %v1470_v63  ;;  %v1674_v20 = vor.u32 %v1673_v1, %v1672_v48  ;;  %v1679_v21 = vand.u32 2147483647, %v1678_v11 }
 0x2b4   : > { %v1779_v27 = vsub.s32 4294967266, %v1774_v24  ;;  %v1775_v60 = vsub.s32 32, %v1774_v24  ;;  %v6405_v8 = vshrl.u32 %v1556_v55, 30  ;;  %v1776_v49 = vshll.u32 %v6374_v34, %v1774_v24 }
 0x2b5   : > { %v1473_v42 = vcvt.s32.f32 %v1466_v5  ;;  %v1681_v43 = vcvt.s32.f32 %v1674_v20  ;;  %v1551_v28 = vadd.s32 %v6384_v57, %v6389_v3  ;;  %vm1705_vm4 = vcmp.lt.s32.totalorder %v6200_v37, 0 }
 0x2b6   : > { %v1780_v52 = vadd.s32 127, %v1779_v27  ;;  %v1777_v45 = vshrl.u32 %v1759_v47, %v1775_v60  ;;  %v1558_v19 = vshll.u32 %v6405_v8, 30  ;;  %vm6419_vm5 = vcmp.le.f32.partialorder %v1391_v38, 0.7853982 }
 0x2b7   : > { %v1474_v17 = vmul.f32 %v1473_v42, %v1471_v61  ;;  %v1682_v13 = vmul.f32 %v1681_v43, %v1679_v21  ;;  %vm1601_vm6 = vcmp.lt.s32.totalorder %v6194_v30, 0  ;;  %vm6433_vm7 = vcmp.le.f32.partialorder %v1703_v46, 0.7853982 }
 0x2b8   : > { %v1781_v56 = vshll.u32 %v1780_v52, 23  ;;  %v1778_v62 = vor.u32 %v1777_v45, %v1776_v49  ;;  %v1559_v2 = vsub.s32 %v1555_v36, %v1558_v19  ;;  %vm6443_vm8 = vcmp.le.f32.partialorder %v1599_v35, 0.7853982 }
 0x2b9   : > { %v1475_v24 = vxor.u32 2147483648, %v1474_v17  ;;  %v1683_v15 = vxor.u32 2147483648, %v1682_v13  ;;  %v1789_v63 = vsub.s32 4, %v6367_v0  ;;  %v1581_v5 = vsub.s32 4, %v6405_v8 }
 0x2ba   : > { %v1782_v7 = vor.u32 4788187, %v1781_v56  ;;  %v1561_v59 = vsub.s32 0, %v1559_v2  ;;  %v1785_v9 = vcvt.s32.f32 %v1778_v62  ;;  %v1477_v56 = vsub.s32 4, %v6327_v58 }
 0x2bb   : > { %v1476_v27 = vsel %vm1393_vm3, %v1475_v24, %v1474_v17  ;;  %v1684_v3 = vsel %vm1601_vm6, %v1683_v15, %v1682_v13  ;;  %v1685_v49 = vsub.s32 4, %v6300_v40  ;;  %v1790_v19 = vsel %vm1705_vm4, %v1789_v63, %v6367_v0 }
 0x2bc   : > { %v1783_v32 = vand.u32 2147483647, %v1782_v7  ;;  %v5100_v22 = vmin.u32 %v1561_v59, %v1559_v2  ;;  %v1479_v57 = vsel %vm6419_vm5, %v6196_v33, %v1476_v27  ;;  %v1687_v46 = vsel %vm6443_vm8, %v6194_v30, %v1684_v3 }
 0x2bd   : > { %5636 = vcosq.f32 %v1479_v57  ;;  %v1478_v35 = vsel %vm1393_vm3, %v1477_v56, %v6327_v58  ;;  %vm1497_vm9 = vcmp.lt.s32.totalorder %v6204_v44, 0  ;;  %v1686_v62 = vsel %vm1601_vm6, %v1685_v49, %v6300_v40  ;;  %v1826_v49 = vpop.permute.xlu1 %1825 }
 0x2be   : > { %v1786_v34 = vmul.f32 %v1785_v9, %v1783_v32  ;;  %v1563_v23 = vclz %v5100_v22  ;;  %5638 = vsinq.f32 %v1479_v57  ;;  %v1480_v11 = vsel %vm6419_vm5, 0, %v1478_v35 }
 0x2bf   : > { %v1582_v61 = vsel %vm1497_vm9, %v1581_v5, %v6405_v8  ;;  %vm1496_vm10 = vcmp.le.f32.partialorder %v1495_v51, 0.7853982  ;;  %v1792_v58 = vsel %vm6433_vm7, 0, %v1790_v19  ;;  %v1484_v42 = vadd.s32 3, %v1480_v11  ;;  %v1821_v5 = vpop.permute.xlu0 %1820 }
 0x2c0   : > { %v5101_v41 = vadd.s32 4294967294, %v1563_v23  ;;  %v1787_v26 = vxor.u32 2147483648, %v1786_v34  ;;  %v1584_v32 = vsel %vm1496_vm10, 0, %v1582_v61  ;;  %v1688_v8 = vsel %vm6443_vm8, 0, %v1686_v62 }
 0x2c1   : > { %v1796_v21 = vadd.s32 3, %v1792_v58  ;;  %v1588_v9 = vadd.s32 3, %v1584_v32  ;;  %v1692_v22 = vadd.s32 3, %v1688_v8  ;;  %v1485_v43 = vand.u32 3, %v1484_v42  ;;  %v1836_v11 = vpop.permute.xlu1 %1835 }
 0x2c2   : > { %vm5102_vm1 = vcmp.lt.s32.totalorder %v5101_v41, 0  ;;  %v1788_v36 = vsel %vm1705_vm4, %v1787_v26, %v1786_v34  ;;  %vm1483_vm6 = vweird.f32 %v6196_v33  ;;  %v1903_v35 = vstv %s1807_s29 }
 0x2c3   : > { %v1566_v39 = vsel %vm5102_vm1, 0, %v5101_v41  ;;  %v1791_v4 = vsel %vm6433_vm7, %v6200_v37, %v1788_v36  ;;  %v1797_v23 = vand.u32 3, %v1796_v21  ;;  %v1589_v15 = vand.u32 3, %v1588_v9 }
 0x2c4   : > { %v1567_v29 = vsub.s32 32, %v1566_v39  ;;  %v1571_v31 = vsub.s32 4294967266, %v1566_v39  ;;  %v1568_v50 = vshll.u32 %v1559_v2, %v1566_v39  ;;  %5640 = vcosq.f32 %v1791_v4 }
 0x2c5   : > { %5642 = vsinq.f32 %v1791_v4  ;;  %v1693_v39 = vand.u32 3, %v1692_v22  ;;  %vm1486_vm11 = vcmp.lt.s32.totalorder %v1485_v43, 2  ;;  %vm1487_vm12 = vcmp.eq.s32.totalorder %v1485_v43, 0 }
 0x2c6   : > { %v1569_v52 = vshrl.u32 %v1551_v28, %v1567_v29  ;;  %v1572_v53 = vadd.s32 127, %v1571_v31  ;;  %5644 = vcosq.f32 %v1687_v46  ;;  %vm1490_vm13 = vcmp.eq.s32.totalorder %v1485_v43, 2 }
 0x2c7   : > { %5646 = vsinq.f32 %v1687_v46  ;;  %v5637_v20 = vpop.eup %5636  ;;  %vm1799_vm14 = vcmp.eq.s32.totalorder %v1797_v23, 0  ;;  %vm1802_vm15 = vcmp.eq.s32.totalorder %v1797_v23, 2  ;;  %vm1594_vm0 = vcmp.eq.s32.totalorder %v1589_v15, 2 }
 0x2c8   : > { %v1570_v47 = vor.u32 %v1569_v52, %v1568_v50  ;;  %v1573_v38 = vshll.u32 %v1572_v53, 23  ;;  %v5639_v59 = vpop.eup %5638  ;;  %v1491_v24 = vxor.u32 2147483648, %v5637_v20  ;;  %vm1695_vm1 = vcmp.eq.s32.totalorder %v1693_v39, 0 }
 0x2c9   : > { %v1488_v13 = vxor.u32 2147483648, %v5639_v59  ;;  %vm1698_vm3 = vcmp.eq.s32.totalorder %v1693_v39, 2  ;;  %vm1798_vm4 = vcmp.lt.s32.totalorder %v1797_v23, 2  ;;  %vm1591_vm5 = vcmp.eq.s32.totalorder %v1589_v15, 0 }
 0x2ca   : > { %v1574_v54 = vor.u32 4788187, %v1573_v38  ;;  %v1577_v1 = vcvt.s32.f32 %v1570_v47  ;;  %v1492_v60 = vsel %vm1490_vm13, %v1491_v24, %v5639_v59  ;;  %vm1590_vm7 = vcmp.lt.s32.totalorder %v1589_v15, 2 }
 0x2cb   : > { %v1489_v31 = vsel %vm1487_vm12, %v5637_v20, %v1488_v13  ;;  %vm1694_vm8 = vcmp.lt.s32.totalorder %v1693_v39, 2 }
 0x2cc   : > { %v1575_v45 = vand.u32 2147483647, %v1574_v54  ;;  %v1493_v38 = vsel %vm1486_vm11, %v1489_v31, %v1492_v60  ;;  %vm1691_vm11 = vweird.f32 %v6194_v30 }
 0x2cd   : > { %v6477_v46 = vsel %vm1483_vm6, nan, %v1493_v38 }
 0x2ce   : > { %v1578_v7 = vmul.f32 %v1577_v1, %v1575_v45  ;;  %v5641_v40 = vpop.eup %5640 }
 0x2cf   : > { %v5643_v17 = vpop.eup %5642  ;;  %v1803_v26 = vxor.u32 2147483648, %v5641_v40 }
 0x2d0   : > { %v1579_v48 = vxor.u32 2147483648, %v1578_v7  ;;  %v5645_v51 = vpop.eup %5644  ;;  %v1800_v41 = vxor.u32 2147483648, %v5643_v17 }
 0x2d1   : > { %v5647_v34 = vpop.eup %5646  ;;  %v1699_v28 = vxor.u32 2147483648, %v5645_v51  ;;  %v1804_v50 = vsel %vm1802_vm15, %v1803_v26, %v5643_v17 }
 0x2d2   : > { %v1580_v2 = vsel %vm1497_vm9, %v1579_v48, %v1578_v7  ;;  %v1696_v27 = vxor.u32 2147483648, %v5647_v34  ;;  %v1801_v36 = vsel %vm1799_vm14, %v5641_v40, %v1800_v41  ;;  %vm1587_vm9 = vweird.f32 %v6204_v44  ;;  %v1831_v7 = vpop.permute.xlu0 %1830 }
 0x2d3   : > { %v1583_v0 = vsel %vm1496_vm10, %v6204_v44, %v1580_v2  ;;  %v1700_v47 = vsel %vm1698_vm3, %v1699_v28, %v5647_v34  ;;  %v1805_v4 = vsel %vm1798_vm4, %v1801_v36, %v1804_v50  ;;  %vm1795_vm10 = vweird.f32 %v6200_v37  ;;  %v5617_v37 = vld [vmem:[%s8318_s6 + $0x8] sm:$0xff]   ;;  %v5618_v28 = vld [vmem:[%s8318_s6 + $0x10] sm:$0xff]  }
 0x2d4   : > { %5648 = vcosq.f32 %v1583_v0  ;;  %v1697_v3 = vsel %vm1695_vm1, %v5645_v51, %v1696_v27  ;;  %v6481_v45 = vsel %vm1795_vm10, nan, %v1805_v4 }
 0x2d5   : > { %5650 = vsinq.f32 %v1583_v0  ;;  %v1701_v10 = vsel %vm1694_vm8, %v1697_v3, %v1700_v47 }
 0x2d6   : > { %v6486_v33 = vsel %vm1691_vm11, nan, %v1701_v10 }
 0x2d7   : > { %v1813_v44 = vpack.c.bf16 %v6481_v45, %v6486_v33 }
 0x2de   : > { %v5649_v29 = vpop.eup %5648 }
 0x2df   : > { %v5651_v52 = vpop.eup %5650  ;;  %v1595_v53 = vxor.u32 2147483648, %v5649_v29 }
 0x2e0   : > { %v1592_v57 = vxor.u32 2147483648, %v5651_v52 }
 0x2e1   : > { %v1596_v55 = vsel %vm1594_vm0, %v1595_v53, %v5651_v52 }
 0x2e2   : > { %v1593_v54 = vsel %vm1591_vm5, %v5649_v29, %v1592_v57 }
 0x2e3   : > { %v1597_v56 = vsel %vm1590_vm7, %v1593_v54, %v1596_v55 }
 0x2e4   : > { %v6479_v63 = vsel %vm1587_vm9, nan, %v1597_v56 }
 0x2e5   : > { %v1812_v1 = vpack.c.bf16 %v6479_v63, %v6477_v46 }
 0x2e7   : > { %5367 = vmatprep.subr.bf16.mxu1 %v1812_v1 }
 0x2e8   : > { %5368 = vmatpush3.bf16.msra.mxu1 %v1812_v1 }
 0x2e9   : > { %5369 = vmatprep.subr.bf16.mxu1 %v1813_v44 }
 0x2ec   : > { %5370 = vmatpush3.bf16.msra.mxu1 %v1813_v44 }
 0x2ef   : > { %5372 = vmatmul.mubr.msk.bf16.vlgmr.msra.gmra.mrb[8].mxu1 %vm1329_vm2, %v5617_v37 }
 0x2f0   : > { %5379 = vmatprep.mubr.msk.bf16.mxu1 %vm1329_vm2, %v5618_v28 }
 0x3c2   : > { %v5373_v30 = vpop.f32.mrb[8].mxu1 }
 0x3c3   : > { %v1897_v19 = vadd.f32 %v5373_v30, %v1831_v7  ;;  %v1888_v48 = vpop.f32.mrb[9].mxu1 }
 0x3c4   : > { %v1889_v61 = vadd.f32 %v1888_v48, %v1821_v5  ;;  %v5374_v62 = vpop.f32.mrb[10].mxu1 }
 0x3c5   : > { %v6494_v2 = vmul.f32 %v1903_v35, %v1897_v19  ;;  %v1900_v58 = vadd.f32 %v5374_v62, %v1836_v11  ;;  %v1891_v0 = vpop.f32.mrb[11].mxu1 }
 0x3c6   : > { %v6496_v20 = vmul.f32 %v1903_v35, %v1889_v61  ;;  %v1892_v42 = vadd.f32 %v1891_v0, %v1826_v49 }
 0x3c7   : > { %v2116_v32 = vand.u32 2147483647, %v6494_v2  ;;  %v2119_v8 = vand.u32 2139095040, %v6494_v2  ;;  %v6500_v59 = vmul.f32 %v1903_v35, %v1900_v58 }
 0x3c8   : > { %v1908_v21 = vand.u32 2147483647, %v6496_v20  ;;  %v1911_v40 = vand.u32 2139095040, %v6496_v20  ;;  %v6504_v17 = vmul.f32 %v1903_v35, %v1892_v42 }
 0x3c9   : > { %v2120_v9 = vshrl.u32 %v2119_v8, 23  ;;  %v2123_v22 = vand.u32 8388607, %v2116_v32  ;;  %v2220_v51 = vand.u32 2147483647, %v6500_v59  ;;  %v2223_v23 = vand.u32 2139095040, %v6500_v59 }
 0x3ca   : > { %v1912_v43 = vshrl.u32 %v1911_v40, 23  ;;  %v1915_v34 = vand.u32 8388607, %v1908_v21  ;;  %v2015_v15 = vand.u32 2139095040, %v6504_v17 }
 0x3cb   : > { %v5123_v13 = vadd.s32 4294967169, %v2120_v9  ;;  %v2124_v24 = vor.u32 8388608, %v2123_v22  ;;  %v2224_v26 = vshrl.u32 %v2223_v23, 23  ;;  %v6515_v27 = vand.u32 8388607, %v2220_v51 }
 0x3cc   : > { %v5115_v41 = vadd.s32 4294967169, %v1912_v43  ;;  %v1916_v29 = vor.u32 8388608, %v1915_v34  ;;  %v2016_v36 = vshrl.u32 %v2015_v15, 23 }
 0x3cd   : > { %v2126_v39 = vadd.s32 1, %v5123_v13  ;;  %v5127_v60 = vadd.s32 4294967169, %v2224_v26  ;;  %v6521_v52 = vshll.u32 %v2124_v24, 8  ;;  %v2228_v38 = vor.u32 8388608, %v6515_v27 }
 0x3ce   : > { %v1918_v31 = vadd.s32 1, %v5115_v41  ;;  %v5119_v53 = vadd.s32 4294967169, %v2016_v36  ;;  %v6526_v54 = vshll.u32 %v1916_v29, 8 }
 0x3cf   : > { %vm2127_vm12 = vcmp.gt.s32.totalorder %v2126_v39, 0  ;;  %v6528_v56 = vadd.s32 1, %v5127_v60 }
 0x3d0   : > { %v2128_v50 = vsel %vm2127_vm12, %v2126_v39, 0  ;;  %vm1919_vm13 = vcmp.gt.s32.totalorder %v1918_v31, 0  ;;  %v6532_v37 = vadd.s32 1, %v5119_v53 }
 0x3d1   : > { %v2129_v57 = vshrl.u32 %v2128_v50, 5  ;;  %v2130_v3 = vand.u32 31, %v2128_v50  ;;  %v1920_v47 = vsel %vm1919_vm13, %v1918_v31, 0  ;;  %vm2231_vm3 = vcmp.gt.s32.totalorder %v6528_v56, 0 }
 0x3d2   : > { %v6524_v55 = vshrl.u32 %v1920_v47, 5  ;;  %v1922_v4 = vand.u32 31, %v1920_v47  ;;  %vm2023_vm9 = vcmp.gt.s32.totalorder %v6532_v37, 0 }
 0x3d3   : > { %v2131_v10 = vsub.s32 32, %v2130_v3  ;;  %v2133_v1 = vshll.u32 %v5833_v6, %v2130_v3  ;;  %v2136_v44 = vshll.u32 %v5834_v12, %v2130_v3  ;;  %v2139_v5 = vshll.u32 %v5835_v14, %v2130_v3 }
 0x3d4   : > { %v2142_v49 = vshll.u32 %v5836_v16, %v2130_v3  ;;  %v2145_v7 = vshll.u32 %v5837_v18, %v2130_v3  ;;  %vm2148_vm14 = vcmp.lt.s32.totalorder %v2129_v57, 1  ;;  %vm2149_vm15 = vcmp.lt.s32.totalorder %v2129_v57, 2 }
 0x3d5   : > { %v2134_v30 = vshrl.u32 %v5834_v12, %v2131_v10  ;;  %v2137_v35 = vshrl.u32 %v5835_v14, %v2131_v10  ;;  %v2140_v19 = vshrl.u32 %v5836_v16, %v2131_v10  ;;  %v2132_v48 = vshrl.u32 %v5833_v6, %v2131_v10 }
 0x3d6   : > { %v2143_v11 = vshrl.u32 %v5837_v18, %v2131_v10  ;;  %v2146_v61 = vshrl.u32 %v5838_v25, %v2131_v10  ;;  %vm2150_vm0 = vcmp.lt.s32.totalorder %v2129_v57, 3  ;;  %v1923_v42 = vsub.s32 32, %v1922_v4 }
 0x3d7   : > { %v2135_v62 = vor.u32 %v2134_v30, %v2133_v1  ;;  %v2138_v58 = vor.u32 %v2137_v35, %v2136_v44  ;;  %v2141_v0 = vor.u32 %v2140_v19, %v2139_v5  ;;  %vm2151_vm1 = vcmp.lt.s32.totalorder %v2129_v57, 4 }
 0x3d8   : > { %v2144_v8 = vor.u32 %v2143_v11, %v2142_v49  ;;  %v2147_v40 = vor.u32 %v2146_v61, %v2145_v7  ;;  %v1925_v9 = vshll.u32 %v5833_v6, %v1922_v4  ;;  %v1928_v26 = vshll.u32 %v5834_v12, %v1922_v4 }
 0x3d9   : > { %v2152_v22 = vsel %vm2148_vm14, %v2132_v48, %v2135_v62  ;;  %v2153_v43 = vsel %vm2151_vm1, %v2141_v0, 2102212464  ;;  %v2156_v34 = vsel %vm2148_vm14, %v2135_v62, %v2138_v58  ;;  %v2160_v23 = vsel %vm2148_vm14, %v2138_v58, %v2141_v0 }
 0x3da   : > { %v2154_v13 = vsel %vm2150_vm0, %v2138_v58, %v2153_v43  ;;  %v2157_v24 = vsel %vm2151_vm1, %v2144_v8, 920167782  ;;  %v2161_v41 = vsel %vm2151_vm1, %v2147_v40, 1326507024  ;;  %v1924_v28 = vshrl.u32 %v5833_v6, %v1923_v42 }
 0x3db   : > { %v2158_v15 = vsel %vm2150_vm0, %v2141_v0, %v2157_v24  ;;  %v2162_v39 = vsel %vm2150_vm0, %v2144_v8, %v2161_v41  ;;  %v1926_v29 = vshrl.u32 %v5834_v12, %v1923_v42  ;;  %v2155_v31 = vsel %vm2149_vm15, %v2152_v22, %v2154_v13 }
 0x3dc   : > { %v2159_v60 = vsel %vm2149_vm15, %v2156_v34, %v2158_v15  ;;  %v2163_v36 = vsel %vm2149_vm15, %v2160_v23, %v2162_v39  ;;  %v1929_v50 = vshrl.u32 %v5835_v14, %v1923_v42  ;;  %v1931_v5 = vshll.u32 %v5835_v14, %v1922_v4 }
 0x3dd   : > { %v6559_v53 = vmul.u32.u64.low %v6521_v52, %v2163_v36  ;;  %v6560_v3 = vmul.u32.u64.high %v6521_v52, %v2163_v36, %v6559_v53  ;;  %v6563_v47 = vmul.u32.u64.low %v6521_v52, %v2159_v60  ;;  %v6564_v10 = vmul.u32.u64.high %v6521_v52, %v2159_v60, %v6563_v47 }
 0x3de   : > { %v1927_v1 = vor.u32 %v1926_v29, %v1925_v9  ;;  %v1930_v44 = vor.u32 %v1929_v50, %v1928_v26  ;;  %v1932_v49 = vshrl.u32 %v5836_v16, %v1923_v42  ;;  %v2171_v57 = vmul.u32 %v6521_v52, %v2155_v31 }
 0x3df   : > { %v1934_v7 = vshll.u32 %v5836_v16, %v1922_v4  ;;  %v1935_v30 = vshrl.u32 %v5837_v18, %v1923_v42  ;;  %v1938_v35 = vshrl.u32 %v5838_v25, %v1923_v42  ;;  %v1937_v48 = vshll.u32 %v5837_v18, %v1922_v4 }
 0x3e0   : > { %v1933_v19 = vor.u32 %v1932_v49, %v1931_v5  ;;  %vm1940_vm4 = vcmp.lt.s32.totalorder %v6524_v55, 1  ;;  %vm1941_vm5 = vcmp.lt.s32.totalorder %v6524_v55, 2  ;;  %vm2173_vm6 = vc.u32 %v6560_v3, %v6563_v47 }
 0x3e1   : > { %v2174_v11 = vadd.s32 1, %v6564_v10  ;;  %v1936_v61 = vor.u32 %v1935_v30, %v1934_v7  ;;  %vm1942_vm7 = vcmp.lt.s32.totalorder %v6524_v55, 3  ;;  %v1939_v52 = vor.u32 %v1938_v35, %v1937_v48 }
 0x3e2   : > { %vm1943_vm8 = vcmp.lt.s32.totalorder %v6524_v55, 4  ;;  %v1944_v62 = vsel %vm1940_vm4, %v1924_v28, %v1927_v1  ;;  %v1948_v58 = vsel %vm1940_vm4, %v1927_v1, %v1930_v44  ;;  %v1952_v8 = vsel %vm1940_vm4, %v1930_v44, %v1933_v19 }
 0x3e3   : > { %v2175_v0 = vsel %vm2173_vm6, %v2174_v11, %v6564_v10  ;;  %v1945_v4 = vsel %vm1943_vm8, %v1933_v19, 2102212464  ;;  %v1949_v42 = vsel %vm1943_vm8, %v1936_v61, 920167782  ;;  %v1953_v43 = vsel %vm1943_vm8, %v1939_v52, 1326507024 }
 0x3e4   : > { %v2176_v40 = vadd.s32 %v2175_v0, %v2171_v57  ;;  %v1946_v9 = vsel %vm1942_vm7, %v1930_v44, %v1945_v4  ;;  %v1950_v22 = vsel %vm1942_vm7, %v1933_v19, %v1949_v42  ;;  %v1954_v13 = vsel %vm1942_vm7, %v1936_v61, %v1953_v43 }
 0x3e5   : > { %v1947_v34 = vsel %vm1941_vm5, %v1944_v62, %v1946_v9  ;;  %v1951_v23 = vsel %vm1941_vm5, %v1948_v58, %v1950_v22  ;;  %v2232_v24 = vsel %vm2231_vm3, %v6528_v56, 0  ;;  %v1955_v26 = vsel %vm1941_vm5, %v1952_v8, %v1954_v13 }
 0x3e6   : > { %v2177_v41 = vadd.s32 536870912, %v2176_v40  ;;  %v6592_v15 = vmul.u32.u64.low %v6526_v54, %v1951_v23  ;;  %v6593_v39 = vmul.u32.u64.high %v6526_v54, %v1951_v23, %v6592_v15  ;;  %v2233_v31 = vshrl.u32 %v2232_v24, 5 }
 0x3e7   : > { %v6597_v28 = vmul.u32.u64.low %v6526_v54, %v1955_v26  ;;  %v6598_v29 = vmul.u32.u64.high %v6526_v54, %v1955_v26, %v6597_v28  ;;  %v2234_v36 = vand.u32 31, %v2232_v24  ;;  %v1963_v50 = vmul.u32 %v6526_v54, %v1947_v34 }
 0x3e8   : > { %v6600_v60 = vshrl.u32 %v2177_v41, 30  ;;  %v6605_v56 = vshll.u32 %v2228_v38, 8  ;;  %v1966_v53 = vadd.s32 1, %v6593_v39  ;;  %vm2252_vm11 = vcmp.lt.s32.totalorder %v2233_v31, 1 }
 0x3e9   : > { %v2235_v10 = vsub.s32 32, %v2234_v36  ;;  %vm1965_vm10 = vc.u32 %v6598_v29, %v6592_v15  ;;  %v2237_v1 = vshll.u32 %v5833_v6, %v2234_v36  ;;  %v2240_v44 = vshll.u32 %v5834_v12, %v2234_v36 }
 0x3ea   : > { %v2179_v55 = vshll.u32 %v6600_v60, 30  ;;  %v1967_v27 = vsel %vm1965_vm10, %v1966_v53, %v6593_v39  ;;  %v2243_v5 = vshll.u32 %v5835_v14, %v2234_v36  ;;  %v2246_v30 = vshll.u32 %v5836_v16, %v2234_v36 }
 0x3eb   : > { %v2238_v38 = vshrl.u32 %v5834_v12, %v2235_v10  ;;  %v1968_v49 = vadd.s32 %v1967_v27, %v1963_v50  ;;  %v2241_v57 = vshrl.u32 %v5835_v14, %v2235_v10  ;;  %v2244_v7 = vshrl.u32 %v5836_v16, %v2235_v10 }
 0x3ec   : > { %v6614_v54 = vsub.s32 %v2176_v40, %v2179_v55  ;;  %v2247_v48 = vshrl.u32 %v5837_v18, %v2235_v10  ;;  %v2249_v11 = vshll.u32 %v5837_v18, %v2234_v36  ;;  %v2250_v58 = vshrl.u32 %v5838_v25, %v2235_v10 }
 0x3ed   : > { %v2239_v19 = vor.u32 %v2238_v38, %v2237_v1  ;;  %v1969_v61 = vadd.s32 536870912, %v1968_v49  ;;  %v2242_v52 = vor.u32 %v2241_v57, %v2240_v44  ;;  %v2245_v62 = vor.u32 %v2244_v7, %v2243_v5 }
 0x3ee   : > { %v2182_v35 = vsub.s32 0, %v6614_v54  ;;  %v2236_v0 = vshrl.u32 %v5833_v6, %v2235_v10  ;;  %v2248_v4 = vor.u32 %v2247_v48, %v2246_v30  ;;  %vm2253_vm12 = vcmp.lt.s32.totalorder %v2233_v31, 2 }
 0x3ef   : > { %vm2255_vm13 = vcmp.lt.s32.totalorder %v2233_v31, 4  ;;  %v6627_v42 = vshrl.u32 %v1969_v61, 30  ;;  %v2251_v8 = vor.u32 %v2250_v58, %v2249_v11  ;;  %v2260_v9 = vsel %vm2252_vm11, %v2239_v19, %v2242_v52 }
 0x3f0   : > { %v2257_v40 = vsel %vm2255_vm13, %v2245_v62, 2102212464  ;;  %v5124_v22 = vmin.u32 %v2182_v35, %v6614_v54  ;;  %vm2254_vm14 = vcmp.lt.s32.totalorder %v2233_v31, 3  ;;  %v2261_v43 = vsel %vm2255_vm13, %v2248_v4, 920167782 }
 0x3f1   : > { %v2264_v34 = vsel %vm2252_vm11, %v2242_v52, %v2245_v62  ;;  %v1971_v23 = vshll.u32 %v6627_v42, 30  ;;  %v2256_v13 = vsel %vm2252_vm11, %v2236_v0, %v2239_v19  ;;  %v2262_v24 = vsel %vm2254_vm14, %v2245_v62, %v2261_v43 }
 0x3f2   : > { %v2265_v41 = vsel %vm2255_vm13, %v2251_v8, 1326507024  ;;  %v2258_v26 = vsel %vm2254_vm14, %v2242_v52, %v2257_v40  ;;  %v2263_v39 = vsel %vm2253_vm12, %v2260_v9, %v2262_v24  ;;  %v2024_v36 = vsel %vm2023_vm9, %v6532_v37, 0 }
 0x3f3   : > { %v2266_v28 = vsel %vm2254_vm14, %v2248_v4, %v2265_v41  ;;  %v6638_v50 = vsub.s32 %v1968_v49, %v1971_v23  ;;  %v6642_v53 = vmul.u32.u64.low %v6605_v56, %v2263_v39  ;;  %v6643_v10 = vmul.u32.u64.high %v6605_v56, %v2263_v39, %v6642_v53 }
 0x3f4   : > { %v2267_v55 = vsel %vm2253_vm12, %v2264_v34, %v2266_v28  ;;  %v2259_v38 = vsel %vm2253_vm12, %v2256_v13, %v2258_v26  ;;  %v2012_v5 = vand.u32 2147483647, %v6504_v17  ;;  %v2026_v37 = vand.u32 31, %v2024_v36 }
 0x3f5   : > { %v6647_v1 = vmul.u32.u64.low %v6605_v56, %v2267_v55  ;;  %v6648_v44 = vmul.u32.u64.high %v6605_v56, %v2267_v55, %v6647_v1  ;;  %v1974_v27 = vsub.s32 0, %v6638_v50  ;;  %v2184_v49 = vclz %v5124_v22 }
 0x3f6   : > { %v2278_v7 = vadd.s32 1, %v6643_v10  ;;  %v2027_v30 = vsub.s32 32, %v2026_v37  ;;  %v2275_v35 = vmul.u32 %v6605_v56, %v2259_v38  ;;  %v2019_v31 = vand.u32 8388607, %v2012_v5 }
 0x3f7   : > { %v5116_v57 = vmin.u32 %v1974_v27, %v6638_v50  ;;  %vm2277_vm15 = vc.u32 %v6648_v44, %v6642_v53  ;;  %v5125_v11 = vadd.s32 4294967294, %v2184_v49  ;;  %v2029_v8 = vshll.u32 %v5833_v6, %v2026_v37 }
 0x3f8   : > { %v2279_v48 = vsel %vm2277_vm15, %v2278_v7, %v6643_v10  ;;  %v2030_v62 = vshrl.u32 %v5834_v12, %v2027_v30  ;;  %v2033_v58 = vshrl.u32 %v5835_v14, %v2027_v30  ;;  %v2036_v4 = vshrl.u32 %v5836_v16, %v2027_v30 }
 0x3f9   : > { %v1976_v19 = vclz %v5116_v57  ;;  %v2280_v61 = vadd.s32 %v2279_v48, %v2275_v35  ;;  %v2020_v56 = vor.u32 8388608, %v2019_v31  ;;  %v2032_v40 = vshll.u32 %v5834_v12, %v2026_v37 }
 0x3fa   : > { %v2039_v9 = vshrl.u32 %v5837_v18, %v2027_v30  ;;  %vm5126_vm0 = vcmp.lt.s32.totalorder %v5125_v11, 0  ;;  %v2025_v43 = vshrl.u32 %v2024_v36, 5  ;;  %v2035_v34 = vshll.u32 %v5835_v14, %v2026_v37 }
 0x3fb   : > { %v5117_v52 = vadd.s32 4294967294, %v1976_v19  ;;  %v2281_v0 = vadd.s32 536870912, %v2280_v61  ;;  %v2031_v23 = vor.u32 %v2030_v62, %v2029_v8  ;;  %v2034_v13 = vor.u32 %v2033_v58, %v2032_v40 }
 0x3fc   : > { %v2038_v24 = vshll.u32 %v5836_v16, %v2026_v37  ;;  %v2037_v26 = vor.u32 %v2036_v4, %v2035_v34  ;;  %v2041_v39 = vshll.u32 %v5837_v18, %v2026_v37  ;;  %v2042_v28 = vshrl.u32 %v5838_v25, %v2027_v30 }
 0x3fd   : > { %v6667_v22 = vshrl.u32 %v2281_v0, 30  ;;  %vm5118_vm1 = vcmp.lt.s32.totalorder %v5117_v52, 0  ;;  %v6677_v36 = vsel %vm5126_vm0, 0, %v5125_v11  ;;  %vm2044_vm3 = vcmp.lt.s32.totalorder %v2025_v43, 1 }
 0x3fe   : > { %v2040_v55 = vor.u32 %v2039_v9, %v2038_v24  ;;  %v1979_v10 = vsel %vm5118_vm1, 0, %v5117_v52  ;;  %v2043_v27 = vor.u32 %v2042_v28, %v2041_v39  ;;  %vm2047_vm4 = vcmp.lt.s32.totalorder %v2025_v43, 4 }
 0x3ff   : > { %v2283_v41 = vshll.u32 %v6667_v22, 30  ;;  %v2060_v38 = vshll.u32 %v2020_v56, 8  ;;  %v2028_v57 = vshrl.u32 %v5833_v6, %v2027_v30  ;;  %v2049_v7 = vsel %vm2047_vm4, %v2037_v26, 2102212464 }
 0x400   : > { %v2052_v35 = vsel %vm2044_vm3, %v2031_v23, %v2034_v13  ;;  %v1984_v37 = vsub.s32 4294967266, %v1979_v10  ;;  %vm2045_vm5 = vcmp.lt.s32.totalorder %v2025_v43, 2  ;;  %vm2046_vm6 = vcmp.lt.s32.totalorder %v2025_v43, 3 }
 0x401   : > { %v6674_v1 = vsub.s32 %v2280_v61, %v2283_v41  ;;  %v2053_v19 = vsel %vm2047_vm4, %v2040_v55, 920167782  ;;  %v2056_v61 = vsel %vm2044_vm3, %v2034_v13, %v2037_v26  ;;  %v2057_v52 = vsel %vm2047_vm4, %v2043_v27, 1326507024 }
 0x402   : > { %v2054_v31 = vsel %vm2046_vm6, %v2037_v26, %v2053_v19  ;;  %v2048_v11 = vsel %vm2044_vm3, %v2028_v57, %v2031_v23  ;;  %v2050_v62 = vsel %vm2046_vm6, %v2034_v13, %v2049_v7  ;;  %v2058_v0 = vsel %vm2046_vm6, %v2040_v55, %v2057_v52 }
 0x403   : > { %v2286_v49 = vsub.s32 0, %v6674_v1  ;;  %v2055_v58 = vsel %vm2045_vm5, %v2052_v35, %v2054_v31  ;;  %v2059_v56 = vsel %vm2045_vm5, %v2056_v61, %v2058_v0  ;;  %v2192_v34 = vsub.s32 4294967266, %v6677_v36 }
 0x404   : > { %v6684_v30 = vmul.u32.u64.low %v2060_v38, %v2055_v58  ;;  %v6685_v8 = vmul.u32.u64.high %v2060_v38, %v2055_v58, %v6684_v30  ;;  %v6688_v40 = vmul.u32.u64.low %v2060_v38, %v2059_v56  ;;  %v6689_v9 = vmul.u32.u64.high %v2060_v38, %v2059_v56, %v6688_v40 }
 0x405   : > { %v5128_v48 = vmin.u32 %v2286_v49, %v6674_v1  ;;  %v2051_v41 = vsel %vm2045_vm5, %v2048_v11, %v2050_v62  ;;  %v1985_v23 = vadd.s32 127, %v1984_v37  ;;  %v1980_v26 = vsub.s32 32, %v1979_v10 }
 0x406   : > { %v2070_v13 = vadd.s32 1, %v6685_v8  ;;  %v2067_v28 = vmul.u32 %v2060_v38, %v2051_v41  ;;  %vm2069_vm8 = vc.u32 %v6689_v9, %v6684_v30  ;;  %v2193_v55 = vadd.s32 127, %v2192_v34 }
 0x407   : > { %v2288_v4 = vclz %v5128_v48  ;;  %v1964_v57 = vadd.s32 %v6592_v15, %v6598_v29  ;;  %v1986_v7 = vshll.u32 %v1985_v23, 23  ;;  %v2188_v37 = vsub.s32 32, %v6677_v36 }
 0x408   : > { %v2071_v49 = vsel %vm2069_vm8, %v2070_v13, %v6685_v8  ;;  %v2276_v38 = vadd.s32 %v6642_v53, %v6648_v44  ;;  %v2172_v61 = vadd.s32 %v6563_v47, %v6560_v3  ;;  %v2194_v52 = vshll.u32 %v2193_v55, 23 }
 0x409   : > { %v5129_v24 = vadd.s32 4294967294, %v2288_v4  ;;  %v2072_v35 = vadd.s32 %v2071_v49, %v2067_v28  ;;  %v1982_v48 = vshrl.u32 %v1964_v57, %v1980_v26  ;;  %v1981_v62 = vshll.u32 %v6638_v50, %v1979_v10 }
 0x40a   : > { %v1987_v58 = vor.u32 4788187, %v1986_v7  ;;  %v2190_v0 = vshrl.u32 %v2172_v61, %v2188_v37  ;;  %v2189_v53 = vshll.u32 %v6614_v54, %v6677_v36  ;;  %v2195_v44 = vor.u32 4788187, %v2194_v52 }
 0x40b   : > { %vm5130_vm7 = vcmp.lt.s32.totalorder %v5129_v24, 0  ;;  %v2073_v31 = vadd.s32 536870912, %v2072_v35  ;;  %v1983_v4 = vor.u32 %v1982_v48, %v1981_v62  ;;  %vm1910_vm10 = vcmp.lt.s32.totalorder %v6496_v20, 0 }
 0x40c   : > { %v2291_v39 = vsel %vm5130_vm7, 0, %v5129_v24  ;;  %v1988_v3 = vand.u32 2147483647, %v1987_v58  ;;  %v2191_v24 = vor.u32 %v2190_v0, %v2189_v53  ;;  %v2196_v23 = vand.u32 2147483647, %v2195_v44 }
 0x40d   : > { %v2296_v27 = vsub.s32 4294967266, %v2291_v39  ;;  %v2292_v43 = vsub.s32 32, %v2291_v39  ;;  %v6705_v29 = vshrl.u32 %v2073_v31, 30  ;;  %v2293_v56 = vshll.u32 %v6674_v1, %v2291_v39 }
 0x40e   : > { %v1990_v50 = vcvt.s32.f32 %v1983_v4  ;;  %v2198_v55 = vcvt.s32.f32 %v2191_v24  ;;  %vm2222_vm11 = vcmp.lt.s32.totalorder %v6500_v59, 0  ;;  %vm6719_vm12 = vcmp.le.f32.partialorder %v1908_v21, 0.7853982 }
 0x40f   : > { %v2297_v19 = vadd.s32 127, %v2296_v27  ;;  %v2294_v15 = vshrl.u32 %v2276_v38, %v2292_v43  ;;  %v2075_v40 = vshll.u32 %v6705_v29, 30  ;;  %vm2118_vm13 = vcmp.lt.s32.totalorder %v6494_v2, 0 }
 0x410   : > { %v1991_v13 = vmul.f32 %v1990_v50, %v1988_v3  ;;  %v2199_v27 = vmul.f32 %v2198_v55, %v2196_v23  ;;  %vm6733_vm14 = vcmp.le.f32.partialorder %v2220_v51, 0.7853982  ;;  %v1994_v0 = vsub.s32 4, %v6627_v42 }
 0x411   : > { %v2298_v11 = vshll.u32 %v2297_v19, 23  ;;  %v2295_v47 = vor.u32 %v2294_v15, %v2293_v56  ;;  %v2076_v34 = vsub.s32 %v2072_v35, %v2075_v40  ;;  %v2068_v35 = vadd.s32 %v6684_v30, %v6689_v9 }
 0x412   : > { %v1992_v49 = vxor.u32 2147483648, %v1991_v13  ;;  %v2200_v54 = vxor.u32 2147483648, %v2199_v27  ;;  %vm6743_vm15 = vcmp.le.f32.partialorder %v2116_v32, 0.7853982  ;;  %v2306_v56 = vsub.s32 4, %v6667_v22 }
 0x413   : > { %v2299_v8 = vor.u32 4788187, %v2298_v11  ;;  %v2078_v41 = vsub.s32 0, %v2076_v34  ;;  %v2302_v26 = vcvt.s32.f32 %v2295_v47  ;;  %v2098_v53 = vsub.s32 4, %v6705_v29 }
 0x414   : > { %v1993_v43 = vsel %vm1910_vm10, %v1992_v49, %v1991_v13  ;;  %v2201_v9 = vsel %vm2118_vm13, %v2200_v54, %v2199_v27  ;;  %v2202_v44 = vsub.s32 4, %v6600_v60  ;;  %v1995_v32 = vsel %vm1910_vm10, %v1994_v0, %v6627_v42 }
 0x415   : > { %v2300_v10 = vand.u32 2147483647, %v2299_v8  ;;  %v5120_v28 = vmin.u32 %v2078_v41, %v2076_v34  ;;  %v1996_v30 = vsel %vm6719_vm12, %v6496_v20, %v1993_v43  ;;  %v2204_v51 = vsel %vm6743_vm15, %v6494_v2, %v2201_v9 }
 0x416   : > { %5652 = vcosq.f32 %v1996_v30  ;;  %v2307_v47 = vsel %vm2222_vm11, %v2306_v56, %v6667_v22  ;;  %vm2014_vm0 = vcmp.lt.s32.totalorder %v6504_v17, 0  ;;  %v1997_v24 = vsel %vm6719_vm12, 0, %v1995_v32 }
 0x417   : > { %v2303_v1 = vmul.f32 %v2302_v26, %v2300_v10  ;;  %v2080_v39 = vclz %v5120_v28  ;;  %5654 = vsinq.f32 %v1996_v30  ;;  %v2099_v50 = vsel %vm2014_vm0, %v2098_v53, %v6705_v29 }
 0x418   : > { %v2203_v10 = vsel %vm2118_vm13, %v2202_v44, %v6600_v60  ;;  %vm2013_vm1 = vcmp.le.f32.partialorder %v2012_v5, 0.7853982  ;;  %v2309_v42 = vsel %vm6733_vm14, 0, %v2307_v47  ;;  %v2001_v13 = vadd.s32 3, %v1997_v24 }
 0x419   : > { %v5121_v57 = vadd.s32 4294967294, %v2080_v39  ;;  %v2304_v7 = vxor.u32 2147483648, %v2303_v1  ;;  %v2101_v26 = vsel %vm2013_vm1, 0, %v2099_v50  ;;  %v2205_v29 = vsel %vm6743_vm15, 0, %v2203_v10 }
 0x41a   : > { %v2313_v55 = vadd.s32 3, %v2309_v42  ;;  %v2105_v39 = vadd.s32 3, %v2101_v26  ;;  %v2209_v27 = vadd.s32 3, %v2205_v29  ;;  %v2002_v49 = vand.u32 3, %v2001_v13 }
 0x41b   : > { %vm5122_vm9 = vcmp.lt.s32.totalorder %v5121_v57, 0  ;;  %v2305_v38 = vsel %vm2222_vm11, %v2304_v7, %v2303_v1  ;;  %vm2000_vm13 = vweird.f32 %v6496_v20  ;;  %v5619_v20 = vld [vmem:[%s8318_s6 + $0x18] sm:$0xff]   ;;  %v2422_v10 = vstv %s5131_s14 }
 0x41c   : > { %v2083_v36 = vsel %vm5122_vm9, 0, %v5121_v57  ;;  %v2308_v58 = vsel %vm6733_vm14, %v6500_v59, %v2305_v38  ;;  %v2314_v7 = vand.u32 3, %v2313_v55  ;;  %vm2003_vm3 = vcmp.lt.s32.totalorder %v2002_v49, 2 }
 0x41d   : > { %v2084_v37 = vsub.s32 32, %v2083_v36  ;;  %v2088_v19 = vsub.s32 4294967266, %v2083_v36  ;;  %v2085_v31 = vshll.u32 %v2076_v34, %v2083_v36  ;;  %5656 = vcosq.f32 %v2308_v58 }
 0x41e   : > { %5658 = vsinq.f32 %v2308_v58  ;;  %vm2004_vm4 = vcmp.eq.s32.totalorder %v2002_v49, 0  ;;  %vm2007_vm5 = vcmp.eq.s32.totalorder %v2002_v49, 2  ;;  %vm2316_vm6 = vcmp.eq.s32.totalorder %v2314_v7, 0 }
 0x41f   : > { %v2086_v61 = vshrl.u32 %v2068_v35, %v2084_v37  ;;  %v2089_v52 = vadd.s32 127, %v2088_v19  ;;  %5660 = vcosq.f32 %v2204_v51  ;;  %v2106_v37 = vand.u32 3, %v2105_v39 }
 0x420   : > { %5662 = vsinq.f32 %v2204_v51  ;;  %v5653_v23 = vpop.eup %5652  ;;  %v2210_v19 = vand.u32 3, %v2209_v27  ;;  %vm2319_vm7 = vcmp.eq.s32.totalorder %v2314_v7, 2  ;;  %vm2315_vm11 = vcmp.lt.s32.totalorder %v2314_v7, 2 }
 0x421   : > { %v2087_v11 = vor.u32 %v2086_v61, %v2085_v31  ;;  %v2090_v21 = vshll.u32 %v2089_v52, 23  ;;  %v5655_v28 = vpop.eup %5654  ;;  %v2008_v36 = vxor.u32 2147483648, %v5653_v23  ;;  %vm2111_vm8 = vcmp.eq.s32.totalorder %v2106_v37, 2 }
 0x422   : > { %v2005_v54 = vxor.u32 2147483648, %v5655_v28  ;;  %vm2212_vm9 = vcmp.eq.s32.totalorder %v2210_v19, 0  ;;  %vm2215_vm10 = vcmp.eq.s32.totalorder %v2210_v19, 2  ;;  %vm2108_vm12 = vcmp.eq.s32.totalorder %v2106_v37, 0 }
 0x423   : > { %v2091_v15 = vor.u32 4788187, %v2090_v21  ;;  %v2094_v40 = vcvt.s32.f32 %v2087_v11  ;;  %v2009_v52 = vsel %vm2007_vm5, %v2008_v36, %v5655_v28  ;;  %vm2107_vm14 = vcmp.lt.s32.totalorder %v2106_v37, 2 }
 0x424   : > { %v2006_v61 = vsel %vm2004_vm4, %v5653_v23, %v2005_v54  ;;  %vm2211_vm15 = vcmp.lt.s32.totalorder %v2210_v19, 2 }
 0x425   : > { %v2092_v8 = vand.u32 2147483647, %v2091_v15  ;;  %v2010_v0 = vsel %vm2003_vm3, %v2006_v61, %v2009_v52  ;;  %vm2208_vm3 = vweird.f32 %v6494_v2 }
 0x426   : > { %v2011_v53 = vsel %vm2000_vm13, nan, %v2010_v0 }
 0x427   : > { %v2095_v3 = vmul.f32 %v2094_v40, %v2092_v8  ;;  %v5657_v60 = vpop.eup %5656 }
 0x428   : > { %v5659_v1 = vpop.eup %5658  ;;  %v2320_v35 = vxor.u32 2147483648, %v5657_v60 }
 0x429   : > { %v2096_v34 = vxor.u32 2147483648, %v2095_v3  ;;  %v5661_v5 = vpop.eup %5660  ;;  %v2317_v43 = vxor.u32 2147483648, %v5659_v1 }
 0x42a   : > { %v5663_v57 = vpop.eup %5662  ;;  %v2216_v38 = vxor.u32 2147483648, %v5661_v5  ;;  %v2321_v9 = vsel %vm2319_vm7, %v2320_v35, %v5659_v1 }
 0x42b   : > { %v2097_v41 = vsel %vm2014_vm0, %v2096_v34, %v2095_v3  ;;  %v2213_v48 = vxor.u32 2147483648, %v5663_v57  ;;  %v2318_v30 = vsel %vm2316_vm6, %v5657_v60, %v2317_v43  ;;  %vm2104_vm0 = vweird.f32 %v6504_v17 }
 0x42c   : > { %v2100_v22 = vsel %vm2013_vm1, %v6504_v17, %v2097_v41  ;;  %v2217_v15 = vsel %vm2215_vm10, %v2216_v38, %v5663_v57  ;;  %v2322_v51 = vsel %vm2315_vm11, %v2318_v30, %v2321_v9  ;;  %vm2312_vm1 = vweird.f32 %v6500_v59  ;;  %v2340_v59 = vpop.permute.xlu0 %2339  ;;  %v2345_v17 = vpop.permute.xlu1 %2344 }
 0x42d   : > { %5664 = vcosq.f32 %v2100_v22  ;;  %v2214_v58 = vsel %vm2212_vm9, %v5661_v5, %v2213_v48  ;;  %v2323_v3 = vsel %vm2312_vm1, nan, %v2322_v51 }
 0x42e   : > { %5666 = vsinq.f32 %v2100_v22  ;;  %v2218_v40 = vsel %vm2211_vm15, %v2214_v58, %v2217_v15 }
 0x42f   : > { %v2219_v47 = vsel %vm2208_vm3, nan, %v2218_v40 }
 0x430   : > { %v2331_v34 = vpack.c.bf16 %v2323_v3, %v2219_v47  ;;  %v2350_v24 = vpop.permute.xlu0 %2349  ;;  %v2355_v42 = vpop.permute.xlu1 %2354 }
 0x437   : > { %v5665_v31 = vpop.eup %5664 }
 0x438   : > { %v5667_v11 = vpop.eup %5666  ;;  %v2112_v21 = vxor.u32 2147483648, %v5665_v31 }
 0x439   : > { %v2109_v62 = vxor.u32 2147483648, %v5667_v11 }
 0x43a   : > { %v2113_v4 = vsel %vm2111_vm8, %v2112_v21, %v5667_v11 }
 0x43b   : > { %v2110_v56 = vsel %vm2108_vm12, %v5665_v31, %v2109_v62 }
 0x43c   : > { %v2114_v8 = vsel %vm2107_vm14, %v2110_v56, %v2113_v4 }
 0x43d   : > { %v2115_v44 = vsel %vm2104_vm0, nan, %v2114_v8 }
 0x43e   : > { %v2330_v32 = vpack.c.bf16 %v2115_v44, %v2011_v53  ;;  %v5620_v53 = vld [vmem:[%s8318_s6 + $0x20] sm:$0xff]  }
 0x43f   : > { %5387 = vmatprep.mubr.msk.bf16.mxu0 %vm1329_vm2, %v5620_v53 }
 0x440   : > { %5375 = vmatprep.subr.bf16.mxu1 %v2330_v32 }
 0x441   : > { %5376 = vmatpush3.bf16.msra.mxu1 %v2330_v32 }
 0x442   : > { %5377 = vmatprep.subr.bf16.mxu1 %v2331_v34 }
 0x445   : > { %5378 = vmatpush3.bf16.msra.mxu1 %v2331_v34 }
 0x448   : > { %5380 = vmatmul.mubr.msk.bf16.vlgmr.msra.gmra.mrb[12].mxu1 %vm1329_vm2, %v5619_v20 }
 0x51b   : > { %v5381_v50 = vpop.f32.mrb[12].mxu1 }
 0x51c   : > { %v2416_v41 = vadd.f32 %v5381_v50, %v2350_v24  ;;  %v2407_v2 = vpop.f32.mrb[13].mxu1 }
 0x51d   : > { %v2408_v22 = vadd.f32 %v2407_v2, %v2340_v59  ;;  %v5382_v23 = vpop.f32.mrb[14].mxu1 }
 0x51e   : > { %v6782_v13 = vmul.f32 %v2422_v10, %v2416_v41  ;;  %v2419_v26 = vadd.f32 %v5382_v23, %v2355_v42  ;;  %v2410_v29 = vpop.f32.mrb[15].mxu1 }
 0x51f   : > { %v6784_v28 = vmul.f32 %v2422_v10, %v2408_v22  ;;  %v2411_v39 = vadd.f32 %v2410_v29, %v2345_v17 }
 0x520   : > { %v2635_v55 = vand.u32 2147483647, %v6782_v13  ;;  %v2638_v60 = vand.u32 2139095040, %v6782_v13  ;;  %v6788_v1 = vmul.f32 %v2422_v10, %v2419_v26 }
 0x521   : > { %v2427_v27 = vand.u32 2147483647, %v6784_v28  ;;  %v2430_v5 = vand.u32 2139095040, %v6784_v28  ;;  %v6798_v37 = vmul.f32 %v2422_v10, %v2411_v39 }
 0x522   : > { %v2639_v49 = vshrl.u32 %v2638_v60, 23  ;;  %v2642_v57 = vand.u32 8388607, %v2635_v55  ;;  %v2742_v36 = vand.u32 2139095040, %v6788_v1  ;;  %v2739_v35 = vand.u32 2147483647, %v6788_v1 }
 0x523   : > { %v2431_v7 = vshrl.u32 %v2430_v5, 23  ;;  %v2434_v54 = vand.u32 8388607, %v2427_v27  ;;  %v2534_v11 = vand.u32 2139095040, %v6798_v37 }
 0x524   : > { %v5152_v43 = vadd.s32 4294967169, %v2639_v49  ;;  %v2643_v19 = vor.u32 8388608, %v2642_v57  ;;  %v2743_v38 = vshrl.u32 %v2742_v36, 23  ;;  %v6802_v9 = vand.u32 8388607, %v2739_v35 }
 0x525   : > { %v5144_v48 = vadd.s32 4294967169, %v2431_v7  ;;  %v2435_v61 = vor.u32 8388608, %v2434_v54  ;;  %v6819_v47 = vshrl.u32 %v2534_v11, 23 }
 0x526   : > { %v2645_v31 = vadd.s32 1, %v5152_v43  ;;  %v5156_v30 = vadd.s32 4294967169, %v2743_v38  ;;  %v6805_v62 = vshll.u32 %v2643_v19, 8  ;;  %v2747_v8 = vor.u32 8388608, %v6802_v9 }
 0x527   : > { %v2437_v52 = vadd.s32 1, %v5144_v48  ;;  %v6807_v4 = vshll.u32 %v2435_v61, 8 }
 0x528   : > { %vm2646_vm4 = vcmp.gt.s32.totalorder %v2645_v31, 0  ;;  %v6812_v40 = vadd.s32 1, %v5156_v30 }
 0x529   : > { %v2647_v21 = vsel %vm2646_vm4, %v2645_v31, 0  ;;  %vm2438_vm5 = vcmp.gt.s32.totalorder %v2437_v52, 0 }
 0x52a   : > { %v2648_v58 = vshrl.u32 %v2647_v21, 5  ;;  %v2649_v15 = vand.u32 31, %v2647_v21  ;;  %v2439_v0 = vsel %vm2438_vm5, %v2437_v52, 0  ;;  %vm2750_vm10 = vcmp.gt.s32.totalorder %v6812_v40, 0 }
 0x52b   : > { %v6809_v51 = vshrl.u32 %v2439_v0, 5  ;;  %v2441_v56 = vand.u32 31, %v2439_v0 }
 0x52c   : > { %v2650_v44 = vsub.s32 32, %v2649_v15  ;;  %v2652_v3 = vshll.u32 %v5833_v6, %v2649_v15  ;;  %v2655_v32 = vshll.u32 %v5834_v12, %v2649_v15  ;;  %v2658_v34 = vshll.u32 %v5835_v14, %v2649_v15 }
 0x52d   : > { %v2661_v20 = vshll.u32 %v5836_v16, %v2649_v15  ;;  %v2664_v59 = vshll.u32 %v5837_v18, %v2649_v15  ;;  %vm2667_vm6 = vcmp.lt.s32.totalorder %v2648_v58, 1  ;;  %vm2668_vm7 = vcmp.lt.s32.totalorder %v2648_v58, 2 }
 0x52e   : > { %v2653_v17 = vshrl.u32 %v5834_v12, %v2650_v44  ;;  %v2656_v24 = vshrl.u32 %v5835_v14, %v2650_v44  ;;  %v2659_v50 = vshrl.u32 %v5836_v16, %v2650_v44  ;;  %v2651_v10 = vshrl.u32 %v5833_v6, %v2650_v44 }
 0x52f   : > { %v2662_v41 = vshrl.u32 %v5837_v18, %v2650_v44  ;;  %v2665_v2 = vshrl.u32 %v5838_v25, %v2650_v44  ;;  %vm2669_vm8 = vcmp.lt.s32.totalorder %v2648_v58, 3  ;;  %v2442_v26 = vsub.s32 32, %v2441_v56 }
 0x530   : > { %v2654_v42 = vor.u32 %v2653_v17, %v2652_v3  ;;  %v2657_v22 = vor.u32 %v2656_v24, %v2655_v32  ;;  %v2660_v23 = vor.u32 %v2659_v50, %v2658_v34  ;;  %vm2670_vm9 = vcmp.lt.s32.totalorder %v2648_v58, 4 }
 0x531   : > { %v2663_v29 = vor.u32 %v2662_v41, %v2661_v20  ;;  %v2666_v60 = vor.u32 %v2665_v2, %v2664_v59  ;;  %v2444_v39 = vshll.u32 %v5833_v6, %v2441_v56  ;;  %v2447_v19 = vshll.u32 %v5834_v12, %v2441_v56 }
 0x532   : > { %v2671_v5 = vsel %vm2667_vm6, %v2651_v10, %v2654_v42  ;;  %v2672_v49 = vsel %vm2670_vm9, %v2660_v23, 2102212464  ;;  %v2675_v57 = vsel %vm2667_vm6, %v2654_v42, %v2657_v22  ;;  %v2679_v7 = vsel %vm2667_vm6, %v2657_v22, %v2660_v23 }
 0x533   : > { %v2673_v54 = vsel %vm2669_vm8, %v2657_v22, %v2672_v49  ;;  %v2676_v36 = vsel %vm2670_vm9, %v2663_v29, 920167782  ;;  %v2680_v43 = vsel %vm2670_vm9, %v2666_v60, 1326507024  ;;  %v2443_v31 = vshrl.u32 %v5833_v6, %v2442_v26 }
 0x534   : > { %v2677_v48 = vsel %vm2669_vm8, %v2660_v23, %v2676_v36  ;;  %v2681_v38 = vsel %vm2669_vm8, %v2663_v29, %v2680_v43  ;;  %v2445_v61 = vshrl.u32 %v5834_v12, %v2442_v26  ;;  %v2674_v52 = vsel %vm2668_vm7, %v2671_v5, %v2673_v54 }
 0x535   : > { %v2678_v30 = vsel %vm2668_vm7, %v2675_v57, %v2677_v48  ;;  %v2682_v11 = vsel %vm2668_vm7, %v2679_v7, %v2681_v38  ;;  %v2448_v21 = vshrl.u32 %v5835_v14, %v2442_v26  ;;  %v2450_v34 = vshll.u32 %v5835_v14, %v2441_v56 }
 0x536   : > { %v6847_v15 = vmul.u32.u64.low %v6805_v62, %v2682_v11  ;;  %v6848_v0 = vmul.u32.u64.high %v6805_v62, %v2682_v11, %v6847_v15  ;;  %v6851_v53 = vmul.u32.u64.low %v6805_v62, %v2678_v30  ;;  %v6852_v44 = vmul.u32.u64.high %v6805_v62, %v2678_v30, %v6851_v53 }
 0x537   : > { %v2446_v3 = vor.u32 %v2445_v61, %v2444_v39  ;;  %v2449_v32 = vor.u32 %v2448_v21, %v2447_v19  ;;  %v2451_v20 = vshrl.u32 %v5836_v16, %v2442_v26  ;;  %v2690_v58 = vmul.u32 %v6805_v62, %v2674_v52 }
 0x538   : > { %v2453_v59 = vshll.u32 %v5836_v16, %v2441_v56  ;;  %v2454_v17 = vshrl.u32 %v5837_v18, %v2442_v26  ;;  %v2457_v24 = vshrl.u32 %v5838_v25, %v2442_v26  ;;  %v2456_v10 = vshll.u32 %v5837_v18, %v2441_v56 }
 0x539   : > { %v2452_v50 = vor.u32 %v2451_v20, %v2450_v34  ;;  %vm2459_vm11 = vcmp.lt.s32.totalorder %v6809_v51, 1  ;;  %vm2460_vm12 = vcmp.lt.s32.totalorder %v6809_v51, 2  ;;  %vm2692_vm13 = vc.u32 %v6848_v0, %v6851_v53 }
 0x53a   : > { %v2693_v41 = vadd.s32 1, %v6852_v44  ;;  %v2455_v2 = vor.u32 %v2454_v17, %v2453_v59  ;;  %vm2461_vm14 = vcmp.lt.s32.totalorder %v6809_v51, 3  ;;  %v2458_v62 = vor.u32 %v2457_v24, %v2456_v10 }
 0x53b   : > { %vm2462_vm15 = vcmp.lt.s32.totalorder %v6809_v51, 4  ;;  %v2463_v42 = vsel %vm2459_vm11, %v2443_v31, %v2446_v3  ;;  %v2467_v22 = vsel %vm2459_vm11, %v2446_v3, %v2449_v32  ;;  %v2471_v29 = vsel %vm2459_vm11, %v2449_v32, %v2452_v50 }
 0x53c   : > { %v2694_v23 = vsel %vm2692_vm13, %v2693_v41, %v6852_v44  ;;  %v2464_v56 = vsel %vm2462_vm15, %v2452_v50, 2102212464  ;;  %v2468_v26 = vsel %vm2462_vm15, %v2455_v2, 920167782  ;;  %v2472_v49 = vsel %vm2462_vm15, %v2458_v62, 1326507024 }
 0x53d   : > { %v2695_v60 = vadd.s32 %v2694_v23, %v2690_v58  ;;  %v2465_v39 = vsel %vm2461_vm14, %v2449_v32, %v2464_v56  ;;  %v2469_v5 = vsel %vm2461_vm14, %v2452_v50, %v2468_v26  ;;  %v2473_v54 = vsel %vm2461_vm14, %v2455_v2, %v2472_v49 }
 0x53e   : > { %v2466_v57 = vsel %vm2460_vm12, %v2463_v42, %v2465_v39  ;;  %v2470_v7 = vsel %vm2460_vm12, %v2467_v22, %v2469_v5  ;;  %v2751_v36 = vsel %vm2750_vm10, %v6812_v40, 0  ;;  %v2474_v19 = vsel %vm2460_vm12, %v2471_v29, %v2473_v54 }
 0x53f   : > { %v2696_v43 = vadd.s32 536870912, %v2695_v60  ;;  %v6880_v48 = vmul.u32.u64.low %v6807_v4, %v2470_v7  ;;  %v6881_v38 = vmul.u32.u64.high %v6807_v4, %v2470_v7, %v6880_v48  ;;  %v2752_v52 = vshrl.u32 %v2751_v36, 5 }
 0x540   : > { %v6885_v31 = vmul.u32.u64.low %v6807_v4, %v2474_v19  ;;  %v6886_v61 = vmul.u32.u64.high %v6807_v4, %v2474_v19, %v6885_v31  ;;  %v2753_v11 = vand.u32 31, %v2751_v36  ;;  %v2482_v21 = vmul.u32 %v6807_v4, %v2466_v57 }
 0x541   : > { %v6888_v30 = vshrl.u32 %v2696_v43, 30  ;;  %v6893_v40 = vshll.u32 %v2747_v8, 8  ;;  %v2485_v15 = vadd.s32 1, %v6881_v38  ;;  %v5148_v3 = vadd.s32 4294967169, %v6819_v47 }
 0x542   : > { %v2754_v44 = vsub.s32 32, %v2753_v11  ;;  %vm2484_vm0 = vc.u32 %v6886_v61, %v6880_v48  ;;  %v2756_v32 = vshll.u32 %v5833_v6, %v2753_v11  ;;  %v2759_v34 = vshll.u32 %v5834_v12, %v2753_v11 }
 0x543   : > { %v2698_v51 = vshll.u32 %v6888_v30, 30  ;;  %vm2771_vm1 = vcmp.lt.s32.totalorder %v2752_v52, 1  ;;  %v2486_v9 = vsel %vm2484_vm0, %v2485_v15, %v6881_v38  ;;  %v2762_v20 = vshll.u32 %v5835_v14, %v2753_v11 }
 0x544   : > { %v2757_v8 = vshrl.u32 %v5834_v12, %v2754_v44  ;;  %v2487_v58 = vadd.s32 %v2486_v9, %v2482_v21  ;;  %v2760_v59 = vshrl.u32 %v5835_v14, %v2754_v44  ;;  %v2763_v47 = vshrl.u32 %v5836_v16, %v2754_v44 }
 0x545   : > { %v6902_v4 = vsub.s32 %v2695_v60, %v2698_v51  ;;  %v2765_v17 = vshll.u32 %v5836_v16, %v2753_v11  ;;  %v2766_v10 = vshrl.u32 %v5837_v18, %v2754_v44  ;;  %v2768_v41 = vshll.u32 %v5837_v18, %v2753_v11 }
 0x546   : > { %v2758_v50 = vor.u32 %v2757_v8, %v2756_v32  ;;  %v2488_v2 = vadd.s32 536870912, %v2487_v58  ;;  %v2761_v62 = vor.u32 %v2760_v59, %v2759_v34  ;;  %v2764_v42 = vor.u32 %v2763_v47, %v2762_v20 }
 0x547   : > { %v2701_v24 = vsub.s32 0, %v6902_v4  ;;  %v2769_v22 = vshrl.u32 %v5838_v25, %v2754_v44  ;;  %v2767_v23 = vor.u32 %v2766_v10, %v2765_v17  ;;  %vm2772_vm3 = vcmp.lt.s32.totalorder %v2752_v52, 2 }
 0x548   : > { %vm2773_vm4 = vcmp.lt.s32.totalorder %v2752_v52, 3  ;;  %vm2774_vm5 = vcmp.lt.s32.totalorder %v2752_v52, 4  ;;  %v6914_v56 = vshrl.u32 %v2488_v2, 30  ;;  %v2779_v60 = vsel %vm2771_vm1, %v2758_v50, %v2761_v62 }
 0x549   : > { %v2770_v26 = vor.u32 %v2769_v22, %v2768_v41  ;;  %v2776_v29 = vsel %vm2774_vm5, %v2764_v42, 2102212464  ;;  %v2755_v39 = vshrl.u32 %v5833_v6, %v2754_v44  ;;  %v2780_v5 = vsel %vm2774_vm5, %v2767_v23, 920167782 }
 0x54a   : > { %v2783_v49 = vsel %vm2771_vm1, %v2761_v62, %v2764_v42  ;;  %v2541_v57 = vadd.s32 1, %v5148_v3  ;;  %v5153_v7 = vmin.u32 %v2701_v24, %v6902_v4  ;;  %v2490_v54 = vshll.u32 %v6914_v56, 30 }
 0x54b   : > { %v2781_v36 = vsel %vm2773_vm4, %v2764_v42, %v2780_v5  ;;  %v2784_v43 = vsel %vm2774_vm5, %v2770_v26, 1326507024  ;;  %v2775_v19 = vsel %vm2771_vm1, %v2755_v39, %v2758_v50  ;;  %v2777_v38 = vsel %vm2773_vm4, %v2761_v62, %v2776_v29 }
 0x54c   : > { %v2782_v31 = vsel %vm2772_vm3, %v2779_v60, %v2781_v36  ;;  %v2785_v11 = vsel %vm2773_vm4, %v2767_v23, %v2784_v43  ;;  %v6926_v21 = vsub.s32 %v2487_v58, %v2490_v54  ;;  %vm2542_vm6 = vcmp.gt.s32.totalorder %v2541_v57, 0 }
 0x54d   : > { %v2786_v51 = vsel %vm2772_vm3, %v2783_v49, %v2785_v11  ;;  %v6930_v15 = vmul.u32.u64.low %v6893_v40, %v2782_v31  ;;  %v6931_v44 = vmul.u32.u64.high %v6893_v40, %v2782_v31, %v6930_v15  ;;  %v2778_v9 = vsel %vm2772_vm3, %v2775_v19, %v2777_v38 }
 0x54e   : > { %v6935_v3 = vmul.u32.u64.low %v6893_v40, %v2786_v51  ;;  %v6936_v32 = vmul.u32.u64.high %v6893_v40, %v2786_v51, %v6935_v3  ;;  %v2493_v34 = vsub.s32 0, %v6926_v21  ;;  %v2543_v8 = vsel %vm2542_vm6, %v2541_v57, 0 }
 0x54f   : > { %v2531_v20 = vand.u32 2147483647, %v6798_v37  ;;  %v2703_v58 = vclz %v5153_v7  ;;  %v2797_v47 = vadd.s32 1, %v6931_v44  ;;  %v2545_v17 = vand.u32 31, %v2543_v8 }
 0x550   : > { %v5145_v59 = vmin.u32 %v2493_v34, %v6926_v21  ;;  %v2794_v24 = vmul.u32 %v6893_v40, %v2778_v9  ;;  %vm2796_vm7 = vc.u32 %v6936_v32, %v6930_v15  ;;  %v2544_v39 = vshrl.u32 %v2543_v8, 5 }
 0x551   : > { %v2798_v10 = vsel %vm2796_vm7, %v2797_v47, %v6931_v44  ;;  %v2546_v41 = vsub.s32 32, %v2545_v17  ;;  %v5154_v2 = vadd.s32 4294967294, %v2703_v58  ;;  %v2538_v62 = vand.u32 8388607, %v2531_v20 }
 0x552   : > { %v2495_v50 = vclz %v5145_v59  ;;  %v2799_v52 = vadd.s32 %v2798_v10, %v2794_v24  ;;  %v2548_v5 = vshll.u32 %v5833_v6, %v2545_v17  ;;  %v2551_v57 = vshll.u32 %v5834_v12, %v2545_v17 }
 0x553   : > { %v2549_v23 = vshrl.u32 %v5834_v12, %v2546_v41  ;;  %v2552_v40 = vshrl.u32 %v5835_v14, %v2546_v41  ;;  %v2555_v29 = vshrl.u32 %v5836_v16, %v2546_v41  ;;  %vm5155_vm8 = vcmp.lt.s32.totalorder %v5154_v2, 0 }
 0x554   : > { %v2800_v42 = vadd.s32 536870912, %v2799_v52  ;;  %v5146_v22 = vadd.s32 4294967294, %v2495_v50  ;;  %v2539_v60 = vor.u32 8388608, %v2538_v62  ;;  %v2554_v7 = vshll.u32 %v5835_v14, %v2545_v17 }
 0x555   : > { %v2558_v54 = vshrl.u32 %v5837_v18, %v2546_v41  ;;  %v2550_v36 = vor.u32 %v2549_v23, %v2548_v5  ;;  %v2557_v43 = vshll.u32 %v5836_v16, %v2545_v17  ;;  %v2561_v19 = vshrl.u32 %v5838_v25, %v2546_v41 }
 0x556   : > { %v6950_v26 = vshrl.u32 %v2800_v42, 30  ;;  %vm5147_vm9 = vcmp.lt.s32.totalorder %v5146_v22, 0  ;;  %v2553_v31 = vor.u32 %v2552_v40, %v2551_v57  ;;  %v2556_v11 = vor.u32 %v2555_v29, %v2554_v7 }
 0x557   : > { %v2560_v51 = vshll.u32 %v5837_v18, %v2545_v17  ;;  %v2559_v44 = vor.u32 %v2558_v54, %v2557_v43  ;;  %v2498_v3 = vsel %vm5147_vm9, 0, %v5146_v22  ;;  %v6966_v8 = vsel %vm5155_vm8, 0, %v5154_v2 }
 0x558   : > { %v2802_v49 = vshll.u32 %v6950_v26, 30  ;;  %vm2563_vm10 = vcmp.lt.s32.totalorder %v2544_v39, 1  ;;  %vm2566_vm11 = vcmp.lt.s32.totalorder %v2544_v39, 4  ;;  %v2579_v58 = vshll.u32 %v2539_v60, 8 }
 0x559   : > { %v2562_v9 = vor.u32 %v2561_v19, %v2560_v51  ;;  %v2547_v47 = vshrl.u32 %v5833_v6, %v2546_v41  ;;  %v2568_v24 = vsel %vm2566_vm11, %v2556_v11, 2102212464  ;;  %v2571_v50 = vsel %vm2563_vm10, %v2550_v36, %v2553_v31 }
 0x55a   : > { %v6961_v38 = vsub.s32 %v2799_v52, %v2802_v49  ;;  %v2503_v10 = vsub.s32 4294967266, %v2498_v3  ;;  %vm2564_vm12 = vcmp.lt.s32.totalorder %v2544_v39, 2  ;;  %vm2565_vm13 = vcmp.lt.s32.totalorder %v2544_v39, 3 }
 0x55b   : > { %v2572_v17 = vsel %vm2566_vm11, %v2559_v44, 920167782  ;;  %v2575_v42 = vsel %vm2563_vm10, %v2553_v31, %v2556_v11  ;;  %v2576_v22 = vsel %vm2566_vm11, %v2562_v9, 1326507024  ;;  %v2567_v23 = vsel %vm2563_vm10, %v2547_v47, %v2550_v36 }
 0x55c   : > { %v2805_v34 = vsub.s32 0, %v6961_v38  ;;  %v2573_v62 = vsel %vm2565_vm13, %v2556_v11, %v2572_v17  ;;  %v2569_v2 = vsel %vm2565_vm13, %v2553_v31, %v2568_v24  ;;  %v2577_v29 = vsel %vm2565_vm13, %v2559_v44, %v2576_v22 }
 0x55d   : > { %v2574_v40 = vsel %vm2564_vm12, %v2571_v50, %v2573_v62  ;;  %v2578_v5 = vsel %vm2564_vm12, %v2575_v42, %v2577_v29  ;;  %v2711_v57 = vsub.s32 4294967266, %v6966_v8  ;;  %v2504_v43 = vadd.s32 127, %v2503_v10 }
 0x55e   : > { %v5157_v59 = vmin.u32 %v2805_v34, %v6961_v38  ;;  %v6972_v49 = vmul.u32.u64.low %v2579_v58, %v2574_v40  ;;  %v6973_v41 = vmul.u32.u64.high %v2579_v58, %v2574_v40, %v6972_v49  ;;  %v2570_v36 = vsel %vm2564_vm12, %v2567_v23, %v2569_v2 }
 0x55f   : > { %v6977_v7 = vmul.u32.u64.low %v2579_v58, %v2578_v5  ;;  %v6978_v54 = vmul.u32.u64.high %v2579_v58, %v2578_v5, %v6977_v7  ;;  %v2499_v31 = vsub.s32 32, %v2498_v3  ;;  %v2712_v51 = vadd.s32 127, %v2711_v57 }
 0x560   : > { %v2807_v52 = vclz %v5157_v59  ;;  %v2483_v44 = vadd.s32 %v6880_v48, %v6886_v61  ;;  %v2589_v34 = vadd.s32 1, %v6973_v41  ;;  %v2505_v9 = vshll.u32 %v2504_v43, 23 }
 0x561   : > { %vm2588_vm15 = vc.u32 %v6978_v54, %v6972_v49  ;;  %v2586_v24 = vmul.u32 %v2579_v58, %v2570_v36  ;;  %v2707_v50 = vsub.s32 32, %v6966_v8  ;;  %v2795_v17 = vadd.s32 %v6930_v15, %v6936_v32 }
 0x562   : > { %v5158_v60 = vadd.s32 4294967294, %v2807_v52  ;;  %v2590_v39 = vsel %vm2588_vm15, %v2589_v34, %v6973_v41  ;;  %v2501_v10 = vshrl.u32 %v2483_v44, %v2499_v31  ;;  %v2691_v48 = vadd.s32 %v6851_v53, %v6848_v0 }
 0x563   : > { %v2591_v62 = vadd.s32 %v2590_v39, %v2586_v24  ;;  %v2713_v61 = vshll.u32 %v2712_v51, 23  ;;  %v2500_v42 = vshll.u32 %v6926_v21, %v2498_v3  ;;  %v2506_v22 = vor.u32 4788187, %v2505_v9 }
 0x564   : > { %vm5159_vm14 = vcmp.lt.s32.totalorder %v5158_v60, 0  ;;  %v2709_v58 = vshrl.u32 %v2691_v48, %v2707_v50  ;;  %v2708_v15 = vshll.u32 %v6902_v4, %v6966_v8  ;;  %vm2429_vm0 = vcmp.lt.s32.totalorder %v6784_v28, 0 }
 0x565   : > { %v2810_v19 = vsel %vm5159_vm14, 0, %v5158_v60  ;;  %v2592_v2 = vadd.s32 536870912, %v2591_v62  ;;  %v2502_v40 = vor.u32 %v2501_v10, %v2500_v42  ;;  %v2714_v32 = vor.u32 4788187, %v2713_v61 }
 0x566   : > { %v2815_v11 = vsub.s32 4294967266, %v2810_v19  ;;  %v2811_v59 = vsub.s32 32, %v2810_v19  ;;  %v2812_v29 = vshll.u32 %v6961_v38, %v2810_v19  ;;  %v2507_v41 = vand.u32 2147483647, %v2506_v22 }
 0x567   : > { %v6994_v5 = vshrl.u32 %v2592_v2, 30  ;;  %v2710_v53 = vor.u32 %v2709_v58, %v2708_v15  ;;  %v2509_v21 = vcvt.s32.f32 %v2502_v40  ;;  %v2715_v43 = vand.u32 2147483647, %v2714_v32 }
 0x568   : > { %v2816_v47 = vadd.s32 127, %v2815_v11  ;;  %v2813_v23 = vshrl.u32 %v2795_v17, %v2811_v59  ;;  %vm7004_vm3 = vcmp.le.f32.partialorder %v2427_v27, 0.7853982  ;;  %vm2741_vm4 = vcmp.lt.s32.totalorder %v6788_v1, 0 }
 0x569   : > { %v2594_v0 = vshll.u32 %v6994_v5, 30  ;;  %v2510_v36 = vmul.f32 %v2509_v21, %v2507_v41  ;;  %v2717_v38 = vcvt.s32.f32 %v2710_v53  ;;  %v2587_v10 = vadd.s32 %v6972_v49, %v6978_v54 }
 0x56a   : > { %v2817_v52 = vshll.u32 %v2816_v47, 23  ;;  %v2814_v57 = vor.u32 %v2813_v23, %v2812_v29  ;;  %vm2637_vm5 = vcmp.lt.s32.totalorder %v6782_v13, 0  ;;  %vm7019_vm6 = vcmp.le.f32.partialorder %v2739_v35, 0.7853982 }
 0x56b   : > { %v2595_v7 = vsub.s32 %v2591_v62, %v2594_v0  ;;  %v2718_v44 = vmul.f32 %v2717_v38, %v2715_v43  ;;  %v2511_v34 = vxor.u32 2147483648, %v2510_v36  ;;  %vm7027_vm7 = vcmp.le.f32.partialorder %v2635_v55, 0.7853982 }
 0x56c   : > { %v2818_v60 = vor.u32 4788187, %v2817_v52  ;;  %v2821_v31 = vcvt.s32.f32 %v2814_v57  ;;  %v2513_v2 = vsub.s32 4, %v6914_v56  ;;  %v2825_v40 = vsub.s32 4, %v6950_v26 }
 0x56d   : > { %v2597_v11 = vsub.s32 0, %v2595_v7  ;;  %v2719_v59 = vxor.u32 2147483648, %v2718_v44  ;;  %v2512_v47 = vsel %vm2429_vm0, %v2511_v34, %v2510_v36  ;;  %v2721_v29 = vsub.s32 4, %v6888_v30 }
 0x56e   : > { %v2819_v3 = vand.u32 2147483647, %v2818_v60  ;;  %v2515_v27 = vsel %vm7004_vm3, %v6784_v28, %v2512_v47  ;;  %v2514_v32 = vsel %vm2429_vm0, %v2513_v2, %v6914_v56  ;;  %v2826_v41 = vsel %vm2741_vm4, %v2825_v40, %v6950_v26 }
 0x56f   : > { %v5149_v51 = vmin.u32 %v2597_v11, %v2595_v7  ;;  %v2720_v48 = vsel %vm2637_vm5, %v2719_v59, %v2718_v44  ;;  %5668 = vcosq.f32 %v2515_v27  ;;  %v2617_v0 = vsub.s32 4, %v6994_v5 }
 0x570   : > { %v2822_v19 = vmul.f32 %v2821_v31, %v2819_v3  ;;  %v2723_v58 = vsel %vm7027_vm7, %v6782_v13, %v2720_v48  ;;  %5670 = vsinq.f32 %v2515_v27  ;;  %v2516_v53 = vsel %vm7004_vm3, 0, %v2514_v32 }
 0x571   : > { %v2599_v9 = vclz %v5149_v51  ;;  %v2722_v21 = vsel %vm2637_vm5, %v2721_v29, %v6888_v30  ;;  %vm7056_vm8 = vcmp.le.f32.partialorder %v2531_v20, 0.7853982  ;;  %vm2533_vm9 = vcmp.lt.s32.totalorder %v6798_v37, 0 }
 0x572   : > { %v2823_v4 = vxor.u32 2147483648, %v2822_v19  ;;  %v2520_v36 = vadd.s32 3, %v2516_v53  ;;  %v2618_v31 = vsel %vm2533_vm9, %v2617_v0, %v6994_v5  ;;  %v2724_v30 = vsel %vm7027_vm7, 0, %v2722_v21 }
 0x573   : > { %v5150_v8 = vadd.s32 4294967294, %v2599_v9  ;;  %v2620_v44 = vsel %vm7056_vm8, 0, %v2618_v31  ;;  %v2728_v34 = vadd.s32 3, %v2724_v30  ;;  %vm2519_vm3 = vweird.f32 %v6784_v28 }
 0x574   : > { %v2824_v39 = vsel %vm2741_vm4, %v2823_v4, %v2822_v19  ;;  %v2521_v4 = vand.u32 3, %v2520_v36  ;;  %v2624_v24 = vadd.s32 3, %v2620_v44  ;;  %vm2831_vm7 = vweird.f32 %v6788_v1 }
 0x575   : > { %vm5151_vm1 = vcmp.lt.s32.totalorder %v5150_v8, 0  ;;  %v2827_v22 = vsel %vm7019_vm6, %v6788_v1, %v2824_v39 }
 0x576   : > { %v2602_v50 = vsel %vm5151_vm1, 0, %v5150_v8  ;;  %5672 = vcosq.f32 %v2827_v22  ;;  %vm2526_vm10 = vcmp.eq.s32.totalorder %v2521_v4, 2  ;;  %vm2523_vm11 = vcmp.eq.s32.totalorder %v2521_v4, 0 }
 0x577   : > { %v2603_v17 = vsub.s32 32, %v2602_v50  ;;  %v2607_v52 = vsub.s32 4294967266, %v2602_v50  ;;  %v2604_v61 = vshll.u32 %v2595_v7, %v2602_v50  ;;  %5674 = vsinq.f32 %v2827_v22 }
 0x578   : > { %5676 = vcosq.f32 %v2723_v58  ;;  %v2828_v7 = vsel %vm7019_vm6, 0, %v2826_v41  ;;  %v2625_v48 = vand.u32 3, %v2624_v24  ;;  %vm2522_vm0 = vcmp.lt.s32.totalorder %v2521_v4, 2 }
 0x579   : > { %v2605_v42 = vshrl.u32 %v2587_v10, %v2603_v17  ;;  %v2608_v49 = vadd.s32 127, %v2607_v52  ;;  %5678 = vsinq.f32 %v2723_v58  ;;  %v5669_v26 = vpop.eup %5668  ;;  %v2832_v19 = vadd.s32 3, %v2828_v7 }
 0x57a   : > { %v5671_v11 = vpop.eup %5670  ;;  %v2527_v8 = vxor.u32 2147483648, %v5669_v26  ;;  %v2729_v10 = vand.u32 3, %v2728_v34  ;;  %vm2630_vm4 = vcmp.eq.s32.totalorder %v2625_v48, 2  ;;  %vm2627_vm6 = vcmp.eq.s32.totalorder %v2625_v48, 0 }
 0x57b   : > { %v2606_v35 = vor.u32 %v2605_v42, %v2604_v61  ;;  %v2609_v23 = vshll.u32 %v2608_v49, 23  ;;  %v2833_v59 = vand.u32 3, %v2832_v19  ;;  %v2524_v47 = vxor.u32 2147483648, %v5671_v11 }
 0x57c   : > { %v2528_v27 = vsel %vm2526_vm10, %v2527_v8, %v5671_v11  ;;  %vm2731_vm14 = vcmp.eq.s32.totalorder %v2729_v10, 0  ;;  %vm2734_vm15 = vcmp.eq.s32.totalorder %v2729_v10, 2  ;;  %vm2730_vm5 = vcmp.lt.s32.totalorder %v2729_v10, 2 }
 0x57d   : > { %v2610_v55 = vor.u32 4788187, %v2609_v23  ;;  %v2613_v15 = vcvt.s32.f32 %v2606_v35  ;;  %vm2835_vm12 = vcmp.eq.s32.totalorder %v2833_v59, 0  ;;  %vm2838_vm13 = vcmp.eq.s32.totalorder %v2833_v59, 2 }
 0x57e   : > { %v2525_v62 = vsel %vm2523_vm11, %v5669_v26, %v2524_v47  ;;  %vm2834_vm1 = vcmp.lt.s32.totalorder %v2833_v59, 2  ;;  %vm2727_vm10 = vweird.f32 %v6782_v13 }
 0x57f   : > { %v2611_v60 = vand.u32 2147483647, %v2610_v55  ;;  %v2529_v23 = vsel %vm2522_vm0, %v2525_v62, %v2528_v27 }
 0x580   : > { %v5673_v20 = vpop.eup %5672 }
 0x581   : > { %v2614_v57 = vmul.f32 %v2613_v15, %v2611_v60  ;;  %v5675_v51 = vpop.eup %5674  ;;  %v2839_v39 = vxor.u32 2147483648, %v5673_v20  ;;  %v2530_v60 = vsel %vm2519_vm3, nan, %v2529_v23 }
 0x582   : > { %v5677_v9 = vpop.eup %5676  ;;  %v2836_v50 = vxor.u32 2147483648, %v5675_v51  ;;  %v7074_v28 = vadd.f32 %v2530_v60, %v6477_v46  ;;  %v5621_v46 = vld [vmem:[%s8318_s6 + $0x28] sm:$0xff]  }
 0x583   : > { %v2615_v3 = vxor.u32 2147483648, %v2614_v57  ;;  %v5679_v5 = vpop.eup %5678  ;;  %v2735_v52 = vxor.u32 2147483648, %v5677_v9  ;;  %v2840_v42 = vsel %vm2838_vm13, %v2839_v39, %v5675_v51 }
 0x584   : > { %v2732_v17 = vxor.u32 2147483648, %v5679_v5  ;;  %v2837_v61 = vsel %vm2835_vm12, %v5673_v20, %v2836_v50 }
 0x585   : > { %v2616_v43 = vsel %vm2533_vm9, %v2615_v3, %v2614_v57  ;;  %v2736_v22 = vsel %vm2734_vm15, %v2735_v52, %v5679_v5  ;;  %v2841_v58 = vsel %vm2834_vm1, %v2837_v61, %v2840_v42  ;;  %vm2623_vm9 = vweird.f32 %v6798_v37  ;;  %v5622_v42 = vld [vmem:[%s8318_s6 + $0x30] sm:$0xff]  }
 0x586   : > { %v2619_v38 = vsel %vm7056_vm8, %v6798_v37, %v2616_v43  ;;  %v2733_v54 = vsel %vm2731_vm14, %v5677_v9, %v2732_v17  ;;  %vm2626_vm8 = vcmp.lt.s32.totalorder %v2625_v48, 2  ;;  %v2842_v32 = vsel %vm2831_vm7, nan, %v2841_v58  ;;  %5395 = vmatprep.mubr.msk.bf16.mxu1 %vm1329_vm2, %v5622_v42 }
 0x587   : > { %5680 = vcosq.f32 %v2619_v38  ;;  %v2737_v29 = vsel %vm2730_vm5, %v2733_v54, %v2736_v22  ;;  %v7080_v21 = vadd.f32 %v2842_v32, %v6481_v45  ;;  %v2868_v45 = vpop.permute.xlu1 %2867 }
 0x588   : > { %5682 = vsinq.f32 %v2619_v38  ;;  %v2738_v0 = vsel %vm2727_vm10, nan, %v2737_v29 }
 0x589   : > { %v7085_v3 = vadd.f32 %v2738_v0, %v6486_v33  ;;  %v2945_v33 = vstv %s5160_s23  ;;  %s5841_s23 = smov [#allocation7]  }
 0x58a   : > { %s5767_s27 = sshll.u32 %s5841_s23, 4  ;;  %s5768_s27 = int_to_ptr.vmem [resolvable:$false] %s5767_s27 }
 0x58b   : > { %v2854_v13 = vpack.c.bf16 %v7080_v21, %v7085_v3  ;;  %v2878_v43 = vpop.permute.xlu1 %2877 }
 0x591   : > { %v5681_v49 = vpop.eup %5680 }
 0x592   : > { %v5683_v35 = vpop.eup %5682  ;;  %v2631_v2 = vxor.u32 2147483648, %v5681_v49 }
 0x593   : > { %v2628_v40 = vxor.u32 2147483648, %v5683_v35 }
 0x594   : > { %v2632_v55 = vsel %vm2630_vm4, %v2631_v2, %v5683_v35 }
 0x595   : > { %v2629_v15 = vsel %vm2627_vm6, %v5681_v49, %v2628_v40 }
 0x596   : > { %v2633_v41 = vsel %vm2626_vm8, %v2629_v15, %v2632_v55 }
 0x597   : > { %v2634_v57 = vsel %vm2623_vm9, nan, %v2633_v41 }
 0x598   : > { %v7077_v53 = vadd.f32 %v2634_v57, %v6479_v63  ;;  %v2863_v63 = vpop.permute.xlu0 %2862 }
 0x59a   : > { %v2853_v1 = vpack.c.bf16 %v7077_v53, %v7074_v28 }
 0x59c   : > { %5383 = vmatprep.subr.bf16.mxu0 %v2853_v1  ;;  %v2873_v37 = vpop.permute.xlu0 %2872 }
 0x59d   : > { %5384 = vmatpush3.bf16.msra.mxu0 %v2853_v1 }
 0x59e   : > { %5385 = vmatprep.subr.bf16.mxu0 %v2854_v13 }
 0x5a1   : > { %5386 = vmatpush3.bf16.msra.mxu0 %v2854_v13 }
 0x5a4   : > { %5388 = vmatmul.mubr.msk.bf16.vlgmr.msra.gmra.mrb[4].mxu0 %vm1329_vm2, %v5621_v46 }
 0x677   : > { %v5389_v7 = vpop.f32.mrb[4].mxu0 }
 0x678   : > { %v2939_v56 = vadd.f32 %v5389_v7, %v2873_v37  ;;  %v2930_v26 = vpop.f32.mrb[5].mxu0 }
 0x679   : > { %v2931_v36 = vadd.f32 %v2930_v26, %v2863_v63  ;;  %v5390_v31 = vpop.f32.mrb[6].mxu0 }
 0x67a   : > { %v7093_v30 = vmul.f32 %v2945_v33, %v2939_v56  ;;  %v2942_v11 = vadd.f32 %v5390_v31, %v2878_v43  ;;  %v2933_v38 = vpop.f32.mrb[7].mxu0 }
 0x67b   : > { %v7095_v19 = vmul.f32 %v2945_v33, %v2931_v36  ;;  %v2934_v20 = vadd.f32 %v2933_v38, %v2868_v45 }
 0x67c   : > { %v3158_v51 = vand.u32 2147483647, %v7093_v30  ;;  %v3161_v44 = vand.u32 2139095040, %v7093_v30  ;;  %v7099_v34 = vmul.f32 %v2945_v33, %v2942_v11 }
 0x67d   : > { %v2950_v9 = vand.u32 2147483647, %v7095_v19  ;;  %v2953_v4 = vand.u32 2139095040, %v7095_v19  ;;  %v7103_v5 = vmul.f32 %v2945_v33, %v2934_v20 }
 0x67e   : > { %v3162_v8 = vshrl.u32 %v3161_v44, 23  ;;  %v3165_v59 = vand.u32 8388607, %v3158_v51  ;;  %v3262_v47 = vand.u32 2147483647, %v7099_v34  ;;  %v3265_v39 = vand.u32 2139095040, %v7099_v34 }
 0x67f   : > { %v2954_v24 = vshrl.u32 %v2953_v4, 23  ;;  %v2957_v50 = vand.u32 8388607, %v2950_v9  ;;  %v3057_v62 = vand.u32 2139095040, %v7103_v5 }
 0x680   : > { %v5181_v10 = vadd.s32 4294967169, %v3162_v8  ;;  %v3166_v17 = vor.u32 8388608, %v3165_v59  ;;  %v3266_v27 = vshrl.u32 %v3265_v39, 23  ;;  %v7114_v61 = vand.u32 8388607, %v3262_v47 }
 0x681   : > { %v5173_v52 = vadd.s32 4294967169, %v2954_v24  ;;  %v2958_v49 = vor.u32 8388608, %v2957_v50  ;;  %v3058_v35 = vshrl.u32 %v3057_v62, 23 }
 0x682   : > { %v3168_v48 = vadd.s32 1, %v5181_v10  ;;  %v5185_v22 = vadd.s32 4294967169, %v3266_v27  ;;  %v7120_v2 = vshll.u32 %v3166_v17, 8  ;;  %v3270_v60 = vor.u32 8388608, %v7114_v61 }
 0x683   : > { %v2960_v54 = vadd.s32 1, %v5173_v52  ;;  %v5177_v58 = vadd.s32 4294967169, %v3058_v35  ;;  %v7125_v41 = vshll.u32 %v2958_v49, 8 }
 0x684   : > { %vm3169_vm11 = vcmp.gt.s32.totalorder %v3168_v48, 0  ;;  %v7127_v57 = vadd.s32 1, %v5185_v22 }
 0x685   : > { %v3170_v23 = vsel %vm3169_vm11, %v3168_v48, 0  ;;  %vm2961_vm12 = vcmp.gt.s32.totalorder %v2960_v54, 0  ;;  %v7131_v46 = vadd.s32 1, %v5177_v58 }
 0x686   : > { %v3171_v40 = vshrl.u32 %v3170_v23, 5  ;;  %v3172_v55 = vand.u32 31, %v3170_v23  ;;  %v2962_v29 = vsel %vm2961_vm12, %v2960_v54, 0  ;;  %vm3273_vm1 = vcmp.gt.s32.totalorder %v7127_v57, 0 }
 0x687   : > { %v7123_v15 = vshrl.u32 %v2962_v29, 5  ;;  %v2964_v32 = vand.u32 31, %v2962_v29  ;;  %vm3065_vm8 = vcmp.gt.s32.totalorder %v7131_v46, 0 }
 0x688   : > { %v3173_v0 = vsub.s32 32, %v3172_v55  ;;  %v3175_v1 = vshll.u32 %v5833_v6, %v3172_v55  ;;  %v3178_v13 = vshll.u32 %v5834_v12, %v3172_v55  ;;  %v3181_v63 = vshll.u32 %v5835_v14, %v3172_v55 }
 0x689   : > { %v3184_v45 = vshll.u32 %v5836_v16, %v3172_v55  ;;  %v3187_v37 = vshll.u32 %v5837_v18, %v3172_v55  ;;  %vm3190_vm13 = vcmp.lt.s32.totalorder %v3171_v40, 1  ;;  %vm3191_vm14 = vcmp.lt.s32.totalorder %v3171_v40, 2 }
 0x68a   : > { %v3176_v7 = vshrl.u32 %v5834_v12, %v3173_v0  ;;  %v3179_v33 = vshrl.u32 %v5835_v14, %v3173_v0  ;;  %v3182_v56 = vshrl.u32 %v5836_v16, %v3173_v0  ;;  %v3174_v26 = vshrl.u32 %v5833_v6, %v3173_v0 }
 0x68b   : > { %v3185_v43 = vshrl.u32 %v5837_v18, %v3173_v0  ;;  %v3188_v36 = vshrl.u32 %v5838_v25, %v3173_v0  ;;  %vm3192_vm15 = vcmp.lt.s32.totalorder %v3171_v40, 3  ;;  %v2965_v20 = vsub.s32 32, %v2964_v32 }
 0x68c   : > { %v3177_v31 = vor.u32 %v3176_v7, %v3175_v1  ;;  %v3180_v11 = vor.u32 %v3179_v33, %v3178_v13  ;;  %v3183_v38 = vor.u32 %v3182_v56, %v3181_v63  ;;  %vm3193_vm0 = vcmp.lt.s32.totalorder %v3171_v40, 4 }
 0x68d   : > { %v3186_v44 = vor.u32 %v3185_v43, %v3184_v45  ;;  %v3189_v4 = vor.u32 %v3188_v36, %v3187_v37  ;;  %v2967_v8 = vshll.u32 %v5833_v6, %v2964_v32  ;;  %v2970_v27 = vshll.u32 %v5834_v12, %v2964_v32 }
 0x68e   : > { %v3194_v59 = vsel %vm3190_vm13, %v3174_v26, %v3177_v31  ;;  %v3195_v24 = vsel %vm3193_vm0, %v3183_v38, 2102212464  ;;  %v3198_v50 = vsel %vm3190_vm13, %v3177_v31, %v3180_v11  ;;  %v3202_v39 = vsel %vm3190_vm13, %v3180_v11, %v3183_v38 }
 0x68f   : > { %v3196_v10 = vsel %vm3192_vm15, %v3180_v11, %v3195_v24  ;;  %v3199_v17 = vsel %vm3193_vm0, %v3186_v44, 920167782  ;;  %v3203_v52 = vsel %vm3193_vm0, %v3189_v4, 1326507024  ;;  %v2966_v42 = vshrl.u32 %v5833_v6, %v2965_v20 }
 0x690   : > { %v3200_v62 = vsel %vm3192_vm15, %v3183_v38, %v3199_v17  ;;  %v3204_v48 = vsel %vm3192_vm15, %v3186_v44, %v3203_v52  ;;  %v2968_v49 = vshrl.u32 %v5834_v12, %v2965_v20  ;;  %v3197_v54 = vsel %vm3191_vm14, %v3194_v59, %v3196_v10 }
 0x691   : > { %v3201_v22 = vsel %vm3191_vm14, %v3198_v50, %v3200_v62  ;;  %v3205_v35 = vsel %vm3191_vm14, %v3202_v39, %v3204_v48  ;;  %v2971_v23 = vshrl.u32 %v5835_v14, %v2965_v20  ;;  %v2973_v63 = vshll.u32 %v5835_v14, %v2964_v32 }
 0x692   : > { %v7158_v58 = vmul.u32.u64.low %v7120_v2, %v3205_v35  ;;  %v7159_v55 = vmul.u32.u64.high %v7120_v2, %v3205_v35, %v7158_v58  ;;  %v7162_v29 = vmul.u32.u64.low %v7120_v2, %v3201_v22  ;;  %v7163_v0 = vmul.u32.u64.high %v7120_v2, %v3201_v22, %v7162_v29 }
 0x693   : > { %v2969_v1 = vor.u32 %v2968_v49, %v2967_v8  ;;  %v2972_v13 = vor.u32 %v2971_v23, %v2970_v27  ;;  %v2974_v45 = vshrl.u32 %v5836_v16, %v2965_v20  ;;  %v3213_v40 = vmul.u32 %v7120_v2, %v3197_v54 }
 0x694   : > { %v2976_v37 = vshll.u32 %v5836_v16, %v2964_v32  ;;  %v2977_v7 = vshrl.u32 %v5837_v18, %v2965_v20  ;;  %v2980_v33 = vshrl.u32 %v5838_v25, %v2965_v20  ;;  %v2979_v26 = vshll.u32 %v5837_v18, %v2964_v32 }
 0x695   : > { %v2975_v56 = vor.u32 %v2974_v45, %v2973_v63  ;;  %vm2982_vm3 = vcmp.lt.s32.totalorder %v7123_v15, 1  ;;  %vm2983_vm4 = vcmp.lt.s32.totalorder %v7123_v15, 2  ;;  %vm3215_vm5 = vc.u32 %v7159_v55, %v7162_v29 }
 0x696   : > { %v3216_v43 = vadd.s32 1, %v7163_v0  ;;  %v2978_v36 = vor.u32 %v2977_v7, %v2976_v37  ;;  %vm2984_vm6 = vcmp.lt.s32.totalorder %v7123_v15, 3  ;;  %v2981_v2 = vor.u32 %v2980_v33, %v2979_v26 }
 0x697   : > { %vm2985_vm7 = vcmp.lt.s32.totalorder %v7123_v15, 4  ;;  %v2986_v31 = vsel %vm2982_vm3, %v2966_v42, %v2969_v1  ;;  %v2990_v11 = vsel %vm2982_vm3, %v2969_v1, %v2972_v13  ;;  %v2994_v44 = vsel %vm2982_vm3, %v2972_v13, %v2975_v56 }
 0x698   : > { %v3217_v38 = vsel %vm3215_vm5, %v3216_v43, %v7163_v0  ;;  %v2987_v32 = vsel %vm2985_vm7, %v2975_v56, 2102212464  ;;  %v2991_v20 = vsel %vm2985_vm7, %v2978_v36, 920167782  ;;  %v2995_v24 = vsel %vm2985_vm7, %v2981_v2, 1326507024 }
 0x699   : > { %v3218_v4 = vadd.s32 %v3217_v38, %v3213_v40  ;;  %v2988_v8 = vsel %vm2984_vm6, %v2972_v13, %v2987_v32  ;;  %v2992_v59 = vsel %vm2984_vm6, %v2975_v56, %v2991_v20  ;;  %v2996_v10 = vsel %vm2984_vm6, %v2978_v36, %v2995_v24 }
 0x69a   : > { %v2989_v50 = vsel %vm2983_vm4, %v2986_v31, %v2988_v8  ;;  %v2993_v39 = vsel %vm2983_vm4, %v2990_v11, %v2992_v59  ;;  %v3274_v17 = vsel %vm3273_vm1, %v7127_v57, 0  ;;  %v2997_v27 = vsel %vm2983_vm4, %v2994_v44, %v2996_v10 }
 0x69b   : > { %v3219_v52 = vadd.s32 536870912, %v3218_v4  ;;  %v7191_v62 = vmul.u32.u64.low %v7125_v41, %v2993_v39  ;;  %v7192_v48 = vmul.u32.u64.high %v7125_v41, %v2993_v39, %v7191_v62  ;;  %v3275_v54 = vshrl.u32 %v3274_v17, 5 }
 0x69c   : > { %v7196_v42 = vmul.u32.u64.low %v7125_v41, %v2997_v27  ;;  %v7197_v49 = vmul.u32.u64.high %v7125_v41, %v2997_v27, %v7196_v42  ;;  %v3276_v35 = vand.u32 31, %v3274_v17  ;;  %v3005_v23 = vmul.u32 %v7125_v41, %v2989_v50 }
 0x69d   : > { %v7199_v22 = vshrl.u32 %v3219_v52, 30  ;;  %v7204_v57 = vshll.u32 %v3270_v60, 8  ;;  %v3008_v58 = vadd.s32 1, %v7192_v48  ;;  %vm3294_vm10 = vcmp.lt.s32.totalorder %v3275_v54, 1 }
 0x69e   : > { %v3277_v0 = vsub.s32 32, %v3276_v35  ;;  %vm3007_vm9 = vc.u32 %v7197_v49, %v7191_v62  ;;  %v3279_v1 = vshll.u32 %v5833_v6, %v3276_v35  ;;  %v3282_v13 = vshll.u32 %v5834_v12, %v3276_v35 }
 0x69f   : > { %v3221_v15 = vshll.u32 %v7199_v22, 30  ;;  %v3009_v61 = vsel %vm3007_vm9, %v3008_v58, %v7192_v48  ;;  %v3285_v63 = vshll.u32 %v5835_v14, %v3276_v35  ;;  %v3288_v7 = vshll.u32 %v5836_v16, %v3276_v35 }
 0x6a0   : > { %v3280_v60 = vshrl.u32 %v5834_v12, %v3277_v0  ;;  %v3010_v45 = vadd.s32 %v3009_v61, %v3005_v23  ;;  %v3283_v40 = vshrl.u32 %v5835_v14, %v3277_v0  ;;  %v3286_v37 = vshrl.u32 %v5836_v16, %v3277_v0 }
 0x6a1   : > { %v7213_v41 = vsub.s32 %v3218_v4, %v3221_v15  ;;  %v3289_v26 = vshrl.u32 %v5837_v18, %v3277_v0  ;;  %v3291_v43 = vshll.u32 %v5837_v18, %v3276_v35  ;;  %v3292_v11 = vshrl.u32 %v5838_v25, %v3277_v0 }
 0x6a2   : > { %v3281_v56 = vor.u32 %v3280_v60, %v3279_v1  ;;  %v3011_v36 = vadd.s32 536870912, %v3010_v45  ;;  %v3284_v2 = vor.u32 %v3283_v40, %v3282_v13  ;;  %v3287_v31 = vor.u32 %v3286_v37, %v3285_v63 }
 0x6a3   : > { %v3224_v33 = vsub.s32 0, %v7213_v41  ;;  %v3278_v38 = vshrl.u32 %v5833_v6, %v3277_v0  ;;  %v3290_v32 = vor.u32 %v3289_v26, %v3288_v7  ;;  %vm3295_vm11 = vcmp.lt.s32.totalorder %v3275_v54, 2 }
 0x6a4   : > { %vm3297_vm12 = vcmp.lt.s32.totalorder %v3275_v54, 4  ;;  %v7226_v20 = vshrl.u32 %v3011_v36, 30  ;;  %v3293_v44 = vor.u32 %v3292_v11, %v3291_v43  ;;  %v3302_v8 = vsel %vm3294_vm10, %v3281_v56, %v3284_v2 }
 0x6a5   : > { %v3299_v4 = vsel %vm3297_vm12, %v3287_v31, 2102212464  ;;  %v5182_v59 = vmin.u32 %v3224_v33, %v7213_v41  ;;  %vm3296_vm13 = vcmp.lt.s32.totalorder %v3275_v54, 3  ;;  %v3303_v24 = vsel %vm3297_vm12, %v3290_v32, 920167782 }
 0x6a6   : > { %v3306_v50 = vsel %vm3294_vm10, %v3284_v2, %v3287_v31  ;;  %v3013_v39 = vshll.u32 %v7226_v20, 30  ;;  %v3298_v10 = vsel %vm3294_vm10, %v3278_v38, %v3281_v56  ;;  %v3304_v17 = vsel %vm3296_vm13, %v3287_v31, %v3303_v24 }
 0x6a7   : > { %v3307_v52 = vsel %vm3297_vm12, %v3293_v44, 1326507024  ;;  %v3300_v27 = vsel %vm3296_vm13, %v3284_v2, %v3299_v4  ;;  %v3305_v48 = vsel %vm3295_vm11, %v3302_v8, %v3304_v17  ;;  %v3066_v35 = vsel %vm3065_vm8, %v7131_v46, 0 }
 0x6a8   : > { %v3308_v42 = vsel %vm3296_vm13, %v3290_v32, %v3307_v52  ;;  %v7237_v23 = vsub.s32 %v3010_v45, %v3013_v39  ;;  %v7241_v58 = vmul.u32.u64.low %v7204_v57, %v3305_v48  ;;  %v7242_v0 = vmul.u32.u64.high %v7204_v57, %v3305_v48, %v7241_v58 }
 0x6a9   : > { %v3309_v15 = vsel %vm3295_vm11, %v3306_v50, %v3308_v42  ;;  %v3301_v60 = vsel %vm3295_vm11, %v3298_v10, %v3300_v27  ;;  %v3054_v63 = vand.u32 2147483647, %v7103_v5  ;;  %v3068_v46 = vand.u32 31, %v3066_v35 }
 0x6aa   : > { %v7246_v1 = vmul.u32.u64.low %v7204_v57, %v3309_v15  ;;  %v7247_v13 = vmul.u32.u64.high %v7204_v57, %v3309_v15, %v7246_v1  ;;  %v3016_v61 = vsub.s32 0, %v7237_v23  ;;  %v3226_v45 = vclz %v5182_v59 }
 0x6ab   : > { %v3320_v37 = vadd.s32 1, %v7242_v0  ;;  %v3069_v7 = vsub.s32 32, %v3068_v46  ;;  %v3317_v33 = vmul.u32 %v7204_v57, %v3301_v60  ;;  %v3061_v54 = vand.u32 8388607, %v3054_v63 }
 0x6ac   : > { %v5174_v40 = vmin.u32 %v3016_v61, %v7237_v23  ;;  %vm3319_vm14 = vc.u32 %v7247_v13, %v7241_v58  ;;  %v5183_v43 = vadd.s32 4294967294, %v3226_v45  ;;  %v3071_v44 = vshll.u32 %v5833_v6, %v3068_v46 }
 0x6ad   : > { %v3321_v26 = vsel %vm3319_vm14, %v3320_v37, %v7242_v0  ;;  %v3072_v31 = vshrl.u32 %v5834_v12, %v3069_v7  ;;  %v3075_v11 = vshrl.u32 %v5835_v14, %v3069_v7  ;;  %v3078_v32 = vshrl.u32 %v5836_v16, %v3069_v7 }
 0x6ae   : > { %v3018_v56 = vclz %v5174_v40  ;;  %v3322_v36 = vadd.s32 %v3321_v26, %v3317_v33  ;;  %v3062_v57 = vor.u32 8388608, %v3061_v54  ;;  %v3074_v4 = vshll.u32 %v5834_v12, %v3068_v46 }
 0x6af   : > { %v3081_v8 = vshrl.u32 %v5837_v18, %v3069_v7  ;;  %vm5184_vm15 = vcmp.lt.s32.totalorder %v5183_v43, 0  ;;  %v3067_v24 = vshrl.u32 %v3066_v35, 5  ;;  %v3077_v50 = vshll.u32 %v5835_v14, %v3068_v46 }
 0x6b0   : > { %v5175_v2 = vadd.s32 4294967294, %v3018_v56  ;;  %v3323_v38 = vadd.s32 536870912, %v3322_v36  ;;  %v3073_v39 = vor.u32 %v3072_v31, %v3071_v44  ;;  %v3076_v10 = vor.u32 %v3075_v11, %v3074_v4 }
 0x6b1   : > { %v3080_v17 = vshll.u32 %v5836_v16, %v3068_v46  ;;  %v3079_v27 = vor.u32 %v3078_v32, %v3077_v50  ;;  %v3083_v48 = vshll.u32 %v5837_v18, %v3068_v46  ;;  %v3084_v42 = vshrl.u32 %v5838_v25, %v3069_v7 }
 0x6b2   : > { %v7266_v59 = vshrl.u32 %v3323_v38, 30  ;;  %vm5176_vm0 = vcmp.lt.s32.totalorder %v5175_v2, 0  ;;  %v7276_v35 = vsel %vm5184_vm15, 0, %v5183_v43  ;;  %vm3086_vm1 = vcmp.lt.s32.totalorder %v3067_v24, 1 }
 0x6b3   : > { %v3082_v15 = vor.u32 %v3081_v8, %v3080_v17  ;;  %v3021_v0 = vsel %vm5176_vm0, 0, %v5175_v2  ;;  %v3085_v61 = vor.u32 %v3084_v42, %v3083_v48  ;;  %vm3089_vm3 = vcmp.lt.s32.totalorder %v3067_v24, 4 }
 0x6b4   : > { %v3325_v52 = vshll.u32 %v7266_v59, 30  ;;  %v3102_v60 = vshll.u32 %v3062_v57, 8  ;;  %v3070_v40 = vshrl.u32 %v5833_v6, %v3069_v7  ;;  %v3091_v37 = vsel %vm3089_vm3, %v3079_v27, 2102212464 }
 0x6b5   : > { %v3094_v33 = vsel %vm3086_vm1, %v3073_v39, %v3076_v10  ;;  %v3026_v46 = vsub.s32 4294967266, %v3021_v0  ;;  %vm3087_vm4 = vcmp.lt.s32.totalorder %v3067_v24, 2  ;;  %vm3088_vm5 = vcmp.lt.s32.totalorder %v3067_v24, 3 }
 0x6b6   : > { %v7273_v1 = vsub.s32 %v3322_v36, %v3325_v52  ;;  %v3095_v56 = vsel %vm3089_vm3, %v3082_v15, 920167782  ;;  %v3098_v36 = vsel %vm3086_vm1, %v3076_v10, %v3079_v27  ;;  %v3099_v2 = vsel %vm3089_vm3, %v3085_v61, 1326507024 }
 0x6b7   : > { %v3096_v54 = vsel %vm3088_vm5, %v3079_v27, %v3095_v56  ;;  %v3090_v43 = vsel %vm3086_vm1, %v3070_v40, %v3073_v39  ;;  %v3092_v31 = vsel %vm3088_vm5, %v3076_v10, %v3091_v37  ;;  %v3100_v38 = vsel %vm3088_vm5, %v3082_v15, %v3099_v2 }
 0x6b8   : > { %v3328_v45 = vsub.s32 0, %v7273_v1  ;;  %v3097_v11 = vsel %vm3087_vm4, %v3094_v33, %v3096_v54  ;;  %v3101_v57 = vsel %vm3087_vm4, %v3098_v36, %v3100_v38  ;;  %v3234_v50 = vsub.s32 4294967266, %v7276_v35 }
 0x6b9   : > { %v7283_v7 = vmul.u32.u64.low %v3102_v60, %v3097_v11  ;;  %v7284_v44 = vmul.u32.u64.high %v3102_v60, %v3097_v11, %v7283_v7  ;;  %v7287_v4 = vmul.u32.u64.low %v3102_v60, %v3101_v57  ;;  %v7288_v8 = vmul.u32.u64.high %v3102_v60, %v3101_v57, %v7287_v4 }
 0x6ba   : > { %v5186_v26 = vmin.u32 %v3328_v45, %v7273_v1  ;;  %v3093_v52 = vsel %vm3087_vm4, %v3090_v43, %v3092_v31  ;;  %v3027_v39 = vadd.s32 127, %v3026_v46  ;;  %v3022_v27 = vsub.s32 32, %v3021_v0 }
 0x6bb   : > { %v3112_v10 = vadd.s32 1, %v7284_v44  ;;  %v3109_v42 = vmul.u32 %v3102_v60, %v3093_v52  ;;  %vm3111_vm7 = vc.u32 %v7288_v8, %v7283_v7  ;;  %v3235_v15 = vadd.s32 127, %v3234_v50 }
 0x6bc   : > { %v3330_v32 = vclz %v5186_v26  ;;  %v3006_v40 = vadd.s32 %v7191_v62, %v7197_v49  ;;  %v3028_v37 = vshll.u32 %v3027_v39, 23  ;;  %v3230_v46 = vsub.s32 32, %v7276_v35 }
 0x6bd   : > { %v3113_v45 = vsel %vm3111_vm7, %v3112_v10, %v7284_v44  ;;  %v3318_v60 = vadd.s32 %v7241_v58, %v7247_v13  ;;  %v3214_v36 = vadd.s32 %v7162_v29, %v7159_v55  ;;  %v3236_v2 = vshll.u32 %v3235_v15, 23 }
 0x6be   : > { %v5187_v17 = vadd.s32 4294967294, %v3330_v32  ;;  %v3114_v33 = vadd.s32 %v3113_v45, %v3109_v42  ;;  %v3024_v26 = vshrl.u32 %v3006_v40, %v3022_v27  ;;  %v3023_v31 = vshll.u32 %v7237_v23, %v3021_v0 }
 0x6bf   : > { %v3029_v11 = vor.u32 4788187, %v3028_v37  ;;  %v3232_v38 = vshrl.u32 %v3214_v36, %v3230_v46  ;;  %v3231_v58 = vshll.u32 %v7213_v41, %v7276_v35  ;;  %v3237_v13 = vor.u32 4788187, %v3236_v2 }
 0x6c0   : > { %vm5188_vm6 = vcmp.lt.s32.totalorder %v5187_v17, 0  ;;  %v3115_v54 = vadd.s32 536870912, %v3114_v33  ;;  %v3025_v32 = vor.u32 %v3024_v26, %v3023_v31  ;;  %vm2952_vm9 = vcmp.lt.s32.totalorder %v7095_v19, 0 }
 0x6c1   : > { %v3333_v48 = vsel %vm5188_vm6, 0, %v5187_v17  ;;  %v3030_v55 = vand.u32 2147483647, %v3029_v11  ;;  %v3233_v17 = vor.u32 %v3232_v38, %v3231_v58  ;;  %v3238_v39 = vand.u32 2147483647, %v3237_v13 }
 0x6c2   : > { %v3338_v61 = vsub.s32 4294967266, %v3333_v48  ;;  %v3334_v24 = vsub.s32 32, %v3333_v48  ;;  %v7304_v49 = vshrl.u32 %v3115_v54, 30  ;;  %v3335_v57 = vshll.u32 %v7273_v1, %v3333_v48 }
 0x6c3   : > { %v3032_v23 = vcvt.s32.f32 %v3025_v32  ;;  %v3240_v15 = vcvt.s32.f32 %v3233_v17  ;;  %vm3264_vm10 = vcmp.lt.s32.totalorder %v7099_v34, 0  ;;  %vm7318_vm11 = vcmp.le.f32.partialorder %v2950_v9, 0.7853982 }
 0x6c4   : > { %v3339_v56 = vadd.s32 127, %v3338_v61  ;;  %v3336_v62 = vshrl.u32 %v3318_v60, %v3334_v24  ;;  %v3117_v4 = vshll.u32 %v7304_v49, 30  ;;  %vm3160_vm12 = vcmp.lt.s32.totalorder %v7093_v30, 0 }
 0x6c5   : > { %v3033_v10 = vmul.f32 %v3032_v23, %v3030_v55  ;;  %v3241_v61 = vmul.f32 %v3240_v15, %v3238_v39  ;;  %vm7332_vm13 = vcmp.le.f32.partialorder %v3262_v47, 0.7853982  ;;  %v3036_v38 = vsub.s32 4, %v7226_v20 }
 0x6c6   : > { %v3340_v43 = vshll.u32 %v3339_v56, 23  ;;  %v3337_v29 = vor.u32 %v3336_v62, %v3335_v57  ;;  %v3118_v50 = vsub.s32 %v3114_v33, %v3117_v4  ;;  %v3110_v33 = vadd.s32 %v7283_v7, %v7288_v8 }
 0x6c7   : > { %v3034_v45 = vxor.u32 2147483648, %v3033_v10  ;;  %v3242_v41 = vxor.u32 2147483648, %v3241_v61  ;;  %vm7342_vm14 = vcmp.le.f32.partialorder %v3158_v51, 0.7853982  ;;  %v3348_v57 = vsub.s32 4, %v7266_v59 }
 0x6c8   : > { %v3341_v44 = vor.u32 4788187, %v3340_v43  ;;  %v3120_v52 = vsub.s32 0, %v3118_v50  ;;  %v3344_v27 = vcvt.s32.f32 %v3337_v29  ;;  %v3140_v58 = vsub.s32 4, %v7304_v49 }
 0x6c9   : > { %v3035_v24 = vsel %vm2952_vm9, %v3034_v45, %v3033_v10  ;;  %v3243_v8 = vsel %vm3160_vm12, %v3242_v41, %v3241_v61  ;;  %v3244_v13 = vsub.s32 4, %v7199_v22  ;;  %v3037_v51 = vsel %vm2952_vm9, %v3036_v38, %v7226_v20 }
 0x6ca   : > { %v3342_v0 = vand.u32 2147483647, %v3341_v44  ;;  %v5178_v42 = vmin.u32 %v3120_v52, %v3118_v50  ;;  %v3038_v7 = vsel %vm7318_vm11, %v7095_v19, %v3035_v24  ;;  %v3246_v47 = vsel %vm7342_vm14, %v7093_v30, %v3243_v8 }
 0x6cb   : > { %5684 = vcosq.f32 %v3038_v7  ;;  %v3349_v29 = vsel %vm3264_vm10, %v3348_v57, %v7266_v59  ;;  %vm3056_vm15 = vcmp.lt.s32.totalorder %v7103_v5, 0  ;;  %v3039_v17 = vsel %vm7318_vm11, 0, %v3037_v51 }
 0x6cc   : > { %v3345_v1 = vmul.f32 %v3344_v27, %v3342_v0  ;;  %v3122_v48 = vclz %v5178_v42  ;;  %5686 = vsinq.f32 %v3038_v7  ;;  %v3141_v23 = vsel %vm3056_vm15, %v3140_v58, %v7304_v49 }
 0x6cd   : > { %v3245_v0 = vsel %vm3160_vm12, %v3244_v13, %v7199_v22  ;;  %vm3055_vm0 = vcmp.le.f32.partialorder %v3054_v63, 0.7853982  ;;  %v3351_v20 = vsel %vm7332_vm13, 0, %v3349_v29  ;;  %v3043_v10 = vadd.s32 3, %v3039_v17 }
 0x6ce   : > { %v5179_v40 = vadd.s32 4294967294, %v3122_v48  ;;  %v3346_v37 = vxor.u32 2147483648, %v3345_v1  ;;  %v3143_v27 = vsel %vm3055_vm0, 0, %v3141_v23  ;;  %v3247_v49 = vsel %vm7342_vm14, 0, %v3245_v0 }
 0x6cf   : > { %v3355_v15 = vadd.s32 3, %v3351_v20  ;;  %v3147_v48 = vadd.s32 3, %v3143_v27  ;;  %v3251_v61 = vadd.s32 3, %v3247_v49  ;;  %v3044_v45 = vand.u32 3, %v3043_v10 }
 0x6d0   : > { %vm5180_vm8 = vcmp.lt.s32.totalorder %v5179_v40, 0  ;;  %v3347_v60 = vsel %vm3264_vm10, %v3346_v37, %v3345_v1  ;;  %vm3042_vm12 = vweird.f32 %v7095_v19  ;;  %v5623_v19 = vld [vmem:[%s8318_s6 + $0x38] sm:$0xff]   ;;  %v3464_v0 = vstv %s5189_s11  ;;  %s365_s11 = sand.u32 1, %s5821_s18  }
 0x6d1   : > { %v3125_v35 = vsel %vm5180_vm8, 0, %v5179_v40  ;;  %v3350_v11 = vsel %vm7332_vm13, %v7099_v34, %v3347_v60  ;;  %v3356_v37 = vand.u32 3, %v3355_v15  ;;  %vm3045_vm1 = vcmp.lt.s32.totalorder %v3044_v45, 2  ;;  %s366_s13 = scalar_lea.vmem [#allocation7], %s365_s11  ;;  %s4989_s0 = scalar_lea.sflag [#allocation5], %s365_s11 }
 0x6d2   : > { %v3126_v46 = vsub.s32 32, %v3125_v35  ;;  %v3130_v56 = vsub.s32 4294967266, %v3125_v35  ;;  %v3127_v54 = vshll.u32 %v3118_v50, %v3125_v35  ;;  %5688 = vcosq.f32 %v3350_v11  ;;  %s5001_s14 = sshll.u32 %s366_s13, 4  ;;  %s8272_s14 = int_to_ptr.vmem [resolvable:$true] %s5001_s14 }
 0x6d3   : > { %5690 = vsinq.f32 %v3350_v11  ;;  %vm3046_vm3 = vcmp.eq.s32.totalorder %v3044_v45, 0  ;;  %vm3049_vm4 = vcmp.eq.s32.totalorder %v3044_v45, 2  ;;  %vm3358_vm5 = vcmp.eq.s32.totalorder %v3356_v37, 0  ;;  %s5763_s22 = scalar_lea.vmem %s8272_s14, 16  ;;  %p5770_p13 = scmp.lt.s32.totalorder %s8272_s14, %s5768_s27 }
 0x6d4   : > { %v3128_v36 = vshrl.u32 %v3110_v33, %v3126_v46  ;;  %v3131_v2 = vadd.s32 127, %v3130_v56  ;;  %5692 = vcosq.f32 %v3246_v47  ;;  %v3148_v46 = vand.u32 3, %v3147_v48  ;;  %p5764_p9 = scmp.ne.s32.totalorder %s8272_s14, %s5763_s22 }
 0x6d5   : > { %5694 = vsinq.f32 %v3246_v47  ;;  %v5685_v39 = vpop.eup %5684  ;;  %v3252_v56 = vand.u32 3, %v3251_v61  ;;  %vm3361_vm6 = vcmp.eq.s32.totalorder %v3356_v37, 2  ;;  %vm3357_vm10 = vcmp.lt.s32.totalorder %v3356_v37, 2 }
 0x6d6   : > { %v3129_v43 = vor.u32 %v3128_v36, %v3127_v54  ;;  %v3132_v9 = vshll.u32 %v3131_v2, 23  ;;  %v5687_v42 = vpop.eup %5686  ;;  %v3050_v35 = vxor.u32 2147483648, %v5685_v39  ;;  %vm3153_vm7 = vcmp.eq.s32.totalorder %v3148_v46, 2  ;;  %p5765_p10 = pnand %p5764_p9, %p5941_p5 }
 0x6d7   : > { %v3047_v41 = vxor.u32 2147483648, %v5687_v42  ;;  %vm3254_vm8 = vcmp.eq.s32.totalorder %v3252_v56, 0  ;;  %vm3257_vm9 = vcmp.eq.s32.totalorder %v3252_v56, 2  ;;  %vm3150_vm11 = vcmp.eq.s32.totalorder %v3148_v46, 0 }
 0x6d8   : > { %v3133_v62 = vor.u32 4788187, %v3132_v9  ;;  %v3136_v4 = vcvt.s32.f32 %v3129_v43  ;;  %v3051_v2 = vsel %vm3049_vm4, %v3050_v35, %v5687_v42  ;;  %vm3149_vm13 = vcmp.lt.s32.totalorder %v3148_v46, 2  ;;  %p5766_p12 = pneg %p5765_p10 }
 0x6d9   : > { %v3048_v36 = vsel %vm3046_vm3, %v5685_v39, %v3047_v41  ;;  %vm3253_vm14 = vcmp.lt.s32.totalorder %v3252_v56, 2 }
 0x6da   : > { %v3134_v44 = vand.u32 2147483647, %v3133_v62  ;;  %v3052_v38 = vsel %vm3045_vm1, %v3048_v36, %v3051_v2  ;;  %vm3250_vm1 = vweird.f32 %v7093_v30 }
 0x6db   : > { %v3053_v58 = vsel %vm3042_vm12, nan, %v3052_v38 }
 0x6dc   : > { %v3137_v55 = vmul.f32 %v3136_v4, %v3134_v44  ;;  %v5689_v22 = vpop.eup %5688 }
 0x6dd   : > { %v5691_v1 = vpop.eup %5690  ;;  %v3362_v33 = vxor.u32 2147483648, %v5689_v22 }
 0x6de   : > { %v3138_v50 = vxor.u32 2147483648, %v3137_v55  ;;  %v5693_v63 = vpop.eup %5692  ;;  %v3359_v24 = vxor.u32 2147483648, %v5691_v1 }
 0x6df   : > { %v5695_v40 = vpop.eup %5694  ;;  %v3258_v60 = vxor.u32 2147483648, %v5693_v63  ;;  %v3363_v8 = vsel %vm3361_vm6, %v3362_v33, %v5691_v1 }
 0x6e0   : > { %v3139_v52 = vsel %vm3056_vm15, %v3138_v50, %v3137_v55  ;;  %v3255_v26 = vxor.u32 2147483648, %v5695_v40  ;;  %v3360_v7 = vsel %vm3358_vm5, %v5689_v22, %v3359_v24  ;;  %vm3146_vm15 = vweird.f32 %v7103_v5 }
 0x6e1   : > { %v3142_v59 = vsel %vm3055_vm0, %v7103_v5, %v3139_v52  ;;  %v3259_v62 = vsel %vm3257_vm9, %v3258_v60, %v5695_v40  ;;  %v3364_v47 = vsel %vm3357_vm10, %v3360_v7, %v3363_v8  ;;  %vm3354_vm0 = vweird.f32 %v7099_v34  ;;  %v3382_v34 = vpop.permute.xlu0 %3381  ;;  %v3387_v5 = vpop.permute.xlu1 %3386 }
 0x6e2   : > { %5696 = vcosq.f32 %v3142_v59  ;;  %v3256_v11 = vsel %vm3254_vm8, %v5693_v63, %v3255_v26  ;;  %v3365_v55 = vsel %vm3354_vm0, nan, %v3364_v47 }
 0x6e3   : > { %5698 = vsinq.f32 %v3142_v59  ;;  %v3260_v4 = vsel %vm3253_vm14, %v3256_v11, %v3259_v62 }
 0x6e4   : > { %v3261_v29 = vsel %vm3250_vm1, nan, %v3260_v4 }
 0x6e5   : > { %v3373_v50 = vpack.c.bf16 %v3365_v55, %v3261_v29  ;;  %v3392_v17 = vpop.permute.xlu0 %3391  ;;  %v3397_v20 = vpop.permute.xlu1 %3396 }
 0x6ec   : > { %v5697_v54 = vpop.eup %5696 }
 0x6ed   : > { %v5699_v43 = vpop.eup %5698  ;;  %v3154_v9 = vxor.u32 2147483648, %v5697_v54 }
 0x6ee   : > { %v3151_v31 = vxor.u32 2147483648, %v5699_v43 }
 0x6ef   : > { %v3155_v32 = vsel %vm3153_vm7, %v3154_v9, %v5699_v43 }
 0x6f0   : > { %v3152_v57 = vsel %vm3150_vm11, %v5697_v54, %v3151_v31 }
 0x6f1   : > { %v3156_v44 = vsel %vm3149_vm13, %v3152_v57, %v3155_v32 }
 0x6f2   : > { %v3157_v13 = vsel %vm3146_vm15, nan, %v3156_v44 }
 0x6f3   : > { %v3372_v51 = vpack.c.bf16 %v3157_v13, %v3053_v58  ;;  %v5624_v58 = vld [vmem:[%s8318_s6 + $0x40] sm:$0xff]  }
 0x6f4   : > { %5403 = vmatprep.mubr.msk.bf16.mxu0 %vm1329_vm2, %v5624_v58 }
 0x6f5   : > { %5391 = vmatprep.subr.bf16.mxu1 %v3372_v51 }
 0x6f6   : > { %5392 = vmatpush3.bf16.msra.mxu1 %v3372_v51 }
 0x6f7   : > { %5393 = vmatprep.subr.bf16.mxu1 %v3373_v50 }
 0x6fa   : > { %5394 = vmatpush3.bf16.msra.mxu1 %v3373_v50 }
 0x6fd   : > { %5396 = vmatmul.mubr.msk.bf16.vlgmr.msra.gmra.mrb[16].mxu1 %vm1329_vm2, %v5623_v19 }
 0x7d0   : > { %v5397_v23 = vpop.f32.mrb[16].mxu1 }
 0x7d1   : > { %v3458_v52 = vadd.f32 %v5397_v23, %v3392_v17  ;;  %v3449_v30 = vpop.f32.mrb[17].mxu1 }
 0x7d2   : > { %v3450_v59 = vadd.f32 %v3449_v30, %v3382_v34  ;;  %v5398_v39 = vpop.f32.mrb[18].mxu1 }
 0x7d3   : > { %v7381_v10 = vmul.f32 %v3464_v0, %v3458_v52  ;;  %v3461_v27 = vadd.f32 %v5398_v39, %v3397_v20  ;;  %v3452_v49 = vpop.f32.mrb[19].mxu1 }
 0x7d4   : > { %v7383_v42 = vmul.f32 %v3464_v0, %v3450_v59  ;;  %v3453_v48 = vadd.f32 %v3452_v49, %v3387_v5 }
 0x7d5   : > { %v3677_v15 = vand.u32 2147483647, %v7381_v10  ;;  %v3680_v22 = vand.u32 2139095040, %v7381_v10  ;;  %v7387_v1 = vmul.f32 %v3464_v0, %v3461_v27 }
 0x7d6   : > { %v3469_v61 = vand.u32 2147483647, %v7383_v42  ;;  %v3472_v63 = vand.u32 2139095040, %v7383_v42  ;;  %v7397_v46 = vmul.f32 %v3464_v0, %v3453_v48 }
 0x7d7   : > { %v3681_v45 = vshrl.u32 %v3680_v22, 23  ;;  %v3684_v40 = vand.u32 8388607, %v3677_v15  ;;  %v3784_v35 = vand.u32 2139095040, %v7387_v1  ;;  %v3781_v33 = vand.u32 2147483647, %v7387_v1 }
 0x7d8   : > { %v3473_v37 = vshrl.u32 %v3472_v63, 23  ;;  %v3476_v41 = vand.u32 8388607, %v3469_v61  ;;  %v3576_v43 = vand.u32 2139095040, %v7397_v46 }
 0x7d9   : > { %v5210_v24 = vadd.s32 4294967169, %v3681_v45  ;;  %v3685_v56 = vor.u32 8388608, %v3684_v40  ;;  %v3785_v60 = vshrl.u32 %v3784_v35, 23  ;;  %v7401_v8 = vand.u32 8388607, %v3781_v33 }
 0x7da   : > { %v5202_v26 = vadd.s32 4294967169, %v3473_v37  ;;  %v3477_v36 = vor.u32 8388608, %v3476_v41  ;;  %v7418_v29 = vshrl.u32 %v3576_v43, 23 }
 0x7db   : > { %v3687_v54 = vadd.s32 1, %v5210_v24  ;;  %v5214_v7 = vadd.s32 4294967169, %v3785_v60  ;;  %v7404_v31 = vshll.u32 %v3685_v56, 8  ;;  %v3789_v44 = vor.u32 8388608, %v7401_v8 }
 0x7dc   : > { %v3479_v2 = vadd.s32 1, %v5202_v26  ;;  %v7406_v32 = vshll.u32 %v3477_v36, 8 }
 0x7dd   : > { %vm3688_vm3 = vcmp.gt.s32.totalorder %v3687_v54, 0  ;;  %v7411_v4 = vadd.s32 1, %v5214_v7 }
 0x7de   : > { %v3689_v9 = vsel %vm3688_vm3, %v3687_v54, 0  ;;  %vm3480_vm4 = vcmp.gt.s32.totalorder %v3479_v2, 0 }
 0x7df   : > { %v3690_v11 = vshrl.u32 %v3689_v9, 5  ;;  %v3691_v62 = vand.u32 31, %v3689_v9  ;;  %v3481_v38 = vsel %vm3480_vm4, %v3479_v2, 0  ;;  %vm3792_vm9 = vcmp.gt.s32.totalorder %v7411_v4, 0 }
 0x7e0   : > { %v7408_v47 = vshrl.u32 %v3481_v38, 5  ;;  %v3483_v57 = vand.u32 31, %v3481_v38 }
 0x7e1   : > { %v3692_v13 = vsub.s32 32, %v3691_v62  ;;  %v3694_v55 = vshll.u32 %v5833_v6, %v3691_v62  ;;  %v3697_v51 = vshll.u32 %v5834_v12, %v3691_v62  ;;  %v3700_v50 = vshll.u32 %v5835_v14, %v3691_v62 }
 0x7e2   : > { %v3703_v19 = vshll.u32 %v5836_v16, %v3691_v62  ;;  %v3706_v34 = vshll.u32 %v5837_v18, %v3691_v62  ;;  %vm3709_vm5 = vcmp.lt.s32.totalorder %v3690_v11, 1  ;;  %vm3710_vm6 = vcmp.lt.s32.totalorder %v3690_v11, 2 }
 0x7e3   : > { %v3695_v5 = vshrl.u32 %v5834_v12, %v3692_v13  ;;  %v3698_v17 = vshrl.u32 %v5835_v14, %v3692_v13  ;;  %v3701_v23 = vshrl.u32 %v5836_v16, %v3692_v13  ;;  %v3693_v0 = vshrl.u32 %v5833_v6, %v3692_v13 }
 0x7e4   : > { %v3704_v52 = vshrl.u32 %v5837_v18, %v3692_v13  ;;  %v3707_v30 = vshrl.u32 %v5838_v25, %v3692_v13  ;;  %vm3711_vm7 = vcmp.lt.s32.totalorder %v3690_v11, 3  ;;  %v3484_v27 = vsub.s32 32, %v3483_v57 }
 0x7e5   : > { %v3696_v20 = vor.u32 %v3695_v5, %v3694_v55  ;;  %v3699_v59 = vor.u32 %v3698_v17, %v3697_v51  ;;  %v3702_v39 = vor.u32 %v3701_v23, %v3700_v50  ;;  %vm3712_vm8 = vcmp.lt.s32.totalorder %v3690_v11, 4 }
 0x7e6   : > { %v3705_v49 = vor.u32 %v3704_v52, %v3703_v19  ;;  %v3708_v22 = vor.u32 %v3707_v30, %v3706_v34  ;;  %v3486_v48 = vshll.u32 %v5833_v6, %v3483_v57  ;;  %v3489_v56 = vshll.u32 %v5834_v12, %v3483_v57 }
 0x7e7   : > { %v3713_v63 = vsel %vm3709_vm5, %v3693_v0, %v3696_v20  ;;  %v3714_v45 = vsel %vm3712_vm8, %v3702_v39, 2102212464  ;;  %v3717_v40 = vsel %vm3709_vm5, %v3696_v20, %v3699_v59  ;;  %v3721_v37 = vsel %vm3709_vm5, %v3699_v59, %v3702_v39 }
 0x7e8   : > { %v3715_v41 = vsel %vm3711_vm7, %v3699_v59, %v3714_v45  ;;  %v3718_v35 = vsel %vm3712_vm8, %v3705_v49, 920167782  ;;  %v3722_v24 = vsel %vm3712_vm8, %v3708_v22, 1326507024  ;;  %v3485_v54 = vshrl.u32 %v5833_v6, %v3484_v27 }
 0x7e9   : > { %v3719_v26 = vsel %vm3711_vm7, %v3702_v39, %v3718_v35  ;;  %v3723_v60 = vsel %vm3711_vm7, %v3705_v49, %v3722_v24  ;;  %v3487_v36 = vshrl.u32 %v5834_v12, %v3484_v27  ;;  %v3716_v2 = vsel %vm3710_vm6, %v3713_v63, %v3715_v41 }
 0x7ea   : > { %v3720_v7 = vsel %vm3710_vm6, %v3717_v40, %v3719_v26  ;;  %v3724_v43 = vsel %vm3710_vm6, %v3721_v37, %v3723_v60  ;;  %v3490_v9 = vshrl.u32 %v5835_v14, %v3484_v27  ;;  %v3492_v50 = vshll.u32 %v5835_v14, %v3483_v57 }
 0x7eb   : > { %v7446_v62 = vmul.u32.u64.low %v7404_v31, %v3724_v43  ;;  %v7447_v38 = vmul.u32.u64.high %v7404_v31, %v3724_v43, %v7446_v62  ;;  %v7450_v58 = vmul.u32.u64.low %v7404_v31, %v3720_v7  ;;  %v7451_v13 = vmul.u32.u64.high %v7404_v31, %v3720_v7, %v7450_v58 }
 0x7ec   : > { %v3488_v55 = vor.u32 %v3487_v36, %v3486_v48  ;;  %v3491_v51 = vor.u32 %v3490_v9, %v3489_v56  ;;  %v3493_v19 = vshrl.u32 %v5836_v16, %v3484_v27  ;;  %v3732_v11 = vmul.u32 %v7404_v31, %v3716_v2 }
 0x7ed   : > { %v3495_v34 = vshll.u32 %v5836_v16, %v3483_v57  ;;  %v3496_v5 = vshrl.u32 %v5837_v18, %v3484_v27  ;;  %v3499_v17 = vshrl.u32 %v5838_v25, %v3484_v27  ;;  %v3498_v0 = vshll.u32 %v5837_v18, %v3483_v57 }
 0x7ee   : > { %v3494_v23 = vor.u32 %v3493_v19, %v3492_v50  ;;  %vm3501_vm10 = vcmp.lt.s32.totalorder %v7408_v47, 1  ;;  %vm3502_vm11 = vcmp.lt.s32.totalorder %v7408_v47, 2  ;;  %vm3734_vm12 = vc.u32 %v7447_v38, %v7450_v58 }
 0x7ef   : > { %v3735_v52 = vadd.s32 1, %v7451_v13  ;;  %v3497_v30 = vor.u32 %v3496_v5, %v3495_v34  ;;  %vm3503_vm13 = vcmp.lt.s32.totalorder %v7408_v47, 3  ;;  %v3500_v31 = vor.u32 %v3499_v17, %v3498_v0 }
 0x7f0   : > { %vm3504_vm14 = vcmp.lt.s32.totalorder %v7408_v47, 4  ;;  %v3505_v20 = vsel %vm3501_vm10, %v3485_v54, %v3488_v55  ;;  %v3509_v59 = vsel %vm3501_vm10, %v3488_v55, %v3491_v51  ;;  %v3513_v49 = vsel %vm3501_vm10, %v3491_v51, %v3494_v23 }
 0x7f1   : > { %v3736_v39 = vsel %vm3734_vm12, %v3735_v52, %v7451_v13  ;;  %v3506_v57 = vsel %vm3504_vm14, %v3494_v23, 2102212464  ;;  %v3510_v27 = vsel %vm3504_vm14, %v3497_v30, 920167782  ;;  %v3514_v45 = vsel %vm3504_vm14, %v3500_v31, 1326507024 }
 0x7f2   : > { %v3737_v22 = vadd.s32 %v3736_v39, %v3732_v11  ;;  %v3507_v48 = vsel %vm3503_vm13, %v3491_v51, %v3506_v57  ;;  %v3511_v63 = vsel %vm3503_vm13, %v3494_v23, %v3510_v27  ;;  %v3515_v41 = vsel %vm3503_vm13, %v3497_v30, %v3514_v45 }
 0x7f3   : > { %v3508_v40 = vsel %vm3502_vm11, %v3505_v20, %v3507_v48  ;;  %v3512_v37 = vsel %vm3502_vm11, %v3509_v59, %v3511_v63  ;;  %v3793_v35 = vsel %vm3792_vm9, %v7411_v4, 0  ;;  %v3516_v56 = vsel %vm3502_vm11, %v3513_v49, %v3515_v41 }
 0x7f4   : > { %v3738_v24 = vadd.s32 536870912, %v3737_v22  ;;  %v7479_v26 = vmul.u32.u64.low %v7406_v32, %v3512_v37  ;;  %v7480_v60 = vmul.u32.u64.high %v7406_v32, %v3512_v37, %v7479_v26  ;;  %v3794_v2 = vshrl.u32 %v3793_v35, 5 }
 0x7f5   : > { %v7484_v54 = vmul.u32.u64.low %v7406_v32, %v3516_v56  ;;  %v7485_v36 = vmul.u32.u64.high %v7406_v32, %v3516_v56, %v7484_v54  ;;  %v3795_v43 = vand.u32 31, %v3793_v35  ;;  %v3524_v9 = vmul.u32 %v7406_v32, %v3508_v40 }
 0x7f6   : > { %v7487_v7 = vshrl.u32 %v3738_v24, 30  ;;  %v7492_v4 = vshll.u32 %v3789_v44, 8  ;;  %v3527_v62 = vadd.s32 1, %v7480_v60  ;;  %v5206_v55 = vadd.s32 4294967169, %v7418_v29 }
 0x7f7   : > { %v3796_v13 = vsub.s32 32, %v3795_v43  ;;  %vm3526_vm15 = vc.u32 %v7485_v36, %v7479_v26  ;;  %v3798_v51 = vshll.u32 %v5833_v6, %v3795_v43  ;;  %v3801_v50 = vshll.u32 %v5834_v12, %v3795_v43 }
 0x7f8   : > { %v3740_v47 = vshll.u32 %v7487_v7, 30  ;;  %vm3813_vm0 = vcmp.lt.s32.totalorder %v3794_v2, 1  ;;  %v3528_v8 = vsel %vm3526_vm15, %v3527_v62, %v7480_v60  ;;  %v3804_v19 = vshll.u32 %v5835_v14, %v3795_v43 }
 0x7f9   : > { %v3799_v44 = vshrl.u32 %v5834_v12, %v3796_v13  ;;  %v3529_v11 = vadd.s32 %v3528_v8, %v3524_v9  ;;  %v3802_v34 = vshrl.u32 %v5835_v14, %v3796_v13  ;;  %v3805_v29 = vshrl.u32 %v5836_v16, %v3796_v13 }
 0x7fa   : > { %v7501_v32 = vsub.s32 %v3737_v22, %v3740_v47  ;;  %v3807_v5 = vshll.u32 %v5836_v16, %v3795_v43  ;;  %v3808_v0 = vshrl.u32 %v5837_v18, %v3796_v13  ;;  %v3810_v52 = vshll.u32 %v5837_v18, %v3795_v43 }
 0x7fb   : > { %v3800_v23 = vor.u32 %v3799_v44, %v3798_v51  ;;  %v3530_v30 = vadd.s32 536870912, %v3529_v11  ;;  %v3803_v31 = vor.u32 %v3802_v34, %v3801_v50  ;;  %v3806_v20 = vor.u32 %v3805_v29, %v3804_v19 }
 0x7fc   : > { %v3743_v17 = vsub.s32 0, %v7501_v32  ;;  %v3811_v59 = vshrl.u32 %v5838_v25, %v3796_v13  ;;  %v3809_v39 = vor.u32 %v3808_v0, %v3807_v5  ;;  %vm3814_vm1 = vcmp.lt.s32.totalorder %v3794_v2, 2 }
 0x7fd   : > { %vm3815_vm3 = vcmp.lt.s32.totalorder %v3794_v2, 3  ;;  %vm3816_vm4 = vcmp.lt.s32.totalorder %v3794_v2, 4  ;;  %v7513_v57 = vshrl.u32 %v3530_v30, 30  ;;  %v3821_v22 = vsel %vm3813_vm0, %v3800_v23, %v3803_v31 }
 0x7fe   : > { %v3812_v27 = vor.u32 %v3811_v59, %v3810_v52  ;;  %v3818_v49 = vsel %vm3816_vm4, %v3806_v20, 2102212464  ;;  %v3797_v48 = vshrl.u32 %v5833_v6, %v3796_v13  ;;  %v3822_v63 = vsel %vm3816_vm4, %v3809_v39, 920167782 }
 0x7ff   : > { %v3825_v45 = vsel %vm3813_vm0, %v3803_v31, %v3806_v20  ;;  %v3583_v40 = vadd.s32 1, %v5206_v55  ;;  %v5211_v37 = vmin.u32 %v3743_v17, %v7501_v32  ;;  %v3532_v41 = vshll.u32 %v7513_v57, 30 }
 0x800   : > { %v3823_v35 = vsel %vm3815_vm3, %v3806_v20, %v3822_v63  ;;  %v3826_v24 = vsel %vm3816_vm4, %v3812_v27, 1326507024  ;;  %v3817_v56 = vsel %vm3813_vm0, %v3797_v48, %v3800_v23  ;;  %v3819_v60 = vsel %vm3815_vm3, %v3803_v31, %v3818_v49 }
 0x801   : > { %v3824_v54 = vsel %vm3814_vm1, %v3821_v22, %v3823_v35  ;;  %v3827_v43 = vsel %vm3815_vm3, %v3809_v39, %v3826_v24  ;;  %v7525_v9 = vsub.s32 %v3529_v11, %v3532_v41  ;;  %vm3584_vm5 = vcmp.gt.s32.totalorder %v3583_v40, 0 }
 0x802   : > { %v3828_v47 = vsel %vm3814_vm1, %v3825_v45, %v3827_v43  ;;  %v7529_v62 = vmul.u32.u64.low %v7492_v4, %v3824_v54  ;;  %v7530_v13 = vmul.u32.u64.high %v7492_v4, %v3824_v54, %v7529_v62  ;;  %v3820_v8 = vsel %vm3814_vm1, %v3817_v56, %v3819_v60 }
 0x803   : > { %v7534_v55 = vmul.u32.u64.low %v7492_v4, %v3828_v47  ;;  %v7535_v51 = vmul.u32.u64.high %v7492_v4, %v3828_v47, %v7534_v55  ;;  %v3535_v50 = vsub.s32 0, %v7525_v9  ;;  %v3585_v44 = vsel %vm3584_vm5, %v3583_v40, 0 }
 0x804   : > { %v3573_v19 = vand.u32 2147483647, %v7397_v46  ;;  %v3745_v11 = vclz %v5211_v37  ;;  %v3839_v29 = vadd.s32 1, %v7530_v13  ;;  %v3587_v5 = vand.u32 31, %v3585_v44 }
 0x805   : > { %v5203_v34 = vmin.u32 %v3535_v50, %v7525_v9  ;;  %v3836_v17 = vmul.u32 %v7492_v4, %v3820_v8  ;;  %vm3838_vm6 = vc.u32 %v7535_v51, %v7529_v62  ;;  %v3586_v48 = vshrl.u32 %v3585_v44, 5 }
 0x806   : > { %v3840_v0 = vsel %vm3838_vm6, %v3839_v29, %v7530_v13  ;;  %v3588_v52 = vsub.s32 32, %v3587_v5  ;;  %v5212_v30 = vadd.s32 4294967294, %v3745_v11  ;;  %v3580_v31 = vand.u32 8388607, %v3573_v19 }
 0x807   : > { %v3537_v23 = vclz %v5203_v34  ;;  %v3841_v2 = vadd.s32 %v3840_v0, %v3836_v17  ;;  %v3590_v63 = vshll.u32 %v5833_v6, %v3587_v5  ;;  %v3593_v40 = vshll.u32 %v5834_v12, %v3587_v5 }
 0x808   : > { %v3591_v39 = vshrl.u32 %v5834_v12, %v3588_v52  ;;  %v3594_v4 = vshrl.u32 %v5835_v14, %v3588_v52  ;;  %v3597_v49 = vshrl.u32 %v5836_v16, %v3588_v52  ;;  %vm5213_vm7 = vcmp.lt.s32.totalorder %v5212_v30, 0 }
 0x809   : > { %v3842_v20 = vadd.s32 536870912, %v3841_v2  ;;  %v5204_v59 = vadd.s32 4294967294, %v3537_v23  ;;  %v3581_v22 = vor.u32 8388608, %v3580_v31  ;;  %v3596_v37 = vshll.u32 %v5835_v14, %v3587_v5 }
 0x80a   : > { %v3600_v41 = vshrl.u32 %v5837_v18, %v3588_v52  ;;  %v3592_v35 = vor.u32 %v3591_v39, %v3590_v63  ;;  %v3599_v24 = vshll.u32 %v5836_v16, %v3587_v5  ;;  %v3603_v56 = vshrl.u32 %v5838_v25, %v3588_v52 }
 0x80b   : > { %v7549_v27 = vshrl.u32 %v3842_v20, 30  ;;  %vm5205_vm8 = vcmp.lt.s32.totalorder %v5204_v59, 0  ;;  %v3595_v54 = vor.u32 %v3594_v4, %v3593_v40  ;;  %v3598_v43 = vor.u32 %v3597_v49, %v3596_v37 }
 0x80c   : > { %v3602_v47 = vshll.u32 %v5837_v18, %v3587_v5  ;;  %v3601_v13 = vor.u32 %v3600_v41, %v3599_v24  ;;  %v3540_v55 = vsel %vm5205_vm8, 0, %v5204_v59  ;;  %v7565_v44 = vsel %vm5213_vm7, 0, %v5212_v30 }
 0x80d   : > { %v3844_v45 = vshll.u32 %v7549_v27, 30  ;;  %vm3605_vm9 = vcmp.lt.s32.totalorder %v3586_v48, 1  ;;  %vm3608_vm10 = vcmp.lt.s32.totalorder %v3586_v48, 4  ;;  %v3621_v11 = vshll.u32 %v3581_v22, 8 }
 0x80e   : > { %v3604_v8 = vor.u32 %v3603_v56, %v3602_v47  ;;  %v3589_v29 = vshrl.u32 %v5833_v6, %v3588_v52  ;;  %v3610_v17 = vsel %vm3608_vm10, %v3598_v43, 2102212464  ;;  %v3613_v23 = vsel %vm3605_vm9, %v3592_v35, %v3595_v54 }
 0x80f   : > { %v7560_v60 = vsub.s32 %v3841_v2, %v3844_v45  ;;  %v3545_v0 = vsub.s32 4294967266, %v3540_v55  ;;  %vm3606_vm11 = vcmp.lt.s32.totalorder %v3586_v48, 2  ;;  %vm3607_vm12 = vcmp.lt.s32.totalorder %v3586_v48, 3 }
 0x810   : > { %v3614_v5 = vsel %vm3608_vm10, %v3601_v13, 920167782  ;;  %v3617_v20 = vsel %vm3605_vm9, %v3595_v54, %v3598_v43  ;;  %v3618_v59 = vsel %vm3608_vm10, %v3604_v8, 1326507024  ;;  %v3609_v39 = vsel %vm3605_vm9, %v3589_v29, %v3592_v35 }
 0x811   : > { %v3847_v50 = vsub.s32 0, %v7560_v60  ;;  %v3615_v31 = vsel %vm3607_vm12, %v3598_v43, %v3614_v5  ;;  %v3611_v30 = vsel %vm3607_vm12, %v3595_v54, %v3610_v17  ;;  %v3619_v49 = vsel %vm3607_vm12, %v3601_v13, %v3618_v59 }
 0x812   : > { %v3616_v4 = vsel %vm3606_vm11, %v3613_v23, %v3615_v31  ;;  %v3620_v63 = vsel %vm3606_vm11, %v3617_v20, %v3619_v49  ;;  %v3753_v40 = vsub.s32 4294967266, %v7565_v44  ;;  %v3546_v24 = vadd.s32 127, %v3545_v0 }
 0x813   : > { %v5215_v34 = vmin.u32 %v3847_v50, %v7560_v60  ;;  %v7571_v45 = vmul.u32.u64.low %v3621_v11, %v3616_v4  ;;  %v7572_v52 = vmul.u32.u64.high %v3621_v11, %v3616_v4, %v7571_v45  ;;  %v3612_v35 = vsel %vm3606_vm11, %v3609_v39, %v3611_v30 }
 0x814   : > { %v7576_v37 = vmul.u32.u64.low %v3621_v11, %v3620_v63  ;;  %v7577_v41 = vmul.u32.u64.high %v3621_v11, %v3620_v63, %v7576_v37  ;;  %v3541_v54 = vsub.s32 32, %v3540_v55  ;;  %v3754_v47 = vadd.s32 127, %v3753_v40 }
 0x815   : > { %v3849_v2 = vclz %v5215_v34  ;;  %v3525_v13 = vadd.s32 %v7479_v26, %v7485_v36  ;;  %v3631_v50 = vadd.s32 1, %v7572_v52  ;;  %v3547_v8 = vshll.u32 %v3546_v24, 23 }
 0x816   : > { %vm3630_vm14 = vc.u32 %v7577_v41, %v7571_v45  ;;  %v3628_v17 = vmul.u32 %v3621_v11, %v3612_v35  ;;  %v3749_v23 = vsub.s32 32, %v7565_v44  ;;  %v3837_v5 = vadd.s32 %v7529_v62, %v7535_v51 }
 0x817   : > { %v5216_v22 = vadd.s32 4294967294, %v3849_v2  ;;  %v3632_v48 = vsel %vm3630_vm14, %v3631_v50, %v7572_v52  ;;  %v3543_v0 = vshrl.u32 %v3525_v13, %v3541_v54  ;;  %v3733_v26 = vadd.s32 %v7450_v58, %v7447_v38 }
 0x818   : > { %v3633_v31 = vadd.s32 %v3632_v48, %v3628_v17  ;;  %v3755_v36 = vshll.u32 %v3754_v47, 23  ;;  %v3542_v20 = vshll.u32 %v7525_v9, %v3540_v55  ;;  %v3548_v59 = vor.u32 4788187, %v3547_v8 }
 0x819   : > { %vm5217_vm13 = vcmp.lt.s32.totalorder %v5216_v22, 0  ;;  %v3751_v11 = vshrl.u32 %v3733_v26, %v3749_v23  ;;  %v3750_v62 = vshll.u32 %v7501_v32, %v7565_v44  ;;  %vm3471_vm15 = vcmp.lt.s32.totalorder %v7383_v42, 0 }
 0x81a   : > { %v3852_v56 = vsel %vm5217_vm13, 0, %v5216_v22  ;;  %v3634_v30 = vadd.s32 536870912, %v3633_v31  ;;  %v3544_v4 = vor.u32 %v3543_v0, %v3542_v20  ;;  %v3756_v51 = vor.u32 4788187, %v3755_v36 }
 0x81b   : > { %v3857_v43 = vsub.s32 4294967266, %v3852_v56  ;;  %v3853_v34 = vsub.s32 32, %v3852_v56  ;;  %v3854_v49 = vshll.u32 %v7560_v60, %v3852_v56  ;;  %v3549_v52 = vand.u32 2147483647, %v3548_v59 }
 0x81c   : > { %v7593_v63 = vshrl.u32 %v3634_v30, 30  ;;  %v3752_v58 = vor.u32 %v3751_v11, %v3750_v62  ;;  %v3551_v9 = vcvt.s32.f32 %v3544_v4  ;;  %v3757_v24 = vand.u32 2147483647, %v3756_v51 }
 0x81d   : > { %v3858_v29 = vadd.s32 127, %v3857_v43  ;;  %v3855_v39 = vshrl.u32 %v3837_v5, %v3853_v34  ;;  %vm7603_vm1 = vcmp.le.f32.partialorder %v3469_v61, 0.7853982  ;;  %vm3783_vm3 = vcmp.lt.s32.totalorder %v7387_v1, 0 }
 0x81e   : > { %v3636_v38 = vshll.u32 %v7593_v63, 30  ;;  %v3552_v35 = vmul.f32 %v3551_v9, %v3549_v52  ;;  %v3759_v60 = vcvt.s32.f32 %v3752_v58  ;;  %v3629_v0 = vadd.s32 %v7571_v45, %v7577_v41 }
 0x81f   : > { %v3859_v2 = vshll.u32 %v3858_v29, 23  ;;  %v3856_v40 = vor.u32 %v3855_v39, %v3854_v49  ;;  %vm3679_vm4 = vcmp.lt.s32.totalorder %v7381_v10, 0  ;;  %vm7618_vm5 = vcmp.le.f32.partialorder %v3781_v33, 0.7853982 }
 0x820   : > { %v3637_v37 = vsub.s32 %v3633_v31, %v3636_v38  ;;  %v3760_v13 = vmul.f32 %v3759_v60, %v3757_v24  ;;  %v3553_v50 = vxor.u32 2147483648, %v3552_v35  ;;  %vm7626_vm6 = vcmp.le.f32.partialorder %v3677_v15, 0.7853982 }
 0x821   : > { %v3860_v22 = vor.u32 4788187, %v3859_v2  ;;  %v3863_v54 = vcvt.s32.f32 %v3856_v40  ;;  %v3555_v30 = vsub.s32 4, %v7513_v57  ;;  %v3867_v4 = vsub.s32 4, %v7549_v27 }
 0x822   : > { %v3639_v43 = vsub.s32 0, %v3637_v37  ;;  %v3761_v34 = vxor.u32 2147483648, %v3760_v13  ;;  %v3554_v29 = vsel %vm3471_vm15, %v3553_v50, %v3552_v35  ;;  %v3763_v49 = vsub.s32 4, %v7487_v7 }
 0x823   : > { %v3861_v55 = vand.u32 2147483647, %v3860_v22  ;;  %v3557_v61 = vsel %vm7603_vm1, %v7383_v42, %v3554_v29  ;;  %v3556_v51 = vsel %vm3471_vm15, %v3555_v30, %v7513_v57  ;;  %v3868_v52 = vsel %vm3783_vm3, %v3867_v4, %v7549_v27 }
 0x824   : > { %v5207_v47 = vmin.u32 %v3639_v43, %v3637_v37  ;;  %v3762_v26 = vsel %vm3679_vm4, %v3761_v34, %v3760_v13  ;;  %5700 = vcosq.f32 %v3557_v61  ;;  %v3659_v38 = vsub.s32 4, %v7593_v63 }
 0x825   : > { %v3864_v56 = vmul.f32 %v3863_v54, %v3861_v55  ;;  %v3765_v11 = vsel %vm7626_vm6, %v7381_v10, %v3762_v26  ;;  %5702 = vsinq.f32 %v3557_v61  ;;  %v3558_v58 = vsel %vm7603_vm1, 0, %v3556_v51 }
 0x826   : > { %v3641_v8 = vclz %v5207_v47  ;;  %v3764_v9 = vsel %vm3679_vm4, %v3763_v49, %v7487_v7  ;;  %vm7655_vm7 = vcmp.le.f32.partialorder %v3573_v19, 0.7853982  ;;  %vm3575_vm8 = vcmp.lt.s32.totalorder %v7397_v46, 0 }
 0x827   : > { %v3865_v32 = vxor.u32 2147483648, %v3864_v56  ;;  %v3562_v35 = vadd.s32 3, %v3558_v58  ;;  %v3660_v54 = vsel %vm3575_vm8, %v3659_v38, %v7593_v63  ;;  %v3766_v7 = vsel %vm7626_vm6, 0, %v3764_v9 }
 0x828   : > { %v5208_v44 = vadd.s32 4294967294, %v3641_v8  ;;  %v3662_v13 = vsel %vm7655_vm7, 0, %v3660_v54  ;;  %v3770_v50 = vadd.s32 3, %v3766_v7  ;;  %vm3561_vm1 = vweird.f32 %v7383_v42 }
 0x829   : > { %v3866_v48 = vsel %vm3783_vm3, %v3865_v32, %v3864_v56  ;;  %v3563_v32 = vand.u32 3, %v3562_v35  ;;  %v3666_v17 = vadd.s32 3, %v3662_v13  ;;  %vm3873_vm6 = vweird.f32 %v7387_v1 }
 0x82a   : > { %vm5209_vm0 = vcmp.lt.s32.totalorder %v5208_v44, 0  ;;  %v3869_v59 = vsel %vm7618_vm5, %v7387_v1, %v3866_v48 }
 0x82b   : > { %v3644_v23 = vsel %vm5209_vm0, 0, %v5208_v44  ;;  %5704 = vcosq.f32 %v3869_v59  ;;  %vm3568_vm9 = vcmp.eq.s32.totalorder %v3563_v32, 2  ;;  %vm3565_vm10 = vcmp.eq.s32.totalorder %v3563_v32, 0 }
 0x82c   : > { %v3645_v5 = vsub.s32 32, %v3644_v23  ;;  %v3649_v2 = vsub.s32 4294967266, %v3644_v23  ;;  %v3646_v36 = vshll.u32 %v3637_v37, %v3644_v23  ;;  %5706 = vsinq.f32 %v3869_v59 }
 0x82d   : > { %5708 = vcosq.f32 %v3765_v11  ;;  %v3870_v37 = vsel %vm7618_vm5, 0, %v3868_v52  ;;  %v3667_v26 = vand.u32 3, %v3666_v17  ;;  %vm3564_vm15 = vcmp.lt.s32.totalorder %v3563_v32, 2 }
 0x82e   : > { %v3647_v20 = vshrl.u32 %v3629_v0, %v3645_v5  ;;  %v3650_v45 = vadd.s32 127, %v3649_v2  ;;  %5710 = vsinq.f32 %v3765_v11  ;;  %v5701_v27 = vpop.eup %5700  ;;  %v3874_v56 = vadd.s32 3, %v3870_v37 }
 0x82f   : > { %v5703_v43 = vpop.eup %5702  ;;  %v3569_v44 = vxor.u32 2147483648, %v5701_v27  ;;  %v3771_v0 = vand.u32 3, %v3770_v50  ;;  %vm3672_vm3 = vcmp.eq.s32.totalorder %v3667_v26, 2  ;;  %vm3669_vm5 = vcmp.eq.s32.totalorder %v3667_v26, 0 }
 0x830   : > { %v3648_v33 = vor.u32 %v3647_v20, %v3646_v36  ;;  %v3651_v39 = vshll.u32 %v3650_v45, 23  ;;  %v3875_v34 = vand.u32 3, %v3874_v56  ;;  %v3566_v29 = vxor.u32 2147483648, %v5703_v43 }
 0x831   : > { %v3570_v61 = vsel %vm3568_vm9, %v3569_v44, %v5703_v43  ;;  %vm3773_vm13 = vcmp.eq.s32.totalorder %v3771_v0, 0  ;;  %vm3776_vm14 = vcmp.eq.s32.totalorder %v3771_v0, 2  ;;  %vm3772_vm4 = vcmp.lt.s32.totalorder %v3771_v0, 2 }
 0x832   : > { %v3652_v15 = vor.u32 4788187, %v3651_v39  ;;  %v3655_v62 = vcvt.s32.f32 %v3648_v33  ;;  %vm3877_vm11 = vcmp.eq.s32.totalorder %v3875_v34, 0  ;;  %vm3880_vm12 = vcmp.eq.s32.totalorder %v3875_v34, 2 }
 0x833   : > { %v3567_v31 = vsel %vm3565_vm10, %v5701_v27, %v3566_v29  ;;  %vm3876_vm0 = vcmp.lt.s32.totalorder %v3875_v34, 2  ;;  %vm3769_vm9 = vweird.f32 %v7381_v10 }
 0x834   : > { %v3653_v22 = vand.u32 2147483647, %v3652_v15  ;;  %v3571_v39 = vsel %vm3564_vm15, %v3567_v31, %v3570_v61 }
 0x835   : > { %v5705_v19 = vpop.eup %5704 }
 0x836   : > { %v3656_v40 = vmul.f32 %v3655_v62, %v3653_v22  ;;  %v5707_v47 = vpop.eup %5706  ;;  %v3881_v48 = vxor.u32 2147483648, %v5705_v19  ;;  %v3572_v22 = vsel %vm3561_vm1, nan, %v3571_v39 }
 0x837   : > { %v5709_v8 = vpop.eup %5708  ;;  %v3878_v23 = vxor.u32 2147483648, %v5707_v47  ;;  %v7673_v42 = vadd.f32 %v3572_v22, %v7074_v28  ;;  %v5625_v28 = vld [vmem:[%s8318_s6 + $0x48] sm:$0xff]  }
 0x838   : > { %v3657_v55 = vxor.u32 2147483648, %v3656_v40  ;;  %v5711_v63 = vpop.eup %5710  ;;  %v3777_v2 = vxor.u32 2147483648, %v5709_v8  ;;  %v3882_v20 = vsel %vm3880_vm12, %v3881_v48, %v5707_v47 }
 0x839   : > { %v3774_v5 = vxor.u32 2147483648, %v5711_v63  ;;  %v3879_v36 = vsel %vm3877_vm11, %v5705_v19, %v3878_v23 }
 0x83a   : > { %v3658_v24 = vsel %vm3575_vm8, %v3657_v55, %v3656_v40  ;;  %v3778_v59 = vsel %vm3776_vm14, %v3777_v2, %v5711_v63  ;;  %v3883_v11 = vsel %vm3876_vm0, %v3879_v36, %v3882_v20  ;;  %vm3665_vm8 = vweird.f32 %v7397_v46  ;;  %v5626_v20 = vld [vmem:[%s8318_s6 + $0x50] sm:$0xff]  }
 0x83b   : > { %v3661_v60 = vsel %vm7655_vm7, %v7397_v46, %v3658_v24  ;;  %v3775_v41 = vsel %vm3773_vm13, %v5709_v8, %v3774_v5  ;;  %vm3668_vm7 = vcmp.lt.s32.totalorder %v3667_v26, 2  ;;  %v3884_v51 = vsel %vm3873_vm6, nan, %v3883_v11  ;;  %5411 = vmatprep.mubr.msk.bf16.mxu1 %vm1329_vm2, %v5626_v20 }
 0x83c   : > { %5712 = vcosq.f32 %v3661_v60  ;;  %v3779_v49 = vsel %vm3772_vm4, %v3775_v41, %v3778_v59  ;;  %v7679_v9 = vadd.f32 %v3884_v51, %v7080_v21  ;;  %v3910_v21 = vpop.permute.xlu1 %3909 }
 0x83d   : > { %5714 = vsinq.f32 %v3661_v60  ;;  %v3780_v38 = vsel %vm3769_vm9, nan, %v3779_v49 }
 0x83e   : > { %v7684_v55 = vadd.f32 %v3780_v38, %v7085_v3  ;;  %v3987_v3 = vstv %s5218_s16 }
 0x840   : > { %v3896_v10 = vpack.c.bf16 %v7679_v9, %v7684_v55  ;;  %v3920_v24 = vpop.permute.xlu1 %3919 }
 0x846   : > { %v5713_v45 = vpop.eup %5712 }
 0x847   : > { %v5715_v33 = vpop.eup %5714  ;;  %v3673_v30 = vxor.u32 2147483648, %v5713_v45 }
 0x848   : > { %v3670_v4 = vxor.u32 2147483648, %v5715_v33 }
 0x849   : > { %v3674_v15 = vsel %vm3672_vm3, %v3673_v30, %v5715_v33 }
 0x84a   : > { %v3671_v62 = vsel %vm3669_vm5, %v5713_v45, %v3670_v4 }
 0x84b   : > { %v3675_v52 = vsel %vm3668_vm7, %v3671_v62, %v3674_v15 }
 0x84c   : > { %v3676_v40 = vsel %vm3665_vm8, nan, %v3675_v52 }
 0x84d   : > { %v7676_v58 = vadd.f32 %v3676_v40, %v7077_v53  ;;  %v3905_v53 = vpop.permute.xlu0 %3904 }
 0x84f   : > { %v3895_v1 = vpack.c.bf16 %v7676_v58, %v7673_v42 }
 0x851   : > { %5399 = vmatprep.subr.bf16.mxu0 %v3895_v1  ;;  %v3915_v46 = vpop.permute.xlu0 %3914 }
 0x852   : > { %5400 = vmatpush3.bf16.msra.mxu0 %v3895_v1 }
 0x853   : > { %5401 = vmatprep.subr.bf16.mxu0 %v3896_v10 }
 0x856   : > { %5402 = vmatpush3.bf16.msra.mxu0 %v3896_v10 }
 0x859   : > { %5404 = vmatmul.mubr.msk.bf16.vlgmr.msra.gmra.mrb[8].mxu0 %vm1329_vm2, %v5625_v28 }
 0x92c   : > { %v5405_v37 = vpop.f32.mrb[8].mxu0 }
 0x92d   : > { %v3981_v57 = vadd.f32 %v5405_v37, %v3915_v46  ;;  %v3972_v27 = vpop.f32.mrb[9].mxu0 }
 0x92e   : > { %v3973_v35 = vadd.f32 %v3972_v27, %v3905_v53  ;;  %v5406_v54 = vpop.f32.mrb[10].mxu0 }
 0x92f   : > { %v7692_v7 = vmul.f32 %v3987_v3, %v3981_v57  ;;  %v3984_v43 = vadd.f32 %v5406_v54, %v3920_v24  ;;  %v3975_v60 = vpop.f32.mrb[11].mxu0 }
 0x930   : > { %v7694_v56 = vmul.f32 %v3987_v3, %v3973_v35  ;;  %v3976_v19 = vadd.f32 %v3975_v60, %v3910_v21 }
 0x931   : > { %v4200_v47 = vand.u32 2147483647, %v7692_v7  ;;  %v4203_v13 = vand.u32 2139095040, %v7692_v7  ;;  %v7698_v50 = vmul.f32 %v3987_v3, %v3984_v43 }
 0x932   : > { %v3992_v8 = vand.u32 2147483647, %v7694_v56  ;;  %v3995_v32 = vand.u32 2139095040, %v7694_v56  ;;  %v7702_v63 = vmul.f32 %v3987_v3, %v3976_v19 }
 0x933   : > { %v4204_v44 = vshrl.u32 %v4203_v13, 23  ;;  %v4207_v34 = vand.u32 8388607, %v4200_v47  ;;  %v4304_v29 = vand.u32 2147483647, %v7698_v50  ;;  %v4307_v48 = vand.u32 2139095040, %v7698_v50 }
 0x934   : > { %v3996_v17 = vshrl.u32 %v3995_v32, 23  ;;  %v3999_v23 = vand.u32 8388607, %v3992_v8  ;;  %v4099_v31 = vand.u32 2139095040, %v7702_v63 }
 0x935   : > { %v5239_v0 = vadd.s32 4294967169, %v4204_v44  ;;  %v4208_v5 = vor.u32 8388608, %v4207_v34  ;;  %v4308_v61 = vshrl.u32 %v4307_v48, 23  ;;  %v7713_v36 = vand.u32 8388607, %v4304_v29 }
 0x936   : > { %v5231_v2 = vadd.s32 4294967169, %v3996_v17  ;;  %v4000_v45 = vor.u32 8388608, %v3999_v23  ;;  %v4100_v33 = vshrl.u32 %v4099_v31, 23 }
 0x937   : > { %v4210_v26 = vadd.s32 1, %v5239_v0  ;;  %v5243_v59 = vadd.s32 4294967169, %v4308_v61  ;;  %v7719_v30 = vshll.u32 %v4208_v5, 8  ;;  %v4312_v22 = vor.u32 8388608, %v7713_v36 }
 0x938   : > { %v4002_v41 = vadd.s32 1, %v5231_v2  ;;  %v5235_v11 = vadd.s32 4294967169, %v4100_v33  ;;  %v7724_v52 = vshll.u32 %v4000_v45, 8 }
 0x939   : > { %vm4211_vm10 = vcmp.gt.s32.totalorder %v4210_v26, 0  ;;  %v7726_v40 = vadd.s32 1, %v5243_v59 }
 0x93a   : > { %v4212_v39 = vsel %vm4211_vm10, %v4210_v26, 0  ;;  %vm4003_vm11 = vcmp.gt.s32.totalorder %v4002_v41, 0  ;;  %v7730_v28 = vadd.s32 1, %v5235_v11 }
 0x93b   : > { %v4213_v4 = vshrl.u32 %v4212_v39, 5  ;;  %v4214_v15 = vand.u32 31, %v4212_v39  ;;  %v4004_v49 = vsel %vm4003_vm11, %v4002_v41, 0  ;;  %vm4315_vm0 = vcmp.gt.s32.totalorder %v7726_v40, 0 }
 0x93c   : > { %v7722_v62 = vshrl.u32 %v4004_v49, 5  ;;  %v4006_v51 = vand.u32 31, %v4004_v49  ;;  %vm4107_vm7 = vcmp.gt.s32.totalorder %v7730_v28, 0 }
 0x93d   : > { %v4215_v38 = vsub.s32 32, %v4214_v15  ;;  %v4217_v1 = vshll.u32 %v5833_v6, %v4214_v15  ;;  %v4220_v10 = vshll.u32 %v5834_v12, %v4214_v15  ;;  %v4223_v53 = vshll.u32 %v5835_v14, %v4214_v15 }
 0x93e   : > { %v4226_v21 = vshll.u32 %v5836_v16, %v4214_v15  ;;  %v4229_v46 = vshll.u32 %v5837_v18, %v4214_v15  ;;  %vm4232_vm12 = vcmp.lt.s32.totalorder %v4213_v4, 1  ;;  %vm4233_vm13 = vcmp.lt.s32.totalorder %v4213_v4, 2 }
 0x93f   : > { %v4218_v37 = vshrl.u32 %v5834_v12, %v4215_v38  ;;  %v4221_v3 = vshrl.u32 %v5835_v14, %v4215_v38  ;;  %v4224_v57 = vshrl.u32 %v5836_v16, %v4215_v38  ;;  %v4216_v27 = vshrl.u32 %v5833_v6, %v4215_v38 }
 0x940   : > { %v4227_v24 = vshrl.u32 %v5837_v18, %v4215_v38  ;;  %v4230_v35 = vshrl.u32 %v5838_v25, %v4215_v38  ;;  %vm4234_vm14 = vcmp.lt.s32.totalorder %v4213_v4, 3  ;;  %v4007_v19 = vsub.s32 32, %v4006_v51 }
 0x941   : > { %v4219_v54 = vor.u32 %v4218_v37, %v4217_v1  ;;  %v4222_v43 = vor.u32 %v4221_v3, %v4220_v10  ;;  %v4225_v60 = vor.u32 %v4224_v57, %v4223_v53  ;;  %vm4235_vm15 = vcmp.lt.s32.totalorder %v4213_v4, 4 }
 0x942   : > { %v4228_v13 = vor.u32 %v4227_v24, %v4226_v21  ;;  %v4231_v32 = vor.u32 %v4230_v35, %v4229_v46  ;;  %v4009_v44 = vshll.u32 %v5833_v6, %v4006_v51  ;;  %v4012_v61 = vshll.u32 %v5834_v12, %v4006_v51 }
 0x943   : > { %v4236_v34 = vsel %vm4232_vm12, %v4216_v27, %v4219_v54  ;;  %v4237_v17 = vsel %vm4235_vm15, %v4225_v60, 2102212464  ;;  %v4240_v23 = vsel %vm4232_vm12, %v4219_v54, %v4222_v43  ;;  %v4244_v48 = vsel %vm4232_vm12, %v4222_v43, %v4225_v60 }
 0x944   : > { %v4238_v0 = vsel %vm4234_vm14, %v4222_v43, %v4237_v17  ;;  %v4241_v5 = vsel %vm4235_vm15, %v4228_v13, 920167782  ;;  %v4245_v2 = vsel %vm4235_vm15, %v4231_v32, 1326507024  ;;  %v4008_v20 = vshrl.u32 %v5833_v6, %v4007_v19 }
 0x945   : > { %v4242_v31 = vsel %vm4234_vm14, %v4225_v60, %v4241_v5  ;;  %v4246_v26 = vsel %vm4234_vm14, %v4228_v13, %v4245_v2  ;;  %v4010_v45 = vshrl.u32 %v5834_v12, %v4007_v19  ;;  %v4239_v41 = vsel %vm4233_vm13, %v4236_v34, %v4238_v0 }
 0x946   : > { %v4243_v59 = vsel %vm4233_vm13, %v4240_v23, %v4242_v31  ;;  %v4247_v33 = vsel %vm4233_vm13, %v4244_v48, %v4246_v26  ;;  %v4013_v39 = vshrl.u32 %v5835_v14, %v4007_v19  ;;  %v4015_v53 = vshll.u32 %v5835_v14, %v4006_v51 }
 0x947   : > { %v7757_v11 = vmul.u32.u64.low %v7719_v30, %v4247_v33  ;;  %v7758_v15 = vmul.u32.u64.high %v7719_v30, %v4247_v33, %v7757_v11  ;;  %v7761_v49 = vmul.u32.u64.low %v7719_v30, %v4243_v59  ;;  %v7762_v38 = vmul.u32.u64.high %v7719_v30, %v4243_v59, %v7761_v49 }
 0x948   : > { %v4011_v1 = vor.u32 %v4010_v45, %v4009_v44  ;;  %v4014_v10 = vor.u32 %v4013_v39, %v4012_v61  ;;  %v4016_v21 = vshrl.u32 %v5836_v16, %v4007_v19  ;;  %v4255_v4 = vmul.u32 %v7719_v30, %v4239_v41 }
 0x949   : > { %v4018_v46 = vshll.u32 %v5836_v16, %v4006_v51  ;;  %v4019_v37 = vshrl.u32 %v5837_v18, %v4007_v19  ;;  %v4022_v3 = vshrl.u32 %v5838_v25, %v4007_v19  ;;  %v4021_v27 = vshll.u32 %v5837_v18, %v4006_v51 }
 0x94a   : > { %v4017_v57 = vor.u32 %v4016_v21, %v4015_v53  ;;  %vm4024_vm1 = vcmp.lt.s32.totalorder %v7722_v62, 1  ;;  %vm4025_vm3 = vcmp.lt.s32.totalorder %v7722_v62, 2  ;;  %vm4257_vm4 = vc.u32 %v7758_v15, %v7761_v49 }
 0x94b   : > { %v4258_v24 = vadd.s32 1, %v7762_v38  ;;  %v4020_v35 = vor.u32 %v4019_v37, %v4018_v46  ;;  %vm4026_vm5 = vcmp.lt.s32.totalorder %v7722_v62, 3  ;;  %v4023_v30 = vor.u32 %v4022_v3, %v4021_v27 }
 0x94c   : > { %vm4027_vm6 = vcmp.lt.s32.totalorder %v7722_v62, 4  ;;  %v4028_v54 = vsel %vm4024_vm1, %v4008_v20, %v4011_v1  ;;  %v4032_v43 = vsel %vm4024_vm1, %v4011_v1, %v4014_v10  ;;  %v4036_v13 = vsel %vm4024_vm1, %v4014_v10, %v4017_v57 }
 0x94d   : > { %v4259_v60 = vsel %vm4257_vm4, %v4258_v24, %v7762_v38  ;;  %v4029_v51 = vsel %vm4027_vm6, %v4017_v57, 2102212464  ;;  %v4033_v19 = vsel %vm4027_vm6, %v4020_v35, 920167782  ;;  %v4037_v17 = vsel %vm4027_vm6, %v4023_v30, 1326507024 }
 0x94e   : > { %v4260_v32 = vadd.s32 %v4259_v60, %v4255_v4  ;;  %v4030_v44 = vsel %vm4026_vm5, %v4014_v10, %v4029_v51  ;;  %v4034_v34 = vsel %vm4026_vm5, %v4017_v57, %v4033_v19  ;;  %v4038_v0 = vsel %vm4026_vm5, %v4020_v35, %v4037_v17 }
 0x94f   : > { %v4031_v23 = vsel %vm4025_vm3, %v4028_v54, %v4030_v44  ;;  %v4035_v48 = vsel %vm4025_vm3, %v4032_v43, %v4034_v34  ;;  %v4316_v5 = vsel %vm4315_vm0, %v7726_v40, 0  ;;  %v4039_v61 = vsel %vm4025_vm3, %v4036_v13, %v4038_v0 }
 0x950   : > { %v4261_v2 = vadd.s32 536870912, %v4260_v32  ;;  %v7790_v31 = vmul.u32.u64.low %v7724_v52, %v4035_v48  ;;  %v7791_v26 = vmul.u32.u64.high %v7724_v52, %v4035_v48, %v7790_v31  ;;  %v4317_v41 = vshrl.u32 %v4316_v5, 5 }
 0x951   : > { %v7795_v20 = vmul.u32.u64.low %v7724_v52, %v4039_v61  ;;  %v7796_v45 = vmul.u32.u64.high %v7724_v52, %v4039_v61, %v7795_v20  ;;  %v4318_v33 = vand.u32 31, %v4316_v5  ;;  %v4047_v39 = vmul.u32 %v7724_v52, %v4031_v23 }
 0x952   : > { %v7798_v59 = vshrl.u32 %v4261_v2, 30  ;;  %v7803_v40 = vshll.u32 %v4312_v22, 8  ;;  %v4050_v11 = vadd.s32 1, %v7791_v26  ;;  %vm4336_vm9 = vcmp.lt.s32.totalorder %v4317_v41, 1 }
 0x953   : > { %v4319_v38 = vsub.s32 32, %v4318_v33  ;;  %vm4049_vm8 = vc.u32 %v7796_v45, %v7790_v31  ;;  %v4321_v1 = vshll.u32 %v5833_v6, %v4318_v33  ;;  %v4324_v10 = vshll.u32 %v5834_v12, %v4318_v33 }
 0x954   : > { %v4263_v62 = vshll.u32 %v7798_v59, 30  ;;  %v4051_v36 = vsel %vm4049_vm8, %v4050_v11, %v7791_v26  ;;  %v4327_v53 = vshll.u32 %v5835_v14, %v4318_v33  ;;  %v4330_v37 = vshll.u32 %v5836_v16, %v4318_v33 }
 0x955   : > { %v4322_v22 = vshrl.u32 %v5834_v12, %v4319_v38  ;;  %v4052_v21 = vadd.s32 %v4051_v36, %v4047_v39  ;;  %v4325_v4 = vshrl.u32 %v5835_v14, %v4319_v38  ;;  %v4328_v46 = vshrl.u32 %v5836_v16, %v4319_v38 }
 0x956   : > { %v7812_v52 = vsub.s32 %v4260_v32, %v4263_v62  ;;  %v4331_v27 = vshrl.u32 %v5837_v18, %v4319_v38  ;;  %v4333_v24 = vshll.u32 %v5837_v18, %v4318_v33  ;;  %v4334_v43 = vshrl.u32 %v5838_v25, %v4319_v38 }
 0x957   : > { %v4323_v57 = vor.u32 %v4322_v22, %v4321_v1  ;;  %v4053_v35 = vadd.s32 536870912, %v4052_v21  ;;  %v4326_v30 = vor.u32 %v4325_v4, %v4324_v10  ;;  %v4329_v54 = vor.u32 %v4328_v46, %v4327_v53 }
 0x958   : > { %v4266_v3 = vsub.s32 0, %v7812_v52  ;;  %v4320_v60 = vshrl.u32 %v5833_v6, %v4319_v38  ;;  %v4332_v51 = vor.u32 %v4331_v27, %v4330_v37  ;;  %vm4337_vm10 = vcmp.lt.s32.totalorder %v4317_v41, 2 }
 0x959   : > { %vm4339_vm11 = vcmp.lt.s32.totalorder %v4317_v41, 4  ;;  %v7825_v19 = vshrl.u32 %v4053_v35, 30  ;;  %v4335_v13 = vor.u32 %v4334_v43, %v4333_v24  ;;  %v4344_v44 = vsel %vm4336_vm9, %v4323_v57, %v4326_v30 }
 0x95a   : > { %v4341_v32 = vsel %vm4339_vm11, %v4329_v54, 2102212464  ;;  %v5240_v34 = vmin.u32 %v4266_v3, %v7812_v52  ;;  %vm4338_vm12 = vcmp.lt.s32.totalorder %v4317_v41, 3  ;;  %v4345_v17 = vsel %vm4339_vm11, %v4332_v51, 920167782 }
 0x95b   : > { %v4348_v23 = vsel %vm4336_vm9, %v4326_v30, %v4329_v54  ;;  %v4055_v48 = vshll.u32 %v7825_v19, 30  ;;  %v4340_v0 = vsel %vm4336_vm9, %v4320_v60, %v4323_v57  ;;  %v4346_v5 = vsel %vm4338_vm12, %v4329_v54, %v4345_v17 }
 0x95c   : > { %v4349_v2 = vsel %vm4339_vm11, %v4335_v13, 1326507024  ;;  %v4342_v61 = vsel %vm4338_vm12, %v4326_v30, %v4341_v32  ;;  %v4347_v26 = vsel %vm4337_vm10, %v4344_v44, %v4346_v5  ;;  %v4108_v33 = vsel %vm4107_vm7, %v7730_v28, 0 }
 0x95d   : > { %v4350_v20 = vsel %vm4338_vm12, %v4332_v51, %v4349_v2  ;;  %v7836_v39 = vsub.s32 %v4052_v21, %v4055_v48  ;;  %v7840_v11 = vmul.u32.u64.low %v7803_v40, %v4347_v26  ;;  %v7841_v38 = vmul.u32.u64.high %v7803_v40, %v4347_v26, %v7840_v11 }
 0x95e   : > { %v4351_v62 = vsel %vm4337_vm10, %v4348_v23, %v4350_v20  ;;  %v4343_v22 = vsel %vm4337_vm10, %v4340_v0, %v4342_v61  ;;  %v4096_v53 = vand.u32 2147483647, %v7702_v63  ;;  %v4110_v28 = vand.u32 31, %v4108_v33 }
 0x95f   : > { %v7845_v1 = vmul.u32.u64.low %v7803_v40, %v4351_v62  ;;  %v7846_v10 = vmul.u32.u64.high %v7803_v40, %v4351_v62, %v7845_v1  ;;  %v4058_v36 = vsub.s32 0, %v7836_v39  ;;  %v4268_v21 = vclz %v5240_v34 }
 0x960   : > { %v4362_v46 = vadd.s32 1, %v7841_v38  ;;  %v4111_v37 = vsub.s32 32, %v4110_v28  ;;  %v4359_v3 = vmul.u32 %v7803_v40, %v4343_v22  ;;  %v4103_v41 = vand.u32 8388607, %v4096_v53 }
 0x961   : > { %v5232_v4 = vmin.u32 %v4058_v36, %v7836_v39  ;;  %vm4361_vm13 = vc.u32 %v7846_v10, %v7840_v11  ;;  %v5241_v24 = vadd.s32 4294967294, %v4268_v21  ;;  %v4113_v13 = vshll.u32 %v5833_v6, %v4110_v28 }
 0x962   : > { %v4363_v27 = vsel %vm4361_vm13, %v4362_v46, %v7841_v38  ;;  %v4114_v54 = vshrl.u32 %v5834_v12, %v4111_v37  ;;  %v4117_v43 = vshrl.u32 %v5835_v14, %v4111_v37  ;;  %v4120_v51 = vshrl.u32 %v5836_v16, %v4111_v37 }
 0x963   : > { %v4060_v57 = vclz %v5232_v4  ;;  %v4364_v35 = vadd.s32 %v4363_v27, %v4359_v3  ;;  %v4104_v40 = vor.u32 8388608, %v4103_v41  ;;  %v4116_v32 = vshll.u32 %v5834_v12, %v4110_v28 }
 0x964   : > { %v4123_v44 = vshrl.u32 %v5837_v18, %v4111_v37  ;;  %vm5242_vm14 = vcmp.lt.s32.totalorder %v5241_v24, 0  ;;  %v4109_v17 = vshrl.u32 %v4108_v33, 5  ;;  %v4119_v23 = vshll.u32 %v5835_v14, %v4110_v28 }
 0x965   : > { %v5233_v30 = vadd.s32 4294967294, %v4060_v57  ;;  %v4365_v60 = vadd.s32 536870912, %v4364_v35  ;;  %v4115_v48 = vor.u32 %v4114_v54, %v4113_v13  ;;  %v4118_v0 = vor.u32 %v4117_v43, %v4116_v32 }
 0x966   : > { %v4122_v5 = vshll.u32 %v5836_v16, %v4110_v28  ;;  %v4121_v61 = vor.u32 %v4120_v51, %v4119_v23  ;;  %v4125_v26 = vshll.u32 %v5837_v18, %v4110_v28  ;;  %v4126_v20 = vshrl.u32 %v5838_v25, %v4111_v37 }
 0x967   : > { %v7865_v34 = vshrl.u32 %v4365_v60, 30  ;;  %vm5234_vm15 = vcmp.lt.s32.totalorder %v5233_v30, 0  ;;  %v7875_v33 = vsel %vm5242_vm14, 0, %v5241_v24  ;;  %vm4128_vm0 = vcmp.lt.s32.totalorder %v4109_v17, 1 }
 0x968   : > { %v4124_v62 = vor.u32 %v4123_v44, %v4122_v5  ;;  %v4063_v38 = vsel %vm5234_vm15, 0, %v5233_v30  ;;  %v4127_v36 = vor.u32 %v4126_v20, %v4125_v26  ;;  %vm4131_vm1 = vcmp.lt.s32.totalorder %v4109_v17, 4 }
 0x969   : > { %v4367_v2 = vshll.u32 %v7865_v34, 30  ;;  %v4144_v22 = vshll.u32 %v4104_v40, 8  ;;  %v4112_v4 = vshrl.u32 %v5833_v6, %v4111_v37  ;;  %v4133_v46 = vsel %vm4131_vm1, %v4121_v61, 2102212464 }
 0x96a   : > { %v4136_v3 = vsel %vm4128_vm0, %v4115_v48, %v4118_v0  ;;  %v4068_v28 = vsub.s32 4294967266, %v4063_v38  ;;  %vm4129_vm3 = vcmp.lt.s32.totalorder %v4109_v17, 2  ;;  %vm4130_vm4 = vcmp.lt.s32.totalorder %v4109_v17, 3 }
 0x96b   : > { %v7872_v1 = vsub.s32 %v4364_v35, %v4367_v2  ;;  %v4137_v57 = vsel %vm4131_vm1, %v4124_v62, 920167782  ;;  %v4140_v35 = vsel %vm4128_vm0, %v4118_v0, %v4121_v61  ;;  %v4141_v30 = vsel %vm4131_vm1, %v4127_v36, 1326507024 }
 0x96c   : > { %v4138_v41 = vsel %vm4130_vm4, %v4121_v61, %v4137_v57  ;;  %v4132_v24 = vsel %vm4128_vm0, %v4112_v4, %v4115_v48  ;;  %v4134_v54 = vsel %vm4130_vm4, %v4118_v0, %v4133_v46  ;;  %v4142_v60 = vsel %vm4130_vm4, %v4124_v62, %v4141_v30 }
 0x96d   : > { %v4370_v21 = vsub.s32 0, %v7872_v1  ;;  %v4139_v43 = vsel %vm4129_vm3, %v4136_v3, %v4138_v41  ;;  %v4143_v40 = vsel %vm4129_vm3, %v4140_v35, %v4142_v60  ;;  %v4276_v23 = vsub.s32 4294967266, %v7875_v33 }
 0x96e   : > { %v7882_v37 = vmul.u32.u64.low %v4144_v22, %v4139_v43  ;;  %v7883_v13 = vmul.u32.u64.high %v4144_v22, %v4139_v43, %v7882_v37  ;;  %v7886_v32 = vmul.u32.u64.low %v4144_v22, %v4143_v40  ;;  %v7887_v44 = vmul.u32.u64.high %v4144_v22, %v4143_v40, %v7886_v32 }
 0x96f   : > { %v5244_v27 = vmin.u32 %v4370_v21, %v7872_v1  ;;  %v4135_v2 = vsel %vm4129_vm3, %v4132_v24, %v4134_v54  ;;  %v4069_v48 = vadd.s32 127, %v4068_v28  ;;  %v4064_v61 = vsub.s32 32, %v4063_v38 }
 0x970   : > { %v4154_v0 = vadd.s32 1, %v7883_v13  ;;  %v4151_v20 = vmul.u32 %v4144_v22, %v4135_v2  ;;  %vm4153_vm6 = vc.u32 %v7887_v44, %v7882_v37  ;;  %v4277_v62 = vadd.s32 127, %v4276_v23 }
 0x971   : > { %v4372_v51 = vclz %v5244_v27  ;;  %v4048_v4 = vadd.s32 %v7790_v31, %v7796_v45  ;;  %v4070_v46 = vshll.u32 %v4069_v48, 23  ;;  %v4272_v28 = vsub.s32 32, %v7875_v33 }
 0x972   : > { %v4155_v21 = vsel %vm4153_vm6, %v4154_v0, %v7883_v13  ;;  %v4360_v22 = vadd.s32 %v7840_v11, %v7846_v10  ;;  %v4256_v35 = vadd.s32 %v7761_v49, %v7758_v15  ;;  %v4278_v30 = vshll.u32 %v4277_v62, 23 }
 0x973   : > { %v5245_v5 = vadd.s32 4294967294, %v4372_v51  ;;  %v4156_v3 = vadd.s32 %v4155_v21, %v4151_v20  ;;  %v4066_v27 = vshrl.u32 %v4048_v4, %v4064_v61  ;;  %v4065_v54 = vshll.u32 %v7836_v39, %v4063_v38 }
 0x974   : > { %v4071_v43 = vor.u32 4788187, %v4070_v46  ;;  %v4274_v60 = vshrl.u32 %v4256_v35, %v4272_v28  ;;  %v4273_v11 = vshll.u32 %v7812_v52, %v7875_v33  ;;  %v4279_v10 = vor.u32 4788187, %v4278_v30 }
 0x975   : > { %vm5246_vm5 = vcmp.lt.s32.totalorder %v5245_v5, 0  ;;  %v4157_v41 = vadd.s32 536870912, %v4156_v3  ;;  %v4067_v51 = vor.u32 %v4066_v27, %v4065_v54  ;;  %vm3994_vm8 = vcmp.lt.s32.totalorder %v7694_v56, 0 }
 0x976   : > { %v4375_v26 = vsel %vm5246_vm5, 0, %v5245_v5  ;;  %v4072_v15 = vand.u32 2147483647, %v4071_v43  ;;  %v4275_v5 = vor.u32 %v4274_v60, %v4273_v11  ;;  %v4280_v48 = vand.u32 2147483647, %v4279_v10 }
 0x977   : > { %v4380_v36 = vsub.s32 4294967266, %v4375_v26  ;;  %v4376_v17 = vsub.s32 32, %v4375_v26  ;;  %v7903_v45 = vshrl.u32 %v4157_v41, 30  ;;  %v4377_v40 = vshll.u32 %v7872_v1, %v4375_v26 }
 0x978   : > { %v4074_v39 = vcvt.s32.f32 %v4067_v51  ;;  %v4282_v62 = vcvt.s32.f32 %v4275_v5  ;;  %vm4306_vm9 = vcmp.lt.s32.totalorder %v7698_v50, 0  ;;  %vm7917_vm10 = vcmp.le.f32.partialorder %v3992_v8, 0.7853982 }
 0x979   : > { %v4381_v57 = vadd.s32 127, %v4380_v36  ;;  %v4378_v31 = vshrl.u32 %v4360_v22, %v4376_v17  ;;  %v4159_v32 = vshll.u32 %v7903_v45, 30  ;;  %vm4202_vm11 = vcmp.lt.s32.totalorder %v7692_v7, 0 }
 0x97a   : > { %v4075_v0 = vmul.f32 %v4074_v39, %v4072_v15  ;;  %v4283_v36 = vmul.f32 %v4282_v62, %v4280_v48  ;;  %vm7931_vm12 = vcmp.le.f32.partialorder %v4304_v29, 0.7853982  ;;  %v4078_v60 = vsub.s32 4, %v7825_v19 }
 0x97b   : > { %v4382_v24 = vshll.u32 %v4381_v57, 23  ;;  %v4379_v49 = vor.u32 %v4378_v31, %v4377_v40  ;;  %v4160_v23 = vsub.s32 %v4156_v3, %v4159_v32  ;;  %v4152_v3 = vadd.s32 %v7882_v37, %v7887_v44 }
 0x97c   : > { %v4076_v21 = vxor.u32 2147483648, %v4075_v0  ;;  %v4284_v52 = vxor.u32 2147483648, %v4283_v36  ;;  %vm7941_vm13 = vcmp.le.f32.partialorder %v4200_v47, 0.7853982  ;;  %v4390_v40 = vsub.s32 4, %v7865_v34 }
 0x97d   : > { %v4383_v13 = vor.u32 4788187, %v4382_v24  ;;  %v4162_v2 = vsub.s32 0, %v4160_v23  ;;  %v4386_v61 = vcvt.s32.f32 %v4379_v49  ;;  %v4182_v11 = vsub.s32 4, %v7903_v45 }
 0x97e   : > { %v4077_v17 = vsel %vm3994_vm8, %v4076_v21, %v4075_v0  ;;  %v4285_v44 = vsel %vm4202_vm11, %v4284_v52, %v4283_v36  ;;  %v4286_v10 = vsub.s32 4, %v7798_v59  ;;  %v4079_v47 = vsel %vm3994_vm8, %v4078_v60, %v7825_v19 }
 0x97f   : > { %v4384_v38 = vand.u32 2147483647, %v4383_v13  ;;  %v5236_v20 = vmin.u32 %v4162_v2, %v4160_v23  ;;  %v4080_v37 = vsel %vm7917_vm10, %v7694_v56, %v4077_v17  ;;  %v4288_v29 = vsel %vm7941_vm13, %v7692_v7, %v4285_v44 }
 0x980   : > { %5716 = vcosq.f32 %v4080_v37  ;;  %v4391_v49 = vsel %vm4306_vm9, %v4390_v40, %v7865_v34  ;;  %vm4098_vm14 = vcmp.lt.s32.totalorder %v7702_v63, 0  ;;  %v4081_v5 = vsel %vm7917_vm10, 0, %v4079_v47 }
 0x981   : > { %v4387_v1 = vmul.f32 %v4386_v61, %v4384_v38  ;;  %v4164_v26 = vclz %v5236_v20  ;;  %5718 = vsinq.f32 %v4080_v37  ;;  %v4183_v39 = vsel %vm4098_vm14, %v4182_v11, %v7903_v45 }
 0x982   : > { %v4287_v38 = vsel %vm4202_vm11, %v4286_v10, %v7798_v59  ;;  %vm4097_vm15 = vcmp.le.f32.partialorder %v4096_v53, 0.7853982  ;;  %v4393_v19 = vsel %vm7931_vm12, 0, %v4391_v49  ;;  %v4085_v0 = vadd.s32 3, %v4081_v5 }
 0x983   : > { %v5237_v4 = vadd.s32 4294967294, %v4164_v26  ;;  %v4388_v46 = vxor.u32 2147483648, %v4387_v1  ;;  %v4185_v61 = vsel %vm4097_vm15, 0, %v4183_v39  ;;  %v4289_v45 = vsel %vm7941_vm13, 0, %v4287_v38 }
 0x984   : > { %v4397_v62 = vadd.s32 3, %v4393_v19  ;;  %v4189_v26 = vadd.s32 3, %v4185_v61  ;;  %v4293_v36 = vadd.s32 3, %v4289_v45  ;;  %v4086_v21 = vand.u32 3, %v4085_v0 }
 0x985   : > { %vm5238_vm7 = vcmp.lt.s32.totalorder %v5237_v4, 0  ;;  %v4389_v22 = vsel %vm4306_vm9, %v4388_v46, %v4387_v1  ;;  %vm4084_vm11 = vweird.f32 %v7694_v56  ;;  %v5627_v56 = vld [vmem:[%s8318_s6 + $0x58] sm:$0xff]   ;;  %v5839_v5 = vmov 0.0  }
 0x986   : > { %v4167_v33 = vsel %vm5238_vm7, 0, %v5237_v4  ;;  %v4392_v43 = vsel %vm7931_vm12, %v7698_v50, %v4389_v22  ;;  %v4398_v46 = vand.u32 3, %v4397_v62  ;;  %vm4087_vm0 = vcmp.lt.s32.totalorder %v4086_v21, 2  ;;  %5415 = vmatprep.subr.bf16.mxu0 %v5839_v5 }
 0x987   : > { %v4168_v28 = vsub.s32 32, %v4167_v33  ;;  %v4172_v57 = vsub.s32 4294967266, %v4167_v33  ;;  %v4169_v41 = vshll.u32 %v4160_v23, %v4167_v33  ;;  %5720 = vcosq.f32 %v4392_v43 }
 0x988   : > { %5722 = vsinq.f32 %v4392_v43  ;;  %vm4088_vm1 = vcmp.eq.s32.totalorder %v4086_v21, 0  ;;  %vm4091_vm3 = vcmp.eq.s32.totalorder %v4086_v21, 2  ;;  %vm4400_vm4 = vcmp.eq.s32.totalorder %v4398_v46, 0 }
 0x989   : > { %v4170_v35 = vshrl.u32 %v4152_v3, %v4168_v28  ;;  %v4173_v30 = vadd.s32 127, %v4172_v57  ;;  %5724 = vcosq.f32 %v4288_v29  ;;  %v4190_v28 = vand.u32 3, %v4189_v26 }
 0x98a   : > { %5726 = vsinq.f32 %v4288_v29  ;;  %v5717_v48 = vpop.eup %5716  ;;  %v4294_v57 = vand.u32 3, %v4293_v36  ;;  %vm4403_vm5 = vcmp.eq.s32.totalorder %v4398_v46, 2  ;;  %vm4399_vm9 = vcmp.lt.s32.totalorder %v4398_v46, 2 }
 0x98b   : > { %v4171_v24 = vor.u32 %v4170_v35, %v4169_v41  ;;  %v4174_v8 = vshll.u32 %v4173_v30, 23  ;;  %v5719_v20 = vpop.eup %5718  ;;  %v4092_v33 = vxor.u32 2147483648, %v5717_v48  ;;  %vm4195_vm6 = vcmp.eq.s32.totalorder %v4190_v28, 2 }
 0x98c   : > { %v4089_v52 = vxor.u32 2147483648, %v5719_v20  ;;  %vm4296_vm7 = vcmp.eq.s32.totalorder %v4294_v57, 0  ;;  %vm4299_vm8 = vcmp.eq.s32.totalorder %v4294_v57, 2  ;;  %vm4192_vm10 = vcmp.eq.s32.totalorder %v4190_v28, 0 }
 0x98d   : > { %v4175_v31 = vor.u32 4788187, %v4174_v8  ;;  %v4178_v32 = vcvt.s32.f32 %v4171_v24  ;;  %v4093_v30 = vsel %vm4091_vm3, %v4092_v33, %v5719_v20  ;;  %vm4191_vm12 = vcmp.lt.s32.totalorder %v4190_v28, 2 }
 0x98e   : > { %v4090_v35 = vsel %vm4088_vm1, %v5717_v48, %v4089_v52  ;;  %vm4295_vm13 = vcmp.lt.s32.totalorder %v4294_v57, 2  ;;  %v4506_v38 = vstv %s5247_s28  ;;  %s5769_s28 = scalar_lea.vmem %s5768_s27, 32 }
 0x98f   : > { %v4176_v13 = vand.u32 2147483647, %v4175_v31  ;;  %v4094_v60 = vsel %vm4087_vm0, %v4090_v35, %v4093_v30  ;;  %vm4292_vm0 = vweird.f32 %v7692_v7  ;;  %p5771_p0 = scmp.lt.s32.totalorder %s5769_s28, %s5763_s22 }
 0x990   : > { %v4095_v11 = vsel %vm4084_vm11, nan, %v4094_v60 }
 0x991   : > { %v4179_v15 = vmul.f32 %v4178_v32, %v4176_v13  ;;  %v5721_v59 = vpop.eup %5720  ;;  %p5772_p1 = por %p5771_p0, %p5770_p13 }
 0x992   : > { %v5723_v1 = vpop.eup %5722  ;;  %v4404_v3 = vxor.u32 2147483648, %v5721_v59 }
 0x993   : > { %v4180_v23 = vxor.u32 2147483648, %v4179_v15  ;;  %v5725_v53 = vpop.eup %5724  ;;  %v4401_v17 = vxor.u32 2147483648, %v5723_v1  ;;  %p5773_p2 = pnand %p5772_p1, %p5766_p12 }
 0x994   : > { %v5727_v4 = vpop.eup %5726  ;;  %v4300_v22 = vxor.u32 2147483648, %v5725_v53  ;;  %v4405_v44 = vsel %vm4403_vm5, %v4404_v3, %v5723_v1 }
 0x995   : > { %v4181_v2 = vsel %vm4098_vm14, %v4180_v23, %v4179_v15  ;;  %v4297_v27 = vxor.u32 2147483648, %v5727_v4  ;;  %v4402_v37 = vsel %vm4400_vm4, %v5721_v59, %v4401_v17  ;;  %vm4188_vm14 = vweird.f32 %v7702_v63 }
 0x996   : > { %v4184_v34 = vsel %vm4097_vm15, %v7702_v63, %v4181_v2  ;;  %v4301_v31 = vsel %vm4299_vm8, %v4300_v22, %v5727_v4  ;;  %v4406_v29 = vsel %vm4399_vm9, %v4402_v37, %v4405_v44  ;;  %vm4396_vm15 = vweird.f32 %v7698_v50  ;;  %v4424_v50 = vpop.permute.xlu0 %4423  ;;  %v4429_v63 = vpop.permute.xlu1 %4428 }
 0x997   : > { %5728 = vcosq.f32 %v4184_v34  ;;  %v4298_v43 = vsel %vm4296_vm7, %v5725_v53, %v4297_v27  ;;  %v4407_v15 = vsel %vm4396_vm15, nan, %v4406_v29 }
 0x998   : > { %5730 = vsinq.f32 %v4184_v34  ;;  %v4302_v32 = vsel %vm4295_vm13, %v4298_v43, %v4301_v31 }
 0x999   : > { %v4303_v49 = vsel %vm4292_vm0, nan, %v4302_v32 }
 0x99a   : > { %v4415_v23 = vpack.c.bf16 %v4407_v15, %v4303_v49  ;;  %v4434_v39 = vpop.permute.xlu0 %4433  ;;  %v4439_v34 = vpop.permute.xlu1 %4438 }
 0x9a1   : > { %v5729_v41 = vpop.eup %5728 }
 0x9a2   : > { %v5731_v24 = vpop.eup %5730  ;;  %v4196_v8 = vxor.u32 2147483648, %v5729_v41 }
 0x9a3   : > { %v4193_v54 = vxor.u32 2147483648, %v5731_v24 }
 0x9a4   : > { %v4197_v51 = vsel %vm4195_vm6, %v4196_v8, %v5731_v24 }
 0x9a5   : > { %v4194_v40 = vsel %vm4192_vm10, %v5729_v41, %v4193_v54 }
 0x9a6   : > { %v4198_v13 = vsel %vm4191_vm12, %v4194_v40, %v4197_v51 }
 0x9a7   : > { %v4199_v10 = vsel %vm4188_vm14, nan, %v4198_v13 }
 0x9a8   : > { %v4414_v47 = vpack.c.bf16 %v4199_v10, %v4095_v11 }
 0x9aa   : > { %5407 = vmatprep.subr.bf16.mxu1 %v4414_v47 }
 0x9ab   : > { %5408 = vmatpush3.bf16.msra.mxu1 %v4414_v47 }
 0x9ac   : > { %5409 = vmatprep.subr.bf16.mxu1 %v4415_v23 }
 0x9af   : > { %5410 = vmatpush3.bf16.msra.mxu1 %v4415_v23 }
 0x9b2   : > { %5412 = vmatmul.mubr.msk.bf16.vlgmr.msra.gmra.mrb[20].mxu1 %vm1329_vm2, %v5627_v56 }
 0xa85   : > { %v5413_v7 = vpop.f32.mrb[20].mxu1 }
 0xa86   : > { %v4500_v2 = vadd.f32 %v5413_v7, %v4434_v39  ;;  %v4491_v19 = vpop.f32.mrb[21].mxu1 }
 0xa87   : > { %v4492_v48 = vadd.f32 %v4491_v19, %v4424_v50  ;;  %v5414_v0 = vpop.f32.mrb[22].mxu1 }
 0xa88   : > { %v7981_v61 = vmul.f32 %v4506_v38, %v4500_v2  ;;  %v4503_v45 = vadd.f32 %v5414_v0, %v4439_v34  ;;  %v4494_v20 = vpop.f32.mrb[23].mxu1 }
 0xa89   : > { %v7983_v62 = vmul.f32 %v4506_v38, %v4492_v48  ;;  %v4495_v27 = vadd.f32 %v4494_v20, %v4429_v63 }
 0xa8a   : > { %v4719_v59 = vand.u32 2147483647, %v7981_v61  ;;  %v4722_v1 = vand.u32 2139095040, %v7981_v61  ;;  %v7987_v26 = vmul.f32 %v4506_v38, %v4503_v45 }
 0xa8b   : > { %v4511_v36 = vand.u32 2147483647, %v7983_v62  ;;  %v4514_v53 = vand.u32 2139095040, %v7983_v62  ;;  %v8002_v60 = vmul.f32 %v4506_v38, %v4495_v27 }
 0xa8c   : > { %v4723_v21 = vshrl.u32 %v4722_v1, 23  ;;  %v4726_v4 = vand.u32 8388607, %v4719_v59  ;;  %v4826_v33 = vand.u32 2139095040, %v7987_v26 }
 0xa8d   : > { %v4515_v46 = vshrl.u32 %v4514_v53, 23  ;;  %v4518_v52 = vand.u32 8388607, %v4511_v36 }
 0xa8e   : > { %v5268_v17 = vadd.s32 4294967169, %v4723_v21  ;;  %v4827_v28 = vshrl.u32 %v4826_v33, 23  ;;  %v4727_v22 = vor.u32 8388608, %v4726_v4 }
 0xa8f   : > { %v5260_v3 = vadd.s32 4294967169, %v4515_v46  ;;  %v4519_v41 = vor.u32 8388608, %v4518_v52 }
 0xa90   : > { %v4729_v57 = vadd.s32 1, %v5268_v17  ;;  %v5272_v30 = vadd.s32 4294967169, %v4827_v28  ;;  %v7996_v54 = vshll.u32 %v4727_v22, 8 }
 0xa91   : > { %v4521_v35 = vadd.s32 1, %v5260_v3  ;;  %v7998_v43 = vshll.u32 %v4519_v41, 8 }
 0xa92   : > { %vm4730_vm1 = vcmp.gt.s32.totalorder %v4729_v57, 0  ;;  %v8000_v31 = vadd.s32 1, %v5272_v30 }
 0xa93   : > { %v4731_v37 = vsel %vm4730_vm1, %v4729_v57, 0  ;;  %vm4522_vm3 = vcmp.gt.s32.totalorder %v4521_v35, 0 }
 0xa94   : > { %v4732_v44 = vshrl.u32 %v4731_v37, 5  ;;  %v4733_v24 = vand.u32 31, %v4731_v37  ;;  %v4523_v8 = vsel %vm4522_vm3, %v4521_v35, 0  ;;  %vm4834_vm8 = vcmp.gt.s32.totalorder %v8000_v31, 0 }
 0xa95   : > { %v8005_v40 = vshrl.u32 %v4523_v8, 5  ;;  %v4525_v13 = vand.u32 31, %v4523_v8 }
 0xa96   : > { %v4734_v51 = vsub.s32 32, %v4733_v24  ;;  %v4736_v29 = vshll.u32 %v5833_v6, %v4733_v24  ;;  %v4739_v32 = vshll.u32 %v5834_v12, %v4733_v24  ;;  %v4742_v11 = vshll.u32 %v5835_v14, %v4733_v24 }
 0xa97   : > { %v4745_v10 = vshll.u32 %v5836_v16, %v4733_v24  ;;  %v4748_v15 = vshll.u32 %v5837_v18, %v4733_v24  ;;  %vm4751_vm4 = vcmp.lt.s32.totalorder %v4732_v44, 1  ;;  %vm4752_vm5 = vcmp.lt.s32.totalorder %v4732_v44, 2 }
 0xa98   : > { %v4737_v47 = vshrl.u32 %v5834_v12, %v4734_v51  ;;  %v4740_v49 = vshrl.u32 %v5835_v14, %v4734_v51  ;;  %v4743_v23 = vshrl.u32 %v5836_v16, %v4734_v51  ;;  %v4735_v56 = vshrl.u32 %v5833_v6, %v4734_v51 }
 0xa99   : > { %v4746_v50 = vshrl.u32 %v5837_v18, %v4734_v51  ;;  %v4749_v63 = vshrl.u32 %v5838_v25, %v4734_v51  ;;  %v4526_v2 = vsub.s32 32, %v4525_v13  ;;  %vm4753_vm6 = vcmp.lt.s32.totalorder %v4732_v44, 3 }
 0xa9a   : > { %v4738_v39 = vor.u32 %v4737_v47, %v4736_v29  ;;  %v4741_v7 = vor.u32 %v4740_v49, %v4739_v32  ;;  %v4744_v38 = vor.u32 %v4743_v23, %v4742_v11  ;;  %vm4754_vm7 = vcmp.lt.s32.totalorder %v4732_v44, 4 }
 0xa9b   : > { %v4747_v19 = vor.u32 %v4746_v50, %v4745_v10  ;;  %v4750_v34 = vor.u32 %v4749_v63, %v4748_v15  ;;  %v4528_v4 = vshll.u32 %v5833_v6, %v4525_v13  ;;  %v4529_v33 = vshrl.u32 %v5834_v12, %v4526_v2 }
 0xa9c   : > { %v4755_v48 = vsel %vm4751_vm4, %v4735_v56, %v4738_v39  ;;  %v4756_v0 = vsel %vm4754_vm7, %v4744_v38, 2102212464  ;;  %v4759_v45 = vsel %vm4751_vm4, %v4738_v39, %v4741_v7  ;;  %v4763_v20 = vsel %vm4751_vm4, %v4741_v7, %v4744_v38 }
 0xa9d   : > { %v4757_v1 = vsel %vm4753_vm6, %v4741_v7, %v4756_v0  ;;  %v4760_v53 = vsel %vm4754_vm7, %v4747_v19, 920167782  ;;  %v4764_v21 = vsel %vm4754_vm7, %v4750_v34, 1326507024  ;;  %v4531_v17 = vshll.u32 %v5834_v12, %v4525_v13 }
 0xa9e   : > { %v4761_v46 = vsel %vm4753_vm6, %v4744_v38, %v4760_v53  ;;  %v4765_v52 = vsel %vm4753_vm6, %v4747_v19, %v4764_v21  ;;  %v4758_v3 = vsel %vm4752_vm5, %v4755_v48, %v4757_v1  ;;  %v4532_v27 = vshrl.u32 %v5835_v14, %v4526_v2 }
 0xa9f   : > { %v4762_v28 = vsel %vm4752_vm5, %v4759_v45, %v4761_v46  ;;  %v4766_v57 = vsel %vm4752_vm5, %v4763_v20, %v4765_v52  ;;  %v4530_v37 = vor.u32 %v4529_v33, %v4528_v4  ;;  %v4534_v8 = vshll.u32 %v5835_v14, %v4525_v13 }
 0xaa0   : > { %v8029_v22 = vmul.u32.u64.low %v7996_v54, %v4766_v57  ;;  %v8030_v41 = vmul.u32.u64.high %v7996_v54, %v4766_v57, %v8029_v22  ;;  %v8033_v35 = vmul.u32.u64.low %v7996_v54, %v4762_v28  ;;  %v8034_v30 = vmul.u32.u64.high %v7996_v54, %v4762_v28, %v8033_v35 }
 0xaa1   : > { %v4533_v24 = vor.u32 %v4532_v27, %v4531_v17  ;;  %v4535_v51 = vshrl.u32 %v5836_v16, %v4526_v2  ;;  %v4527_v44 = vshrl.u32 %v5833_v6, %v4526_v2  ;;  %v4537_v29 = vshll.u32 %v5836_v16, %v4525_v13 }
 0xaa2   : > { %v4538_v32 = vshrl.u32 %v5837_v18, %v4526_v2  ;;  %v4541_v11 = vshrl.u32 %v5838_v25, %v4526_v2  ;;  %v4774_v10 = vmul.u32 %v7996_v54, %v4758_v3  ;;  %v4540_v47 = vshll.u32 %v5837_v18, %v4525_v13 }
 0xaa3   : > { %v4536_v15 = vor.u32 %v4535_v51, %v4534_v8  ;;  %vm4543_vm9 = vcmp.lt.s32.totalorder %v8005_v40, 1  ;;  %vm4776_vm10 = vc.u32 %v8030_v41, %v8033_v35  ;;  %v4777_v49 = vadd.s32 1, %v8034_v30 }
 0xaa4   : > { %v4539_v23 = vor.u32 %v4538_v32, %v4537_v29  ;;  %vm4544_vm11 = vcmp.lt.s32.totalorder %v8005_v40, 2  ;;  %v4542_v56 = vor.u32 %v4541_v11, %v4540_v47  ;;  %vm4545_vm12 = vcmp.lt.s32.totalorder %v8005_v40, 3 }
 0xaa5   : > { %vm4546_vm13 = vcmp.lt.s32.totalorder %v8005_v40, 4  ;;  %v4551_v50 = vsel %vm4543_vm9, %v4530_v37, %v4533_v24  ;;  %v4778_v54 = vsel %vm4776_vm10, %v4777_v49, %v8034_v30  ;;  %v4555_v39 = vsel %vm4543_vm9, %v4533_v24, %v4536_v15 }
 0xaa6   : > { %v4548_v63 = vsel %vm4546_vm13, %v4536_v15, 2102212464  ;;  %v4552_v13 = vsel %vm4546_vm13, %v4539_v23, 920167782  ;;  %v4779_v7 = vadd.s32 %v4778_v54, %v4774_v10  ;;  %v4547_v38 = vsel %vm4543_vm9, %v4527_v44, %v4530_v37 }
 0xaa7   : > { %v4553_v2 = vsel %vm4545_vm12, %v4536_v15, %v4552_v13  ;;  %v4556_v19 = vsel %vm4546_vm13, %v4542_v56, 1326507024  ;;  %v4549_v34 = vsel %vm4545_vm12, %v4533_v24, %v4548_v63  ;;  %v4835_v45 = vsel %vm4834_vm8, %v8000_v31, 0 }
 0xaa8   : > { %v4554_v48 = vsel %vm4544_vm11, %v4551_v50, %v4553_v2  ;;  %v4557_v0 = vsel %vm4545_vm12, %v4539_v23, %v4556_v19  ;;  %v4780_v20 = vadd.s32 536870912, %v4779_v7  ;;  %v4823_v52 = vand.u32 2147483647, %v7987_v26 }
 0xaa9   : > { %v4558_v1 = vsel %vm4544_vm11, %v4555_v39, %v4557_v0  ;;  %v8061_v53 = vmul.u32.u64.low %v7998_v43, %v4554_v48  ;;  %v8062_v21 = vmul.u32.u64.high %v7998_v43, %v4554_v48, %v8061_v53  ;;  %v4550_v31 = vsel %vm4544_vm11, %v4547_v38, %v4549_v34 }
 0xaaa   : > { %v8066_v4 = vmul.u32.u64.low %v7998_v43, %v4558_v1  ;;  %v8067_v46 = vmul.u32.u64.high %v7998_v43, %v4558_v1, %v8066_v4  ;;  %v8070_v33 = vshrl.u32 %v4780_v20, 30  ;;  %v4837_v17 = vand.u32 31, %v4835_v45 }
 0xaab   : > { %v4618_v3 = vand.u32 2139095040, %v8002_v60  ;;  %v4569_v28 = vadd.s32 1, %v8062_v21  ;;  %v4566_v22 = vmul.u32 %v7998_v43, %v4550_v31  ;;  %v4830_v37 = vand.u32 8388607, %v4823_v52 }
 0xaac   : > { %v4838_v57 = vsub.s32 32, %v4837_v17  ;;  %v4782_v27 = vshll.u32 %v8070_v33, 30  ;;  %vm4568_vm14 = vc.u32 %v8067_v46, %v8061_v53  ;;  %v4840_v8 = vshll.u32 %v5833_v6, %v4837_v17 }
 0xaad   : > { %v4570_v30 = vsel %vm4568_vm14, %v4569_v28, %v8062_v21  ;;  %v4619_v40 = vshrl.u32 %v4618_v3, 23  ;;  %v4836_v29 = vshrl.u32 %v4835_v45, 5  ;;  %v4843_v32 = vshll.u32 %v5834_v12, %v4837_v17 }
 0xaae   : > { %v4571_v24 = vadd.s32 %v4570_v30, %v4566_v22  ;;  %v4841_v51 = vshrl.u32 %v5834_v12, %v4838_v57  ;;  %v4844_v44 = vshrl.u32 %v5835_v14, %v4838_v57  ;;  %v4846_v43 = vshll.u32 %v5835_v14, %v4837_v17 }
 0xaaf   : > { %v4847_v11 = vshrl.u32 %v5836_v16, %v4838_v57  ;;  %v8089_v10 = vsub.s32 %v4779_v7, %v4782_v27  ;;  %v4849_v56 = vshll.u32 %v5836_v16, %v4837_v17  ;;  %v4850_v50 = vshrl.u32 %v5837_v18, %v4838_v57 }
 0xab0   : > { %v4572_v15 = vadd.s32 536870912, %v4571_v24  ;;  %v4842_v47 = vor.u32 %v4841_v51, %v4840_v8  ;;  %v4845_v49 = vor.u32 %v4844_v44, %v4843_v32  ;;  %v4852_v63 = vshll.u32 %v5837_v18, %v4837_v17 }
 0xab1   : > { %v4848_v23 = vor.u32 %v4847_v11, %v4846_v43  ;;  %v4853_v13 = vshrl.u32 %v5838_v25, %v4838_v57  ;;  %v5264_v39 = vadd.s32 4294967169, %v4619_v40  ;;  %v4831_v38 = vor.u32 8388608, %v4830_v37 }
 0xab2   : > { %v8093_v54 = vshrl.u32 %v4572_v15, 30  ;;  %v4851_v2 = vor.u32 %v4850_v50, %v4849_v56  ;;  %vm4855_vm15 = vcmp.lt.s32.totalorder %v4836_v29, 1  ;;  %vm4857_vm0 = vcmp.lt.s32.totalorder %v4836_v29, 3 }
 0xab3   : > { %v4854_v19 = vor.u32 %v4853_v13, %v4852_v63  ;;  %vm4858_vm1 = vcmp.lt.s32.totalorder %v4836_v29, 4  ;;  %v4785_v34 = vsub.s32 0, %v8089_v10  ;;  %v4863_v48 = vsel %vm4855_vm15, %v4842_v47, %v4845_v49 }
 0xab4   : > { %v4574_v7 = vshll.u32 %v8093_v54, 30  ;;  %v4864_v0 = vsel %vm4858_vm1, %v4851_v2, 920167782  ;;  %v4867_v45 = vsel %vm4855_vm15, %v4845_v49, %v4848_v23  ;;  %v4625_v4 = vadd.s32 1, %v5264_v39 }
 0xab5   : > { %v4865_v1 = vsel %vm4857_vm0, %v4848_v23, %v4864_v0  ;;  %v4868_v21 = vsel %vm4858_vm1, %v4854_v19, 1326507024  ;;  %v4839_v31 = vshrl.u32 %v5833_v6, %v4838_v57  ;;  %vm4856_vm3 = vcmp.lt.s32.totalorder %v4836_v29, 2 }
 0xab6   : > { %v8101_v20 = vsub.s32 %v4571_v24, %v4574_v7  ;;  %v4860_v17 = vsel %vm4858_vm1, %v4848_v23, 2102212464  ;;  %v4869_v3 = vsel %vm4857_vm0, %v4851_v2, %v4868_v21  ;;  %v4866_v27 = vsel %vm4856_vm3, %v4863_v48, %v4865_v1 }
 0xab7   : > { %v4870_v22 = vsel %vm4856_vm3, %v4867_v45, %v4869_v3  ;;  %v4871_v30 = vshll.u32 %v4831_v38, 8  ;;  %v5269_v37 = vmin.u32 %v4785_v34, %v8089_v10  ;;  %v4859_v40 = vsel %vm4855_vm15, %v4839_v31, %v4842_v47 }
 0xab8   : > { %v4577_v28 = vsub.s32 0, %v8101_v20  ;;  %v4861_v24 = vsel %vm4857_vm0, %v4845_v49, %v4860_v17  ;;  %vm4626_vm4 = vcmp.gt.s32.totalorder %v4625_v4, 0  ;;  %v4615_v63 = vand.u32 2147483647, %v8002_v60 }
 0xab9   : > { %v8112_v8 = vmul.u32.u64.low %v4871_v30, %v4870_v22  ;;  %v8113_v51 = vmul.u32.u64.high %v4871_v30, %v4870_v22, %v8112_v8  ;;  %v8115_v57 = vmul.u32.u64.low %v4871_v30, %v4866_v27  ;;  %v8116_v44 = vmul.u32.u64.high %v4871_v30, %v4866_v27, %v8115_v57 }
 0xaba   : > { %v5261_v32 = vmin.u32 %v4577_v28, %v8101_v20  ;;  %v4627_v43 = vsel %vm4626_vm4, %v4625_v4, 0  ;;  %v4862_v11 = vsel %vm4856_vm3, %v4859_v40, %v4861_v24  ;;  %v4787_v23 = vclz %v5269_v37 }
 0xabb   : > { %v4629_v15 = vand.u32 31, %v4627_v43  ;;  %vm4880_vm5 = vc.u32 %v8113_v51, %v8115_v57  ;;  %v4881_v47 = vadd.s32 1, %v8116_v44  ;;  %v4878_v56 = vmul.u32 %v4871_v30, %v4862_v11 }
 0xabc   : > { %v4579_v49 = vclz %v5261_v32  ;;  %v5270_v39 = vadd.s32 4294967294, %v4787_v23  ;;  %v4622_v29 = vand.u32 8388607, %v4615_v63  ;;  %v4628_v3 = vshrl.u32 %v4627_v43, 5 }
 0xabd   : > { %v4882_v50 = vsel %vm4880_vm5, %v4881_v47, %v8116_v44  ;;  %v4630_v13 = vsub.s32 32, %v4629_v15  ;;  %v4632_v1 = vshll.u32 %v5833_v6, %v4629_v15  ;;  %v4635_v21 = vshll.u32 %v5834_v12, %v4629_v15 }
 0xabe   : > { %v4883_v38 = vadd.s32 %v4882_v50, %v4878_v56  ;;  %v5262_v2 = vadd.s32 4294967294, %v4579_v49  ;;  %vm5271_vm6 = vcmp.lt.s32.totalorder %v5270_v39, 0  ;;  %v4641_v4 = vshll.u32 %v5836_v16, %v4629_v15 }
 0xabf   : > { %v4633_v19 = vshrl.u32 %v5834_v12, %v4630_v13  ;;  %v4636_v34 = vshrl.u32 %v5835_v14, %v4630_v13  ;;  %v4639_v0 = vshrl.u32 %v5836_v16, %v4630_v13  ;;  %v4642_v45 = vshrl.u32 %v5837_v18, %v4630_v13 }
 0xac0   : > { %v4884_v7 = vadd.s32 536870912, %v4883_v38  ;;  %v4645_v31 = vshrl.u32 %v5838_v25, %v4630_v13  ;;  %vm5263_vm7 = vcmp.lt.s32.totalorder %v5262_v2, 0  ;;  %v4638_v28 = vshll.u32 %v5835_v14, %v4629_v15 }
 0xac1   : > { %v4634_v27 = vor.u32 %v4633_v19, %v4632_v1  ;;  %v4637_v22 = vor.u32 %v4636_v34, %v4635_v21  ;;  %v4643_v30 = vor.u32 %v4642_v45, %v4641_v4  ;;  %v4644_v37 = vshll.u32 %v5837_v18, %v4629_v15 }
 0xac2   : > { %v8130_v48 = vshrl.u32 %v4884_v7, 30  ;;  %v4640_v24 = vor.u32 %v4639_v0, %v4638_v28  ;;  %v8144_v12 = vsel %vm5271_vm6, 0, %v5270_v39  ;;  %v4623_v16 = vor.u32 8388608, %v4622_v29 }
 0xac3   : > { %v4646_v8 = vor.u32 %v4645_v31, %v4644_v37  ;;  %v4582_v25 = vsel %vm5263_vm7, 0, %v5262_v2  ;;  %vm4647_vm8 = vcmp.lt.s32.totalorder %v4628_v3, 1  ;;  %vm4650_vm9 = vcmp.lt.s32.totalorder %v4628_v3, 4 }
 0xac4   : > { %v4886_v17 = vshll.u32 %v8130_v48, 30  ;;  %v4631_v14 = vshrl.u32 %v5833_v6, %v4630_v13  ;;  %vm4649_vm10 = vcmp.lt.s32.totalorder %v4628_v3, 3  ;;  %v4655_v32 = vsel %vm4647_vm8, %v4634_v27, %v4637_v22 }
 0xac5   : > { %v4656_v43 = vsel %vm4650_vm9, %v4643_v30, 920167782  ;;  %vm4648_vm11 = vcmp.lt.s32.totalorder %v4628_v3, 2  ;;  %v4652_v11 = vsel %vm4650_vm9, %v4640_v24, 2102212464  ;;  %v4659_v47 = vsel %vm4647_vm8, %v4637_v22, %v4640_v24 }
 0xac6   : > { %v8141_v40 = vsub.s32 %v4883_v38, %v4886_v17  ;;  %v4657_v15 = vsel %vm4649_vm10, %v4640_v24, %v4656_v43  ;;  %v4660_v49 = vsel %vm4650_vm9, %v4646_v8, 1326507024  ;;  %v4663_v56 = vshll.u32 %v4623_v16, 8 }
 0xac7   : > { %v4658_v23 = vsel %vm4648_vm11, %v4655_v32, %v4657_v15  ;;  %v4587_v50 = vsub.s32 4294967266, %v4582_v25  ;;  %v4651_v38 = vsel %vm4647_vm8, %v4631_v14, %v4634_v27  ;;  %v4661_v6 = vsel %vm4649_vm10, %v4643_v30, %v4660_v49 }
 0xac8   : > { %v4889_v44 = vsub.s32 0, %v8141_v40  ;;  %v4653_v13 = vsel %vm4649_vm10, %v4637_v22, %v4652_v11  ;;  %v4662_v2 = vsel %vm4648_vm11, %v4659_v47, %v4661_v6  ;;  %v4795_v45 = vsub.s32 4294967266, %v8144_v12 }
 0xac9   : > { %v8154_v7 = vmul.u32.u64.low %v4663_v56, %v4658_v23  ;;  %v8155_v29 = vmul.u32.u64.high %v4663_v56, %v4658_v23, %v8154_v7  ;;  %v8158_v34 = vmul.u32.u64.low %v4663_v56, %v4662_v2  ;;  %v8159_v0 = vmul.u32.u64.high %v4663_v56, %v4662_v2, %v8158_v34 }
 0xaca   : > { %v5273_v18 = vmin.u32 %v4889_v44, %v8141_v40  ;;  %v4654_v1 = vsel %vm4648_vm11, %v4651_v38, %v4653_v13  ;;  %v4588_v21 = vadd.s32 127, %v4587_v50  ;;  %v4583_v28 = vsub.s32 32, %v4582_v25 }
 0xacb   : > { %v4673_v31 = vadd.s32 1, %v8155_v29  ;;  %v4670_v27 = vmul.u32 %v4663_v56, %v4654_v1  ;;  %vm4672_vm13 = vc.u32 %v8159_v0, %v8154_v7  ;;  %v4796_v22 = vadd.s32 127, %v4795_v45 }
 0xacc   : > { %v4891_v39 = vclz %v5273_v18  ;;  %v4567_v24 = vadd.s32 %v8061_v53, %v8067_v46  ;;  %v4589_v16 = vshll.u32 %v4588_v21, 23  ;;  %v4791_v44 = vsub.s32 32, %v8144_v12 }
 0xacd   : > { %v4674_v37 = vsel %vm4672_vm13, %v4673_v31, %v8155_v29  ;;  %v4879_v14 = vadd.s32 %v8115_v57, %v8113_v51  ;;  %v4775_v11 = vadd.s32 %v8033_v35, %v8030_v41  ;;  %v4797_v15 = vshll.u32 %v4796_v22, 23 }
 0xace   : > { %v5274_v19 = vadd.s32 4294967294, %v4891_v39  ;;  %v4675_v8 = vadd.s32 %v4674_v37, %v4670_v27  ;;  %v4585_v32 = vshrl.u32 %v4567_v24, %v4583_v28  ;;  %vm5840_vm14 = vmmov 0  }
 0xacf   : > { %5419 = vmatprep.mubr.msk.bf16.mxu0 %vm5840_vm14, %v5839_v5  ;;  %v4584_v53 = vshll.u32 %v8101_v20, %v4582_v25  ;;  %v4590_v46 = vor.u32 4788187, %v4589_v16  ;;  %v4793_v49 = vshrl.u32 %v4775_v11, %v4791_v44  ;;  %v4792_v41 = vshll.u32 %v8089_v10, %v8144_v12 }
 0xad0   : > { %vm5275_vm12 = vcmp.lt.s32.totalorder %v5274_v19, 0  ;;  %v4676_v18 = vadd.s32 536870912, %v4675_v8  ;;  %v4798_v35 = vor.u32 4788187, %v4797_v15  ;;  %vm4513_vm0 = vcmp.lt.s32.totalorder %v7983_v62, 0 }
 0xad1   : > { %v4894_v4 = vsel %vm5275_vm12, 0, %v5274_v19  ;;  %v4586_v56 = vor.u32 %v4585_v32, %v4584_v53  ;;  %v4591_v39 = vand.u32 2147483647, %v4590_v46  ;;  %v4794_v13 = vor.u32 %v4793_v49, %v4792_v41 }
 0xad2   : > { %v4899_v17 = vsub.s32 4294967266, %v4894_v4  ;;  %v4895_v3 = vsub.s32 32, %v4894_v4  ;;  %v8176_v47 = vshrl.u32 %v4676_v18, 30  ;;  %v4896_v51 = vshll.u32 %v8141_v40, %v4894_v4 }
 0xad3   : > { %v4593_v20 = vcvt.s32.f32 %v4586_v56  ;;  %v4799_v29 = vand.u32 2147483647, %v4798_v35  ;;  %v4801_v1 = vcvt.s32.f32 %v4794_v13  ;;  %v4671_v22 = vadd.s32 %v8154_v7, %v8159_v0 }
 0xad4   : > { %v4900_v30 = vadd.s32 127, %v4899_v17  ;;  %v4897_v23 = vshrl.u32 %v4879_v14, %v4895_v3  ;;  %v4678_v50 = vshll.u32 %v8176_v47, 30  ;;  %vm8189_vm1 = vcmp.le.f32.partialorder %v4511_v36, 0.7853982 }
 0xad5   : > { %v4594_v19 = vmul.f32 %v4593_v20, %v4591_v39  ;;  %v4802_v4 = vmul.f32 %v4801_v1, %v4799_v29  ;;  %vm4825_vm3 = vcmp.lt.s32.totalorder %v7987_v26, 0  ;;  %vm4721_vm4 = vcmp.lt.s32.totalorder %v7981_v61, 0 }
 0xad6   : > { %v4901_v43 = vshll.u32 %v4900_v30, 23  ;;  %v4898_v38 = vor.u32 %v4897_v23, %v4896_v51  ;;  %v4679_v6 = vsub.s32 %v4675_v8, %v4678_v50  ;;  %vm8204_vm5 = vcmp.le.f32.partialorder %v4823_v52, 0.7853982 }
 0xad7   : > { %v4595_v31 = vxor.u32 2147483648, %v4594_v19  ;;  %v4803_v10 = vxor.u32 2147483648, %v4802_v4  ;;  %vm8214_vm6 = vcmp.le.f32.partialorder %v4719_v59, 0.7853982  ;;  %v4909_v53 = vsub.s32 4, %v8130_v48 }
 0xad8   : > { %v4902_v57 = vor.u32 4788187, %v4901_v43  ;;  %v4681_v2 = vsub.s32 0, %v4679_v6  ;;  %v4905_v34 = vcvt.s32.f32 %v4898_v38  ;;  %v4597_v43 = vsub.s32 4, %v8093_v54 }
 0xad9   : > { %v4596_v27 = vsel %vm4513_vm0, %v4595_v31, %v4594_v19  ;;  %v4804_v36 = vsel %vm4721_vm4, %v4803_v10, %v4802_v4  ;;  %v4805_v46 = vsub.s32 4, %v8070_v33  ;;  %v4701_v51 = vsub.s32 4, %v8176_v47 }
 0xada   : > { %v4903_v25 = vand.u32 2147483647, %v4902_v57  ;;  %v5265_v45 = vmin.u32 %v4681_v2, %v4679_v6  ;;  %v4599_v7 = vsel %vm8189_vm1, %v7983_v62, %v4596_v27  ;;  %v4807_v52 = vsel %vm8214_vm6, %v7981_v61, %v4804_v36 }
 0xadb   : > { %5732 = vcosq.f32 %v4599_v7  ;;  %v4598_v59 = vsel %vm4513_vm0, %v4597_v43, %v8093_v54  ;;  %v4910_v57 = vsel %vm4825_vm3, %v4909_v53, %v8130_v48  ;;  %v4806_v50 = vsel %vm4721_vm4, %v4805_v46, %v8070_v33 }
 0xadc   : > { %v4906_v40 = vmul.f32 %v4905_v34, %v4903_v25  ;;  %v4683_v21 = vclz %v5265_v45  ;;  %5734 = vsinq.f32 %v4599_v7  ;;  %v4600_v41 = vsel %vm8189_vm1, 0, %v4598_v59 }
 0xadd   : > { %vm4617_vm7 = vcmp.lt.s32.totalorder %v8002_v60, 0  ;;  %v4912_v54 = vsel %vm8204_vm5, 0, %v4910_v57  ;;  %vm8240_vm8 = vcmp.le.f32.partialorder %v4615_v63, 0.7853982  ;;  %v4808_v33 = vsel %vm8214_vm6, 0, %v4806_v50  ;;  %v4938_v57 = vpop.permute.xlu0 %4937 }
 0xade   : > { %v5266_v17 = vadd.s32 4294967294, %v4683_v21  ;;  %v4907_v28 = vxor.u32 2147483648, %v4906_v40  ;;  %v4702_v38 = vsel %vm4617_vm7, %v4701_v51, %v8176_v47  ;;  %v4916_v2 = vadd.s32 3, %v4912_v54 }
 0xadf   : > { %v4704_v63 = vsel %vm8240_vm8, 0, %v4702_v38  ;;  %v4812_v19 = vadd.s32 3, %v4808_v33 }
 0xae0   : > { %vm5267_vm15 = vcmp.lt.s32.totalorder %v5266_v17, 0  ;;  %v4908_v16 = vsel %vm4825_vm3, %v4907_v28, %v4906_v40  ;;  %v4708_v1 = vadd.s32 3, %v4704_v63  ;;  %v4917_v31 = vand.u32 3, %v4916_v2 }
 0xae1   : > { %v4686_v12 = vsel %vm5267_vm15, 0, %v5266_v17  ;;  %v4911_v18 = vsel %vm8204_vm5, %v7987_v26, %v4908_v16  ;;  %v4813_v17 = vand.u32 3, %v4812_v19  ;;  %vm4603_vm3 = vweird.f32 %v7983_v62 }
 0xae2   : > { %v4687_v30 = vsub.s32 32, %v4686_v12  ;;  %v4691_v37 = vsub.s32 4294967266, %v4686_v12  ;;  %v4688_v3 = vshll.u32 %v4679_v6, %v4686_v12  ;;  %5736 = vcosq.f32 %v4911_v18 }
 0xae3   : > { %5738 = vsinq.f32 %v4911_v18  ;;  %v4604_v6 = vadd.s32 3, %v4600_v41  ;;  %vm4919_vm11 = vcmp.eq.s32.totalorder %v4917_v31, 0  ;;  %vm4922_vm12 = vcmp.eq.s32.totalorder %v4917_v31, 2 }
 0xae4   : > { %v4689_v8 = vshrl.u32 %v4671_v22, %v4687_v30  ;;  %v4692_v44 = vadd.s32 127, %v4691_v37  ;;  %5740 = vsinq.f32 %v4807_v52  ;;  %v4709_v30 = vand.u32 3, %v4708_v1 }
 0xae5   : > { %5742 = vcosq.f32 %v4807_v52  ;;  %v5733_v20 = vpop.eup %5732  ;;  %v4605_v47 = vand.u32 3, %v4604_v6  ;;  %vm4815_vm14 = vcmp.eq.s32.totalorder %v4813_v17, 0  ;;  %vm4818_vm15 = vcmp.eq.s32.totalorder %v4813_v17, 2 }
 0xae6   : > { %v4690_v14 = vor.u32 %v4689_v8, %v4688_v3  ;;  %v4693_v32 = vshll.u32 %v4692_v44, 23  ;;  %v5735_v25 = vpop.eup %5734  ;;  %v4611_v21 = vxor.u32 2147483648, %v5733_v20  ;;  %vm4714_vm0 = vcmp.eq.s32.totalorder %v4709_v30, 2 }
 0xae7   : > { %v4608_v40 = vxor.u32 2147483648, %v5735_v25  ;;  %vm4607_vm9 = vcmp.eq.s32.totalorder %v4605_v47, 0  ;;  %vm4610_vm10 = vcmp.eq.s32.totalorder %v4605_v47, 2  ;;  %vm4606_vm13 = vcmp.lt.s32.totalorder %v4605_v47, 2 }
 0xae8   : > { %v4694_v15 = vor.u32 4788187, %v4693_v32  ;;  %v4697_v49 = vcvt.s32.f32 %v4690_v14  ;;  %v4612_v22 = vsel %vm4610_vm10, %v4611_v21, %v5735_v25  ;;  %vm4918_vm1 = vcmp.lt.s32.totalorder %v4917_v31, 2 }
 0xae9   : > { %v4609_v27 = vsel %vm4607_vm9, %v5733_v20, %v4608_v40  ;;  %vm4711_vm4 = vcmp.eq.s32.totalorder %v4709_v30, 0  ;;  %vm4710_vm5 = vcmp.lt.s32.totalorder %v4709_v30, 2  ;;  %vm4814_vm6 = vcmp.lt.s32.totalorder %v4813_v17, 2 }
 0xaea   : > { %v4695_v23 = vand.u32 2147483647, %v4694_v15  ;;  %v4613_v44 = vsel %vm4606_vm13, %v4609_v27, %v4612_v22  ;;  %vm4811_vm9 = vweird.f32 %v7981_v61 }
 0xaeb   : > { %v4614_v18 = vsel %vm4603_vm3, nan, %v4613_v44 }
 0xaec   : > { %v4698_v56 = vmul.f32 %v4697_v49, %v4695_v23  ;;  %v5737_v29 = vpop.eup %5736  ;;  %v4927_v23 = vadd.f32 %v4614_v18, %v7673_v42  ;;  %v4931_v42 = vld [vmem:[%s8320_s8] sm:$0x1] }
 0xaed   : > { %v5739_v34 = vpop.eup %5738  ;;  %v4923_v10 = vxor.u32 2147483648, %v5737_v29 }
 0xaee   : > { %v4699_v35 = vxor.u32 2147483648, %v4698_v56  ;;  %v5741_v45 = vpop.eup %5740  ;;  %v4920_v28 = vxor.u32 2147483648, %v5739_v34 }
 0xaef   : > { %v5743_v4 = vpop.eup %5742  ;;  %v4816_v12 = vxor.u32 2147483648, %v5741_v45  ;;  %v4924_v3 = vsel %vm4922_vm12, %v4923_v10, %v5739_v34 }
 0xaf0   : > { %v4700_v48 = vsel %vm4617_vm7, %v4699_v35, %v4698_v56  ;;  %v4819_v37 = vxor.u32 2147483648, %v5743_v4  ;;  %v4921_v16 = vsel %vm4919_vm11, %v5737_v29, %v4920_v28  ;;  %vm4707_vm7 = vweird.f32 %v8002_v60 }
 0xaf1   : > { %v4703_v13 = vsel %vm8240_vm8, %v8002_v60, %v4700_v48  ;;  %v4817_v36 = vsel %vm4815_vm14, %v5743_v4, %v4816_v12  ;;  %v4925_v43 = vsel %vm4918_vm1, %v4921_v16, %v4924_v3  ;;  %vm4915_vm8 = vweird.f32 %v7987_v26 }
 0xaf2   : > { %5744 = vcosq.f32 %v4703_v13  ;;  %v4820_v14 = vsel %vm4818_vm15, %v4819_v37, %v5741_v45  ;;  %v4926_v46 = vsel %vm4915_vm8, nan, %v4925_v43 }
 0xaf3   : > { %5746 = vsinq.f32 %v4703_v13  ;;  %v4821_v52 = vsel %vm4814_vm6, %v4817_v36, %v4820_v14  ;;  %v4930_v56 = vadd.f32 %v4926_v46, %v7679_v9 }
 0xaf4   : > { %v4822_v49 = vsel %vm4811_vm9, nan, %v4821_v52 }
 0xaf5   : > { %v4929_v60 = vadd.f32 %v4822_v49, %v7684_v55 }
 0xaf7   : > { %v4933_v26 = vpack.c.bf16 %v4930_v56, %v4929_v60 }
 0xafc   : > { %v5745_v24 = vpop.eup %5744 }
 0xafd   : > { %v5747_v8 = vpop.eup %5746  ;;  %v4715_v7 = vxor.u32 2147483648, %v5745_v24 }
 0xafe   : > { %v4712_v0 = vxor.u32 2147483648, %v5747_v8 }
 0xaff   : > { %v4716_v32 = vsel %vm4714_vm0, %v4715_v7, %v5747_v8 }
 0xb00   : > { %v4713_v11 = vsel %vm4711_vm4, %v5745_v24, %v4712_v0 }
 0xb01   : > { %v4717_v15 = vsel %vm4710_vm5, %v4713_v11, %v4716_v32 }
 0xb02   : > { %v4718_v53 = vsel %vm4707_vm7, nan, %v4717_v15 }
 0xb03   : > { %v4928_v62 = vadd.f32 %v4718_v53, %v7676_v58  ;;  %v4940_v58 = vlaneseq }
 0xb05   : > { %v4932_v59 = vpack.c.bf16 %v4928_v62, %v4927_v23  ;;  %v4941_v61 = vshrl.u32 %v4940_v58, 7 }
 0xb07   : > { %5416 = vmatpush3.bf16.msra.mxu0 %v4932_v59  ;;  %v4942_v51 = vsub.s32 0, %v4941_v61 }
 0xb08   : > { %5417 = vmatprep.subr.bf16.mxu0 %v5839_v5 }
 0xb09   : > { %v4943_v9 = vrot.slane %v4938_v57, %v4942_v51 }
 0xb0b   : > { %5418 = vmatpush3.bf16.msra.mxu0 %v4933_v26 }
 0xb0e   : > { %5420 = vmatmul.mubr.msk.bf16.vlgmr.msra.gmra.mrb[12].mxu0 %vm1329_vm2, %v4931_v42 }
 0xbe1   : > { %v4981_v55 = vpop.f32.mrb[12].mxu0 }
 0xbe2   : > { %v4982_v5 = vadd.f32 %v4981_v55, %v4943_v9  ;;  %v5421_v50 = vpop.f32.mrb[13].mxu0 }
 0xbe3   : > { %v4984_v41 = vpop.f32.mrb[14].mxu0 }
 0xbe4   : > { %4987 = vst [vmem:[%s366_s13] sm:$0x1] %v4982_v5  ;;  %v5422_v35 = vpop.f32.mrb[15].mxu0 }
 0xbe5   : > { %5776 = shalt.err (!%p5773_p2)
}
 0xbe6   : > { %s5777_s29 = scalar_lea.hbm %s8270_s9, 16  ;;  %s5781_s12 = scalar_lea.hbm %s8322_s10, 32 }
 0xbe7   : > { %p5778_p3 = scmp.ne.s32.totalorder %s8270_s9, %s5777_s29  ;;  %p5782_p8 = scmp.lt.u32.totalorder %s8270_s9, %s8322_s10 }
 0xbe8   : > { %p5783_p11 = scmp.lt.u32.totalorder %s5781_s12, %s5777_s29  ;;  %p5785_p10 = scmp.lt.u32.totalorder %s5777_s29, %s8270_s9 }
 0xbe9   : > { %p5779_p4 = pnand %p5778_p3, %p5941_p5 }
 0xbea   : > { %p5784_p9 = por %p5783_p11, %p5782_p8 }
 0xbeb   : > { %p5780_p7 = pneg %p5779_p4 }
 0xbec   : > { %p5786_p12 = por %p5785_p10, %p5784_p9 }
 0xbee   : > { %p5787_p13 = pnand %p5786_p12, %p5780_p7 }
 0xbf0   : > { %5790 = shalt.err (!%p5787_p13)
}
 0xbf1   : > { %5557 = dma.vmem_to_hbm [thread:$0]  (%p5941_p5), %s8272_s14, 16, %s8270_s9, %s4989_s0  }
 0xbf2 PF: > { %p5569_p0 = scmp.ge.s32.totalorder %s5829_s20, 2  ;;  %s5013_s16 = sand.u32 1, %s5817_s17  }
 0xbf3   : > { %s5014_s22 = scalar_lea.sflag [#allocation5], %s5013_s16 }
 0xbf4   : > { %p5564_p1 = pnand %p5569_p0, %p5945_p6 }
 0xbf6   : > { %5812 = dma.done.wait (!%p5564_p1), %s5014_s22, 16  }
 0xbf7   : > { %5814 = vsyncadd (!%p5564_p1), %s5014_s22, 4294967280  ;;  %p24_p2 = scmp.ge.s32.totalorder %s5928_s21, 4   ;;  %s8376_s17 = smov %s5821_s18 }
 0xbf8   : > { %s8377_s18 = smov %s5825_s19  ;;  %s8378_s19 = smov %s5939_s24 }
 0xbf9   : > { %s8379_s20 = smov %s5928_s21  ;;  %26 = sbr.rel (!%p24_p2) target bundleno = 7 (0x7), region = 110 }
 0xc00   :  { %5018 = vsyncpa [#allocation5], 1 }
 0xc01   :  { %5020 = vsyncpa [#allocation5 + $0x1], 1 }
 0xc02   :  { %5021 = vsyncpa [#allocation6], 1 }
 0xc03   :  { %5023 = vsyncpa [#allocation6 + $0x1], 1 }

</bundles_post_ra>
